<compile_context>
chip_gen: v5e
topology: v5e:2x2
jax: 0.10.0
libtpu: 0.0.40
codegen_flags: <defaults>
</compile_context>

<pallas_src>
import math

import jax
import jax.numpy as jnp
from jax.experimental import pallas as pl
from jax.experimental.pallas import tpu as pltpu


def _attention_pool_kernel(x_ref, wq_ref, wk_ref, wv_ref, wc_ref,
                           bq_ref, bk_ref, bv_ref, bc_ref,
                           hsel_ref, hselt_ref, o_ref):
    """One grid step = one block of B batch elements.

    x_ref is fed straight from the NCHW input as (B, C, HW); the token
    transpose happens in-kernel (XLU slot) instead of as a separate HBM pass.
    """
    B, C, HW = x_ref.shape
    f32 = jnp.float32
    cdt = wq_ref.dtype            # MXU operand dtype (f32 or bf16)

    x_ncl = x_ref[...].astype(f32)                         # (B, C, HW) f32
    mean_f = jnp.mean(x_ncl, axis=2)                       # (B, C) f32 (lane reduce)
    x = jnp.transpose(x_ncl, (0, 2, 1)).astype(cdt)        # (B, HW, C) tokens
    # NOTE: HW % 8 == 0 keeps this reshape sublane-dense; correctness holds
    # regardless (common 7x7 configs just pay a relayout).
    x2d = x.reshape(B * HW, C)
    mean = mean_f.astype(cdt)

    # q / k projections. Weights pre-transposed to (C_in, C_out); the
    # 1/sqrt(head_dim) scale is folded into Wq/bq. Accumulate in f32.
    q = jnp.dot(mean, wq_ref[...], preferred_element_type=f32) + bq_ref[...]    # (B, C)
    k = jnp.dot(x2d, wk_ref[...], preferred_element_type=f32) + bk_ref[...]     # (B*HW, C)
    k3 = k.reshape(B, HW, C)
    # Linear is affine => k of the mean ("CLS") token == mean over tokens of k.
    k_mean = jnp.mean(k3, axis=1)                                               # (B, C)

    # Head-segmented scores via one matmul against the 0/1 selector (C, Hn).
    # MXU operands are cast to compute dtype; accumulation stays f32.
    hsel = hsel_ref[...]                                                        # (C, Hn)
    qk_tok = (q[:, None, :] * k3).astype(cdt).reshape(B * HW, C)
    s_tok = jnp.dot(qk_tok, hsel,
                    preferred_element_type=f32).reshape(B, HW, -1)              # (B, HW, Hn)
    s_mean = jnp.dot((q * k_mean).astype(cdt), hsel,
                     preferred_element_type=f32)                                # (B, Hn)

    # Stable softmax over L = HW + 1 positions (mean token kept separate),
    # all in f32 on the VPU/EUP (v5e has no bf16 VPU).
    m = jnp.maximum(jnp.max(s_tok, axis=1), s_mean)                             # (B, Hn)
    e_tok = jnp.exp(s_tok - m[:, None, :])                                      # (B, HW, Hn)
    e_mean = jnp.exp(s_mean - m)                                                # (B, Hn)
    denom = jnp.sum(e_tok, axis=1) + e_mean
    if cdt == f32:
        inv = 1.0 / denom                          # exact on the f32 path
    else:
        inv = pl.reciprocal(denom, approx=True)    # EUP slot, effectively free
    p_tok = e_tok * inv[:, None, :]                                             # (B, HW, Hn)
    p_mean = e_mean * inv                                                       # (B, Hn)

    # v projection deferred to here: its (B*HW, C) f32 result never coexists
    # with k / qk_tok / e_tok -> lower peak VMEM and store pressure.
    v = jnp.dot(x2d, wv_ref[...], preferred_element_type=f32) + bv_ref[...]     # (B*HW, C)
    v3 = v.reshape(B, HW, C)
    v_mean = jnp.mean(v3, axis=1)                                               # (B, C)

    # Broadcast per-head probabilities back to C columns with the transposed
    # selector and combine with v (lane-dense in C).
    hselt = hselt_ref[...]                                                      # (Hn, C)
    p_tok_c = jnp.dot(p_tok.astype(cdt).reshape(B * HW, -1), hselt,
                      preferred_element_type=f32).reshape(B, HW, C)
    p_mean_c = jnp.dot(p_mean.astype(cdt), hselt, preferred_element_type=f32)   # (B, C)
    attn = jnp.sum(p_tok_c * v3, axis=1) + p_mean_c * v_mean                    # (B, C)

    # Output projection (Wc pre-transposed and lane-padded to Dout_pad).
    y = jnp.dot(attn.astype(cdt), wc_ref[...],
                preferred_element_type=f32) + bc_ref[...]                       # (B, Dout_pad)
    o_ref[...] = y.astype(o_ref.dtype)


def attention_pool_2d(x, params, num_heads, *, block_b=None,
                      compute_dtype=jnp.float32):
    """x: [N, C, H, W] (NCHW, PyTorch conv layout). Returns [N, output_dim] f32."""
    N, C, H, W = x.shape
    HW = H * W
    assert C % num_heads == 0
    head_dim = C // num_heads
    Dout = params["wc"].shape[0]
    scale = 1.0 / math.sqrt(head_dim)
    f32 = jnp.float32
    cdt = jnp.dtype(compute_dtype)

    # Lane-pad the output projection to a multiple of 128 so the per-step
    # store is an unmasked, lane-dense vst; padding is sliced off at the end.
    Dout_pad = max(128, pl.cdiv(Dout, 128) * 128)

    # Feed NCHW blocks directly (no wrapper-side HBM transpose pass).
    x_flat = x.reshape(N, C, HW)

    # ---- block_b selection against a VMEM budget --------------------------
    # Per-batch-element working set (bytes): the f32 x block (double-buffered)
    # + its compute-dtype token copy + ~5 (HW, C)-sized f32 intermediates
    # (k / e / p / p_c / v; deferring v keeps this a conservative bound).
    per_b = HW * C * (2 * 4 + cdt.itemsize) + 5 * HW * C * 4
    if block_b is None:
        # ~24 MiB for activations/intermediates: with single-buffered weights
        # this fits v7x's 64 MiB physical VMEM and is comfortable on
        # v5e/v6e's 128 MiB.
        block_b = max(1, min(32, (24 << 20) // max(per_b, 1)))
    B = max(1, min(block_b, N))
    # Keep the (parallel) grid at least 2 long so v7x's two TensorCores both
    # get work and the pipeline has depth; prefer an even grid length.
    while B > 1 and pl.cdiv(N, B) < 2:
        B = (B + 1) // 2
    if B > 1 and pl.cdiv(N, B) % 2 == 1 and pl.cdiv(N, max(B // 2, 1)) % 2 == 0:
        B = max(B // 2, 1)
    grid_len = pl.cdiv(N, B)
    n_pad = grid_len * B
    if n_pad != N:
        x_flat = jnp.pad(x_flat, ((0, n_pad - N), (0, 0), (0, 0)))

    # ---- one-time host-side weight prep ------------------------------------
    # Transpose to (C_in, C_out), fold 1/sqrt(head_dim) into Wq/bq, lane-pad
    # Wc/bc, cast MXU operands to compute dtype, keep biases f32.
    wq_t = (params["wq"].astype(f32) * scale).T.astype(cdt)                 # (C, C)
    wk_t = params["wk"].astype(f32).T.astype(cdt)                           # (C, C)
    wv_t = params["wv"].astype(f32).T.astype(cdt)                           # (C, C)
    wc_t = jnp.zeros((C, Dout_pad), cdt).at[:, :Dout].set(
        params["wc"].astype(f32).T.astype(cdt))                             # (C, Dout_pad)
    bq = (params["bq"].astype(f32) * scale).reshape(1, C)
    bk = params["bk"].astype(f32).reshape(1, C)
    bv = params["bv"].astype(f32).reshape(1, C)
    bc = jnp.zeros((1, Dout_pad), f32).at[0, :Dout].set(params["bc"].astype(f32))

    # 0/1 head selector (C, num_heads) and its transpose, built host-side in
    # compute dtype so the score/probability matmuls run at full MXU rate.
    head_of = jnp.arange(C, dtype=jnp.int32) // head_dim
    hsel = (head_of[:, None] ==
            jnp.arange(num_heads, dtype=jnp.int32)[None, :]).astype(cdt)
    hselt = hsel.T

    # Constant-index blocks: single-buffered (double-buffering a grid-
    # invariant block only doubles its resident VMEM footprint).
    def const(shape):
        return pl.BlockSpec(shape, lambda i: (0, 0),
                            pipeline_mode=pl.Buffered(1))

    # ---- explicit VMEM budget ----------------------------------------------
    weight_bytes = ((3 * C * C + C * Dout_pad + 2 * C * num_heads) * cdt.itemsize
                    + (3 * C + Dout_pad) * 4)
    act_bytes = (2 * B * C * HW * x_flat.dtype.itemsize      # double-buffered x block
                 + 2 * B * Dout_pad * 4                      # double-buffered out block
                 + B * per_b)                                 # in-kernel intermediates
    vmem_limit = int(min(max(weight_bytes + act_bytes + (4 << 20), 32 << 20),
                         64 << 20))

    out = pl.pallas_call(
        _attention_pool_kernel,
        out_shape=jax.ShapeDtypeStruct((grid_len, B, Dout_pad), f32),
        grid=(grid_len,),
        in_specs=[
            pl.BlockSpec((B, C, HW), lambda i: (i, 0, 0)),     # NCHW token block
            const((C, C)), const((C, C)), const((C, C)),       # Wq, Wk, Wv
            const((C, Dout_pad)),                              # Wc (lane-padded)
            const((1, C)), const((1, C)), const((1, C)),       # bq, bk, bv
            const((1, Dout_pad)),                              # bc
            const((C, num_heads)), const((num_heads, C)),      # head selectors
        ],
        out_specs=pl.BlockSpec((None, B, Dout_pad), lambda i: (i, 0, 0)),
        compiler_params=pltpu.CompilerParams(
            dimension_semantics=("parallel",),
            vmem_limit_bytes=vmem_limit),
    )(x_flat, wq_t, wk_t, wv_t, wc_t, bq, bk, bv, bc, hsel, hselt)

    return out.reshape(n_pad, Dout_pad)[:N, :Dout]             # (N, Dout)


def attention_pool_2d_reference(x, params, num_heads):
    """Pure-JAX reference matching F.multi_head_attention_forward semantics."""
    N, C, H, W = x.shape
    hd = C // num_heads
    tokens = jnp.transpose(x.reshape(N, C, -1), (0, 2, 1))     # (N, HW, C)
    mean_tok = jnp.mean(tokens, axis=1, keepdims=True)         # (N, 1, C)
    seq = jnp.concatenate([mean_tok, tokens], axis=1)          # (N, L, C)

    q = mean_tok @ params["wq"].T + params["bq"]
    k = seq @ params["wk"].T + params["bk"]
    v = seq @ params["wv"].T + params["bv"]

    qh = q.reshape(N, 1, num_heads, hd).transpose(0, 2, 1, 3)
    kh = k.reshape(N, -1, num_heads, hd).transpose(0, 2, 1, 3)
    vh = v.reshape(N, -1, num_heads, hd).transpose(0, 2, 1, 3)

    s = jnp.einsum("bhqd,bhkd->bhqk", qh, kh) / jnp.sqrt(jnp.float32(hd))
    p = jax.nn.softmax(s, axis=-1)
    o = jnp.einsum("bhqk,bhkd->bhqd", p, vh).transpose(0, 2, 1, 3).reshape(N, 1, C)
    y = o @ params["wc"].T + params["bc"]
    return y[:, 0, :]


def init_params(key, embed_dim, output_dim):
    ks = jax.random.split(key, 8)
    sc = 1.0 / math.sqrt(embed_dim)
    return {
        "wq": jax.random.uniform(ks[0], (embed_dim, embed_dim), jnp.float32, -sc, sc),
        "bq": jax.random.uniform(ks[1], (embed_dim,), jnp.float32, -sc, sc),
        "wk": jax.random.uniform(ks[2], (embed_dim, embed_dim), jnp.float32, -sc, sc),
        "bk": jax.random.uniform(ks[3], (embed_dim,), jnp.float32, -sc, sc),
        "wv": jax.random.uniform(ks[4], (embed_dim, embed_dim), jnp.float32, -sc, sc),
        "bv": jax.random.uniform(ks[5], (embed_dim,), jnp.float32, -sc, sc),
        "wc": jax.random.uniform(ks[6], (output_dim, embed_dim), jnp.float32, -sc, sc),
        "bc": jax.random.uniform(ks[7], (output_dim,), jnp.float32, -sc, sc),
    }


if __name__ == "__main__":
    embed_dim = 32
    num_heads = 4
    output_dim = 64
    N, H, W = 16, 8, 8          # auto block_b -> B=8, grid = 2 (even, parallel)

    key = jax.random.PRNGKey(0)
    k_x, k_p = jax.random.split(key)
    x = jax.random.normal(k_x, (N, embed_dim, H, W), jnp.float32)  # NCHW
    params = init_params(k_p, embed_dim, output_dim)

    ref = attention_pool_2d_reference(x, params, num_heads)

    # f32 path (exact reciprocal, f32 accumulation everywhere).
    out = attention_pool_2d(x, params, num_heads)
    out = jax.block_until_ready(out)
    assert out.shape == (N, output_dim)
    assert jnp.max(jnp.abs(out - ref)) < 5e-3, "f32 mismatch vs reference"

    # bf16 MXU-operand path (v6e/v7x friendly) — f32 accumulation/softmax.
    out_bf16 = attention_pool_2d(x, params, num_heads,
                                 compute_dtype=jnp.bfloat16)
    out_bf16 = jax.block_until_ready(out_bf16)
    assert out_bf16.shape == (N, output_dim)
    assert jnp.max(jnp.abs(out_bf16 - ref)) < 1.5e-1, "bf16 mismatch vs reference"

    print("KERNEL_OK")
</pallas_src>

<mosaic_0001>
module attributes {stable_mosaic.version = 11 : i64} {
  func.func @_attention_pool_kernel(%arg0: i32, %arg1: memref<8x32x64xf32, #tpu.memory_space<vmem>>, %arg2: memref<32x32xf32, #tpu.memory_space<vmem>>, %arg3: memref<32x32xf32, #tpu.memory_space<vmem>>, %arg4: memref<32x32xf32, #tpu.memory_space<vmem>>, %arg5: memref<32x128xf32, #tpu.memory_space<vmem>>, %arg6: memref<1x32xf32, #tpu.memory_space<vmem>>, %arg7: memref<1x32xf32, #tpu.memory_space<vmem>>, %arg8: memref<1x32xf32, #tpu.memory_space<vmem>>, %arg9: memref<1x128xf32, #tpu.memory_space<vmem>>, %arg10: memref<32x4xf32, #tpu.memory_space<vmem>>, %arg11: memref<4x32xf32, #tpu.memory_space<vmem>>, %arg12: memref<1x8x128xf32, #tpu.memory_space<vmem>>) attributes {dimension_semantics = [#tpu.dimension_semantics<parallel>], iteration_bounds = array<i64: 2>, scalar_prefetch = 0 : i64, scratch_operands = 0 : i64, tpu.core_type = #tpu.core_type<tc>, window_params = [{transform_indices = @transform_0, window_bounds = array<i64: 8, 32, 64>}, {pipeline_mode = #tpu.pipeline_mode<synchronous>, transform_indices = @transform_1, window_bounds = array<i64: 32, 32>}, {pipeline_mode = #tpu.pipeline_mode<synchronous>, transform_indices = @transform_2, window_bounds = array<i64: 32, 32>}, {pipeline_mode = #tpu.pipeline_mode<synchronous>, transform_indices = @transform_3, window_bounds = array<i64: 32, 32>}, {pipeline_mode = #tpu.pipeline_mode<synchronous>, transform_indices = @transform_4, window_bounds = array<i64: 32, 128>}, {pipeline_mode = #tpu.pipeline_mode<synchronous>, transform_indices = @transform_5, window_bounds = array<i64: 1, 32>}, {pipeline_mode = #tpu.pipeline_mode<synchronous>, transform_indices = @transform_6, window_bounds = array<i64: 1, 32>}, {pipeline_mode = #tpu.pipeline_mode<synchronous>, transform_indices = @transform_7, window_bounds = array<i64: 1, 32>}, {pipeline_mode = #tpu.pipeline_mode<synchronous>, transform_indices = @transform_8, window_bounds = array<i64: 1, 128>}, {pipeline_mode = #tpu.pipeline_mode<synchronous>, transform_indices = @transform_9, window_bounds = array<i64: 32, 4>}, {pipeline_mode = #tpu.pipeline_mode<synchronous>, transform_indices = @transform_10, window_bounds = array<i64: 4, 32>}, {transform_indices = @transform_11, window_bounds = array<i64: 1, 8, 128>}]} {
    %c0 = arith.constant 0 : index
    %c0_0 = arith.constant 0 : index
    %c0_1 = arith.constant 0 : index
    %0 = vector.load %arg1[%c0, %c0_0, %c0_1] : memref<8x32x64xf32, #tpu.memory_space<vmem>>, vector<8x32x64xf32>
    %cst = arith.constant dense<0.000000e+00> : vector<8x32xf32>
    %1 = vector.multi_reduction <add>, %0, %cst [2] : vector<8x32x64xf32> to vector<8x32xf32>
    %cst_2 = arith.constant 6.400000e+01 : f32
    %2 = vector.broadcast %cst_2 : f32 to vector<8x32xf32>
    %3 = arith.divf %1, %2 : vector<8x32xf32>
    %4 = tpu.transpose %0, [0, 2, 1] : vector<8x32x64xf32> -> vector<8x64x32xf32>
    %5 = vector.shape_cast %4 : vector<8x64x32xf32> to vector<512x32xf32>
    %c0_3 = arith.constant 0 : index
    %c0_4 = arith.constant 0 : index
    %6 = vector.load %arg2[%c0_3, %c0_4] : memref<32x32xf32, #tpu.memory_space<vmem>>, vector<32x32xf32>
    %cst_5 = arith.constant dense<0.000000e+00> : vector<8x32xf32>
    %7 = tpu.matmul %3, %6, %cst_5 {dimension_numbers = #tpu.dot_dimension_numbers<[1], [0], [0], [1], [0, 0, 1, 1], [], []>} : vector<8x32xf32>, vector<32x32xf32>, vector<8x32xf32> -> vector<8x32xf32>
    %c0_6 = arith.constant 0 : index
    %c0_7 = arith.constant 0 : index
    %8 = vector.load %arg6[%c0_6, %c0_7] : memref<1x32xf32, #tpu.memory_space<vmem>>, vector<1x32xf32>
    %9 = vector.broadcast %8 : vector<1x32xf32> to vector<8x32xf32>
    %10 = arith.addf %7, %9 : vector<8x32xf32>
    %c0_8 = arith.constant 0 : index
    %c0_9 = arith.constant 0 : index
    %11 = vector.load %arg3[%c0_8, %c0_9] : memref<32x32xf32, #tpu.memory_space<vmem>>, vector<32x32xf32>
    %cst_10 = arith.constant dense<0.000000e+00> : vector<512x32xf32>
    %12 = tpu.matmul %5, %11, %cst_10 {dimension_numbers = #tpu.dot_dimension_numbers<[1], [0], [0], [1], [0, 0, 1, 1], [], []>} : vector<512x32xf32>, vector<32x32xf32>, vector<512x32xf32> -> vector<512x32xf32>
    %c0_11 = arith.constant 0 : index
    %c0_12 = arith.constant 0 : index
    %13 = vector.load %arg7[%c0_11, %c0_12] : memref<1x32xf32, #tpu.memory_space<vmem>>, vector<1x32xf32>
    %14 = vector.broadcast %13 : vector<1x32xf32> to vector<512x32xf32>
    %15 = arith.addf %12, %14 : vector<512x32xf32>
    %16 = vector.shape_cast %15 : vector<512x32xf32> to vector<8x64x32xf32>
    %cst_13 = arith.constant dense<0.000000e+00> : vector<8x32xf32>
    %17 = vector.multi_reduction <add>, %16, %cst_13 [1] : vector<8x64x32xf32> to vector<8x32xf32>
    %cst_14 = arith.constant 6.400000e+01 : f32
    %18 = vector.broadcast %cst_14 : f32 to vector<8x32xf32>
    %19 = arith.divf %17, %18 : vector<8x32xf32>
    %c0_15 = arith.constant 0 : index
    %c0_16 = arith.constant 0 : index
    %20 = vector.load %arg10[%c0_15, %c0_16] : memref<32x4xf32, #tpu.memory_space<vmem>>, vector<32x4xf32>
    %21 = vector.shape_cast %10 : vector<8x32xf32> to vector<8x1x32xf32>
    %22 = vector.broadcast %21 : vector<8x1x32xf32> to vector<8x64x32xf32>
    %23 = arith.mulf %22, %16 : vector<8x64x32xf32>
    %24 = vector.shape_cast %23 : vector<8x64x32xf32> to vector<512x32xf32>
    %cst_17 = arith.constant dense<0.000000e+00> : vector<512x4xf32>
    %25 = tpu.matmul %24, %20, %cst_17 {dimension_numbers = #tpu.dot_dimension_numbers<[1], [0], [0], [1], [0, 0, 1, 1], [], []>} : vector<512x32xf32>, vector<32x4xf32>, vector<512x4xf32> -> vector<512x4xf32>
    %26 = vector.shape_cast %25 : vector<512x4xf32> to vector<8x64x4xf32>
    %27 = arith.mulf %10, %19 : vector<8x32xf32>
    %cst_18 = arith.constant dense<0.000000e+00> : vector<8x4xf32>
    %28 = tpu.matmul %27, %20, %cst_18 {dimension_numbers = #tpu.dot_dimension_numbers<[1], [0], [0], [1], [0, 0, 1, 1], [], []>} : vector<8x32xf32>, vector<32x4xf32>, vector<8x4xf32> -> vector<8x4xf32>
    %cst_19 = arith.constant dense<0xFF800000> : vector<8x4xf32>
    %29 = vector.multi_reduction <maximumf>, %26, %cst_19 [1] : vector<8x64x4xf32> to vector<8x4xf32>
    %30 = arith.maximumf %29, %28 : vector<8x4xf32>
    %31 = vector.shape_cast %30 : vector<8x4xf32> to vector<8x1x4xf32>
    %32 = vector.broadcast %31 : vector<8x1x4xf32> to vector<8x64x4xf32>
    %33 = arith.subf %26, %32 : vector<8x64x4xf32>
    %34 = math.exp %33 : vector<8x64x4xf32>
    %35 = arith.subf %28, %30 : vector<8x4xf32>
    %36 = math.exp %35 : vector<8x4xf32>
    %cst_20 = arith.constant dense<0.000000e+00> : vector<8x4xf32>
    %37 = vector.multi_reduction <add>, %34, %cst_20 [1] : vector<8x64x4xf32> to vector<8x4xf32>
    %38 = arith.addf %37, %36 : vector<8x4xf32>
    %cst_21 = arith.constant 1.000000e+00 : f32
    %39 = vector.broadcast %cst_21 : f32 to vector<8x4xf32>
    %40 = arith.divf %39, %38 : vector<8x4xf32>
    %41 = vector.shape_cast %40 : vector<8x4xf32> to vector<8x1x4xf32>
    %42 = vector.broadcast %41 : vector<8x1x4xf32> to vector<8x64x4xf32>
    %43 = arith.mulf %34, %42 : vector<8x64x4xf32>
    %44 = arith.mulf %36, %40 : vector<8x4xf32>
    %c0_22 = arith.constant 0 : index
    %c0_23 = arith.constant 0 : index
    %45 = vector.load %arg4[%c0_22, %c0_23] : memref<32x32xf32, #tpu.memory_space<vmem>>, vector<32x32xf32>
    %cst_24 = arith.constant dense<0.000000e+00> : vector<512x32xf32>
    %46 = tpu.matmul %5, %45, %cst_24 {dimension_numbers = #tpu.dot_dimension_numbers<[1], [0], [0], [1], [0, 0, 1, 1], [], []>} : vector<512x32xf32>, vector<32x32xf32>, vector<512x32xf32> -> vector<512x32xf32>
    %c0_25 = arith.constant 0 : index
    %c0_26 = arith.constant 0 : index
    %47 = vector.load %arg8[%c0_25, %c0_26] : memref<1x32xf32, #tpu.memory_space<vmem>>, vector<1x32xf32>
    %48 = vector.broadcast %47 : vector<1x32xf32> to vector<512x32xf32>
    %49 = arith.addf %46, %48 : vector<512x32xf32>
    %50 = vector.shape_cast %49 : vector<512x32xf32> to vector<8x64x32xf32>
    %cst_27 = arith.constant dense<0.000000e+00> : vector<8x32xf32>
    %51 = vector.multi_reduction <add>, %50, %cst_27 [1] : vector<8x64x32xf32> to vector<8x32xf32>
    %cst_28 = arith.constant 6.400000e+01 : f32
    %52 = vector.broadcast %cst_28 : f32 to vector<8x32xf32>
    %53 = arith.divf %51, %52 : vector<8x32xf32>
    %c0_29 = arith.constant 0 : index
    %c0_30 = arith.constant 0 : index
    %54 = vector.load %arg11[%c0_29, %c0_30] : memref<4x32xf32, #tpu.memory_space<vmem>>, vector<4x32xf32>
    %55 = vector.shape_cast %43 : vector<8x64x4xf32> to vector<512x4xf32>
    %cst_31 = arith.constant dense<0.000000e+00> : vector<512x32xf32>
    %56 = tpu.matmul %55, %54, %cst_31 {dimension_numbers = #tpu.dot_dimension_numbers<[1], [0], [0], [1], [0, 0, 1, 1], [], []>} : vector<512x4xf32>, vector<4x32xf32>, vector<512x32xf32> -> vector<512x32xf32>
    %57 = vector.shape_cast %56 : vector<512x32xf32> to vector<8x64x32xf32>
    %cst_32 = arith.constant dense<0.000000e+00> : vector<8x32xf32>
    %58 = tpu.matmul %44, %54, %cst_32 {dimension_numbers = #tpu.dot_dimension_numbers<[1], [0], [0], [1], [0, 0, 1, 1], [], []>} : vector<8x4xf32>, vector<4x32xf32>, vector<8x32xf32> -> vector<8x32xf32>
    %59 = arith.mulf %57, %50 : vector<8x64x32xf32>
    %cst_33 = arith.constant dense<0.000000e+00> : vector<8x32xf32>
    %60 = vector.multi_reduction <add>, %59, %cst_33 [1] : vector<8x64x32xf32> to vector<8x32xf32>
    %61 = arith.mulf %58, %53 : vector<8x32xf32>
    %62 = arith.addf %60, %61 : vector<8x32xf32>
    %c0_34 = arith.constant 0 : index
    %c0_35 = arith.constant 0 : index
    %63 = vector.load %arg5[%c0_34, %c0_35] : memref<32x128xf32, #tpu.memory_space<vmem>>, vector<32x128xf32>
    %cst_36 = arith.constant dense<0.000000e+00> : vector<8x128xf32>
    %64 = tpu.matmul %62, %63, %cst_36 {dimension_numbers = #tpu.dot_dimension_numbers<[1], [0], [0], [1], [0, 0, 1, 1], [], []>} : vector<8x32xf32>, vector<32x128xf32>, vector<8x128xf32> -> vector<8x128xf32>
    %c0_37 = arith.constant 0 : index
    %c0_38 = arith.constant 0 : index
    %65 = vector.load %arg9[%c0_37, %c0_38] : memref<1x128xf32, #tpu.memory_space<vmem>>, vector<1x128xf32>
    %66 = vector.broadcast %65 : vector<1x128xf32> to vector<8x128xf32>
    %67 = arith.addf %64, %66 : vector<8x128xf32>
    %c0_39 = arith.constant 0 : index
    %c0_40 = arith.constant 0 : index
    %c0_41 = arith.constant 0 : index
    %68 = vector.load %arg12[%c0_39, %c0_40, %c0_41] : memref<1x8x128xf32, #tpu.memory_space<vmem>>, vector<1x8x128xf32>
    %69 = vector.shape_cast %68 : vector<1x8x128xf32> to vector<8x128xf32>
    %70 = vector.shape_cast %67 : vector<8x128xf32> to vector<1x8x128xf32>
    tpu.vector_store %arg12[%c0_39, %c0_40, %c0_41], %70 {strides = array<i32>} : memref<1x8x128xf32, #tpu.memory_space<vmem>>, vector<1x8x128xf32>,
    return
  }
  func.func @transform_0(%arg0: i32) -> (i32, i32, i32) {
    %c0_i32 = arith.constant 0 : i32
    %c0_i32_0 = arith.constant 0 : i32
    %c0_i32_1 = arith.constant 0 : i32
    return %arg0, %c0_i32, %c0_i32_0 : i32, i32, i32
  }
  func.func @transform_1(%arg0: i32) -> (i32, i32) {
    %c0_i32 = arith.constant 0 : i32
    %c0_i32_0 = arith.constant 0 : i32
    %c0_i32_1 = arith.constant 0 : i32
    return %c0_i32, %c0_i32_0 : i32, i32
  }
  func.func @transform_2(%arg0: i32) -> (i32, i32) {
    %c0_i32 = arith.constant 0 : i32
    %c0_i32_0 = arith.constant 0 : i32
    %c0_i32_1 = arith.constant 0 : i32
    return %c0_i32, %c0_i32_0 : i32, i32
  }
  func.func @transform_3(%arg0: i32) -> (i32, i32) {
    %c0_i32 = arith.constant 0 : i32
    %c0_i32_0 = arith.constant 0 : i32
    %c0_i32_1 = arith.constant 0 : i32
    return %c0_i32, %c0_i32_0 : i32, i32
  }
  func.func @transform_4(%arg0: i32) -> (i32, i32) {
    %c0_i32 = arith.constant 0 : i32
    %c0_i32_0 = arith.constant 0 : i32
    %c0_i32_1 = arith.constant 0 : i32
    return %c0_i32, %c0_i32_0 : i32, i32
  }
  func.func @transform_5(%arg0: i32) -> (i32, i32) {
    %c0_i32 = arith.constant 0 : i32
    %c0_i32_0 = arith.constant 0 : i32
    %c0_i32_1 = arith.constant 0 : i32
    return %c0_i32, %c0_i32_0 : i32, i32
  }
  func.func @transform_6(%arg0: i32) -> (i32, i32) {
    %c0_i32 = arith.constant 0 : i32
    %c0_i32_0 = arith.constant 0 : i32
    %c0_i32_1 = arith.constant 0 : i32
    return %c0_i32, %c0_i32_0 : i32, i32
  }
  func.func @transform_7(%arg0: i32) -> (i32, i32) {
    %c0_i32 = arith.constant 0 : i32
    %c0_i32_0 = arith.constant 0 : i32
    %c0_i32_1 = arith.constant 0 : i32
    return %c0_i32, %c0_i32_0 : i32, i32
  }
  func.func @transform_8(%arg0: i32) -> (i32, i32) {
    %c0_i32 = arith.constant 0 : i32
    %c0_i32_0 = arith.constant 0 : i32
    %c0_i32_1 = arith.constant 0 : i32
    return %c0_i32, %c0_i32_0 : i32, i32
  }
  func.func @transform_9(%arg0: i32) -> (i32, i32) {
    %c0_i32 = arith.constant 0 : i32
    %c0_i32_0 = arith.constant 0 : i32
    %c0_i32_1 = arith.constant 0 : i32
    return %c0_i32, %c0_i32_0 : i32, i32
  }
  func.func @transform_10(%arg0: i32) -> (i32, i32) {
    %c0_i32 = arith.constant 0 : i32
    %c0_i32_0 = arith.constant 0 : i32
    %c0_i32_1 = arith.constant 0 : i32
    return %c0_i32, %c0_i32_0 : i32, i32
  }
  func.func @transform_11(%arg0: i32) -> (i32, i32, i32) {
    %c0_i32 = arith.constant 0 : i32
    %c0_i32_0 = arith.constant 0 : i32
    %c0_i32_1 = arith.constant 0 : i32
    return %arg0, %c0_i32, %c0_i32_0 : i32, i32, i32
  }
}

</mosaic_0001>

<bundles_post_ra>
// kernel: tpu_custom_call.1
= control target key start
LH: loop header
LB: loop body
LE: loop exit
PB: predicated region body
PF: predicated region fallthrough
CT: control target
= control target key end

     0   :  { %s7935_s0 = inlined_call_operand.hbm [shape: f32[16,32,64], index: 0, kind: input, shape index: {}]   ;;  %s7936_s1 = inlined_call_operand.vmem [shape: f32[32,32], index: 1, kind: input, shape index: {}]   ;;  %s7937_s2 = inlined_call_operand.hbm [shape: f32[32,32], index: 2, kind: input, shape index: {}]   ;;  %s7938_s3 = inlined_call_operand.hbm [shape: f32[32,32], index: 3, kind: input, shape index: {}]   ;;  %s7939_s4 = inlined_call_operand.hbm [shape: f32[32,128], index: 4, kind: input, shape index: {}]   ;;  %s7940_s5 = inlined_call_operand.vmem [shape: f32[1,32], index: 5, kind: input, shape index: {}]   ;;  %s7941_s6 = inlined_call_operand.vmem [shape: f32[1,32], index: 6, kind: input, shape index: {}]   ;;  %s7942_s7 = inlined_call_operand.vmem [shape: f32[1,32], index: 7, kind: input, shape index: {}]   ;;  %s7943_s8 = inlined_call_operand.hbm [shape: f32[1,128], index: 8, kind: input, shape index: {}]   ;;  %s7944_s9 = inlined_call_operand.vmem [shape: f32[32,4], index: 9, kind: input, shape index: {}]   ;;  %s7945_s10 = inlined_call_operand.vmem [shape: f32[4,32], index: 10, kind: input, shape index: {}]   ;;  %s7946_s11 = inlined_call_operand.hbm [shape: f32[2,8,128], index: 11, kind: output, shape index: {}]  }
   0x1   :  { %8116 = sst [smem:[#allocation125_spill]] %s7937_s2 }
   0x2   :  { %8117 = sst [smem:[#allocation126_spill]] %s7938_s3 }
   0x3   :  { %8118 = sst [smem:[#allocation127_spill]] %s7939_s4 }
   0x4   :  { %8119 = sst [smem:[#allocation128_spill]] %s7943_s8 }
   0x5   :  { %16 = vsyncpa [#allocation3], 0 }
   0x6   :  { %18 = vsyncpa [#allocation3 + $0x1], 0 }
   0x7   :  { %19 = vsyncpa [#allocation6], 0 }
   0x8   :  { %20 = vsyncpa [#allocation9], 0 }
   0x9   :  { %21 = vsyncpa [#allocation4], 0 }
   0xa   :  { %23 = vsyncpa [#allocation4 + $0x1], 0  ;;  %s5079_s17 = smov 0   ;;  %s5081_s18 = smov 0  }
   0xb   :  { %s5083_s19 = smov 0   ;;  %s5085_s20 = smov 0  }
   0xc LB: > { %s5100_s21 = sadd.s32 4294967295, %s5010_s20   ;;  %s4255_s22 = sadd.s32 4294967294, %s5010_s20   ;;  %s5010_s20 = sphi %s5085_s20, %s8569_s20   ;;  %s5006_s19 = sphi %s5083_s19, %s8568_s19   ;;  %s5002_s18 = sphi %s5081_s18, %s8567_s18   ;;  %s4998_s17 = sphi %s5079_s17, %s8566_s17  }
   0xd   : > { %p49_p0 = scmp.ne.s32.totalorder %s5002_s18, %s4998_s17  ;;  %p50_p1 = scmp.eq.s32.totalorder %s5100_s21, 0 }
   0xe   : > { %p283_p2 = scmp.eq.s32.totalorder %s5100_s21, 1  ;;  %p289_p3 = scmp.eq.s32.totalorder %s4255_s22, 1 }
   0xf   : > { %p5109_p4 = por %p50_p1, %p49_p0  ;;  %p4256_p5 = scmp.ge.s32.totalorder %s5010_s20, 1 }
  0x10   : > { %p5114_p6 = por %p289_p3, %p49_p0  ;;  %p296_p7 = scmp.lt.s32.totalorder %s5010_s20, 3 }
  0x11   : > { %s8123_s2 = sld [smem:[#allocation125_spill]]  ;;  %s5012_s29 = smov [#allocation5]  }
  0x12   : > { %s8121_s24 = scalar_select %p5114_p6, 1, 0 }
  0x13   : > { %p5122_p8 = pnand %p4256_p5, %p296_p7  ;;  %s312_s30 = sshll.u32 %s5012_s29, 4  ;;  %s313_s30 = int_to_ptr.vmem [resolvable:$true] %s312_s30 }
  0x14   : > { %8122 = sst [smem:[#allocation16_spill]] %s8121_s24  ;;  %s7948_s16 = smov 128  }
  0x15   : > { %p4561_p9 = pneg %p5122_p8  ;;  %s8126_s4 = sld [smem:[#allocation127_spill]] }
  0x16   : > { %s7949_s22 = smov 8   ;;  %s5015_s25 = smov [#allocation8]  }
  0x17   : > { %s310_s27 = sshll.u32 %s8123_s2, 4  ;;  %p5130_p10 = pnand %p4561_p9, %p50_p1  ;;  %s311_s27 = int_to_ptr.hbm [resolvable:$true] %s310_s27 }
  0x18   : > { %s340_s26 = sshll.u32 %s5015_s25, 4  ;;  %s8127_s3 = sld [smem:[#allocation126_spill]]  ;;  %s341_s26 = int_to_ptr.vmem [resolvable:$true] %s340_s26 }
  0x19   : > { %4564 = dma.hbm_to_vmem [thread:$0]  (!%p5130_p10), %s311_s27, 512, %s313_s30, [#allocation6], %s7948_s16, %s7948_s16, %s7949_s22  }
  0x1a   : > { %s8128_s8 = sld [smem:[#allocation128_spill]]  ;;  %s5016_s14 = smov [#allocation7]  }
  0x1b   : > { %s338_s15 = sshll.u32 %s8126_s4, 4  ;;  %s326_s2 = sshll.u32 %s5016_s14, 4  ;;  %s339_s15 = int_to_ptr.hbm [resolvable:$true] %s338_s15  ;;  %s327_s2 = int_to_ptr.vmem [resolvable:$true] %s326_s2 }
  0x1c   : > { %4570 = dma.hbm_to_vmem [thread:$0]  (!%p5130_p10), %s339_s15, 512, %s341_s26, [#allocation9], %s7948_s16, %s7948_s16, %s7949_s22  }
  0x1d   : > { %s5017_s25 = smov [#allocation10]   ;;  %s5162_s26 = sadd.s32 1, %s5010_s20  }
  0x1e   : > { %s324_s24 = sshll.u32 %s8127_s3, 4  ;;  %s364_s15 = sshll.u32 %s5017_s25, 4  ;;  %s325_s24 = int_to_ptr.hbm [resolvable:$true] %s324_s24  ;;  %s365_s15 = int_to_ptr.vmem [resolvable:$true] %s364_s15 }
  0x1f   : > { %4567 = dma.hbm_to_vmem [thread:$0]  (!%p5130_p10), %s325_s24, 512, %s327_s2, [#allocation6], %s7948_s16, %s7948_s16, %s7949_s22  }
  0x20   : > { %s362_s13 = sshll.u32 %s8128_s8, 4  ;;  %s36_s29 = sadd.s32 1, %s5006_s19  ;;  %s363_s13 = int_to_ptr.hbm [resolvable:$true] %s362_s13 }
  0x21   : > { %4573 = dma.hbm_to_vmem [thread:$0]  (!%p5130_p10), %s363_s13, 16, %s365_s15, [#allocation9]  }
  0x22   : > { %s33_s27 = ssub.s32 %s5010_s20, %s5162_s26  ;;  %p43_p12 = scmp.ne.s32.totalorder %s5006_s19, %s5002_s18 }
  0x23   : > { %p34_p13 = scmp.eq.s32.totalorder %s33_s27, 0  ;;  %p44_p0 = scmp.eq.s32.totalorder %s5010_s20, 0 }
  0x24   : > { %p5172_p3 = por %p283_p2, %p43_p12  ;;  %p4586_p5 = scmp.lt.s32.totalorder %s5010_s20, 2 }
  0x25   : > { %s5178_s24 = scalar_select %p34_p13, %s5006_s19, %s36_s29  }
  0x26   : > { %p45_p7 = por %p44_p0, %p43_p12  ;;  %s381_s14 = sand.u32 1, %s5006_s19  }
  0x27   : > { %s4262_s12 = sshll.u32 %s381_s14, 8  ;;  %s4540_s13 = sshll.u32 %s5010_s20, 8 }
  0x28   : > { %s391_s15 = scalar_lea.hbm %s7935_s0, %s4540_s13  ;;  %s385_s16 = scalar_lea.vmem [#allocation2], %s4262_s12 }
  0x29   : > { %s394_s22 = sshll.u32 %s385_s16, 4  ;;  %s392_s27 = sshll.u32 %s391_s15, 4  ;;  %s395_s22 = int_to_ptr.vmem [resolvable:$true] %s394_s22  ;;  %s393_s27 = int_to_ptr.hbm [resolvable:$true] %s392_s27 }
  0x2a   : > { %p5185_p2 = pnand %p4586_p5, %p45_p7  ;;  %s382_s29 = scalar_lea.sflag [#allocation3], %s381_s14 }
  0x2b   : > { %s4906_s4 = sshra.s32 %s393_s27, 4  ;;  %s4913_s16 = scalar_lea.hbm %s7935_s0, 512  ;;  %s4907_s4 = int_to_ptr.hbm [resolvable:$true] %s4906_s4 }
  0x2c   : > { %s4908_s8 = scalar_lea.hbm %s4907_s4, 256  ;;  %p4910_p10 = pneg %p5185_p2 }
  0x2d   : > { %p4909_p9 = scmp.ne.s32.totalorder %s4907_s4, %s4908_s8  ;;  %p4914_p0 = scmp.lt.s32.totalorder %s4907_s4, %s7935_s0 }
  0x2e   : > { %p4915_p5 = scmp.lt.s32.totalorder %s4913_s16, %s4908_s8 }
  0x2f   : > { %p4911_p12 = pnand %p4910_p10, %p4909_p9 }
  0x30   : > { %p4916_p7 = por %p4915_p5, %p4914_p0 }
  0x31   : > { %p4912_p13 = pneg %p4911_p12 }
  0x33   : > { %p4917_p11 = pnand %p4916_p7, %p4912_p13 }
  0x35   : > { %4920 = shalt.err (!%p4917_p11)
}
  0x36   : > { %s8131_s14 = smov 8   ;;  %s8132_s15 = smov 128  }
  0x37   : > { %4577 = dma.hbm_to_vmem [thread:$0]  (!%p5185_p2), %s393_s27, 4096, %s395_s22, %s382_s29, %s8132_s15, %s8132_s15, %s8131_s14  }
  0x38   : > { %406 = sbr.rel (%p5122_p8) target bundleno = 2033 (0x7f1), region = 64 }
  0x3d   : > { %s5205_s13 = sand.u32 1, %s5002_s18  }
  0x3e   : > { %s4267_s4 = sshll.u32 %s5205_s13, 8  ;;  %s409_s8 = scalar_lea.sflag [#allocation3], %s5205_s13 }
  0x3f   : > { %s5209_s12 = scalar_lea.vmem [#allocation2], %s4267_s4 }
  0x40   : > { %4981 = dma.done.wait (%p5109_p4), %s409_s8, 4096  }
  0x41   : > { %4983 = vsyncadd (%p5109_p4), %s409_s8, 4294963200 }
  0x42   : > { %4985 = dma.done.wait (%p50_p1), [#allocation6], 1024  }
  0x43   : > { %4987 = vsyncadd (%p50_p1), [#allocation6], 4294966272 }
  0x44   : > { %4989 = dma.done.wait (%p50_p1), [#allocation9], 528  }
  0x45   : > { %4991 = vsyncadd (%p50_p1), [#allocation9], 4294966768  ;;  %vm505_vm0 = vcmask 523264   ;;  %v5224_v0 = vld [vmem:[%s5209_s12 + $0x20] sm:$0xff]  ;;  %v5227_v1 = vld [vmem:[%s5209_s12 + $0x10] sm:$0xff]  ;;  %vm942_vm2 = vcmask 130112  }
  0x46   : > { %v5230_v2 = vld [vmem:[%s5209_s12] sm:$0xff]  ;;  %v518_v3 = vsel %vm505_vm0, %v5224_v0, 0.0  ;;  %v512_v4 = vsel %vm505_vm0, %v5227_v1, 0.0  ;;  %v5239_v6 = vld [vmem:[%s5209_s12 + $0x28] sm:$0xff]  ;;  %v5242_v7 = vld [vmem:[%s5209_s12 + $0x30] sm:$0xff]  ;;  %vm946_vm3 = vcmask 195712  }
  0x47   : > { %v506_v5 = vsel %vm505_vm0, %v5230_v2, 0.0  ;;  %519 = vadd.xlane.f32.xlu1 %v518_v3  ;;  %513 = vadd.xlane.f32.xlu2 %v512_v4  ;;  %v5245_v8 = vld [vmem:[%s5209_s12 + $0x8] sm:$0xff]  ;;  %v521_v9 = vsel %vm505_vm0, %v5239_v6, 0.0  ;;  %v524_v10 = vsel %vm505_vm0, %v5242_v7, 0.0  ;;  %v5257_v13 = vld [vmem:[%s5209_s12 + $0x18] sm:$0xff]  ;;  %v5260_v14 = vld [vmem:[%s5209_s12 + $0x40] sm:$0xff] }
  0x48   : > { %507 = vadd.xlane.f32.xlu0 %v506_v5  ;;  %v509_v11 = vsel %vm505_vm0, %v5245_v8, 0.0  ;;  %v5254_v12 = vld [vmem:[%s5209_s12 + $0x48] sm:$0xff]  ;;  %v515_v16 = vsel %vm505_vm0, %v5257_v13, 0.0  ;;  %v530_v17 = vsel %vm505_vm0, %v5260_v14, 0.0  ;;  %v5269_v18 = vld [vmem:[%s5209_s12 + $0x50] sm:$0xff]  ;;  %v5272_v19 = vld [vmem:[%s5209_s12 + $0x60] sm:$0xff] }
  0x49   : > { %v533_v15 = vsel %vm505_vm0, %v5254_v12, 0.0  ;;  %v5275_v20 = vld [vmem:[%s5209_s12 + $0x38] sm:$0xff]  ;;  %v536_v21 = vsel %vm505_vm0, %v5269_v18, 0.0  ;;  %v542_v22 = vsel %vm505_vm0, %v5272_v19, 0.0  ;;  %v5287_v25 = vld [vmem:[%s5209_s12 + $0x70] sm:$0xff]  ;;  %v5290_v26 = vld [vmem:[%s5209_s12 + $0x68] sm:$0xff] }
  0x4a   : > { %v527_v23 = vsel %vm505_vm0, %v5275_v20, 0.0  ;;  %v5284_v24 = vld [vmem:[%s5209_s12 + $0x58] sm:$0xff]  ;;  %v548_v28 = vsel %vm505_vm0, %v5287_v25, 0.0  ;;  %v545_v29 = vsel %vm505_vm0, %v5290_v26, 0.0  ;;  %v5299_v30 = vld [vmem:[%s5209_s12 + $0x88] sm:$0xff]  ;;  %v5305_v32 = vld [vmem:[%s5209_s12 + $0x80] sm:$0xff] }
  0x4b   : > { %v539_v27 = vsel %vm505_vm0, %v5284_v24, 0.0  ;;  %v5302_v31 = vld [vmem:[%s5209_s12 + $0x78] sm:$0xff]  ;;  %v557_v33 = vsel %vm505_vm0, %v5299_v30, 0.0  ;;  %v554_v35 = vsel %vm505_vm0, %v5305_v32, 0.0  ;;  %v5314_v36 = vld [vmem:[%s5209_s12 + $0xa0] sm:$0xff]  ;;  %v5317_v37 = vld [vmem:[%s5209_s12 + $0xa8] sm:$0xff] }
  0x4c   : > { %v551_v34 = vsel %vm505_vm0, %v5302_v31, 0.0  ;;  %v5320_v38 = vld [vmem:[%s5209_s12 + $0x90] sm:$0xff]  ;;  %v566_v39 = vsel %vm505_vm0, %v5314_v36, 0.0  ;;  %v569_v40 = vsel %vm505_vm0, %v5317_v37, 0.0  ;;  %v5332_v43 = vld [vmem:[%s5209_s12 + $0xc0] sm:$0xff]  ;;  %v5335_v44 = vld [vmem:[%s5209_s12 + $0x98] sm:$0xff] }
  0x4d   : > { %v560_v41 = vsel %vm505_vm0, %v5320_v38, 0.0  ;;  %v5329_v42 = vld [vmem:[%s5209_s12 + $0xb0] sm:$0xff]  ;;  %v578_v46 = vsel %vm505_vm0, %v5332_v43, 0.0  ;;  %v563_v47 = vsel %vm505_vm0, %v5335_v44, 0.0  ;;  %v5344_v48 = vld [vmem:[%s5209_s12 + $0xb8] sm:$0xff]  ;;  %v5350_v50 = vld [vmem:[%s5209_s12 + $0xc8] sm:$0xff] }
  0x4e   : > { %v572_v45 = vsel %vm505_vm0, %v5329_v42, 0.0  ;;  %v5347_v49 = vld [vmem:[%s5209_s12 + $0xd0] sm:$0xff]  ;;  %v575_v51 = vsel %vm505_vm0, %v5344_v48, 0.0  ;;  %v581_v53 = vsel %vm505_vm0, %v5350_v50, 0.0  ;;  %v5359_v54 = vld [vmem:[%s5209_s12 + $0xd8] sm:$0xff]  ;;  %v5362_v55 = vld [vmem:[%s5209_s12 + $0xe8] sm:$0xff] }
  0x4f   : > { %522 = vadd.xlane.f32.xlu1 %v521_v9  ;;  %525 = vadd.xlane.f32.xlu2 %v524_v10  ;;  %v584_v52 = vsel %vm505_vm0, %v5347_v49, 0.0  ;;  %v5365_v56 = vld [vmem:[%s5209_s12 + $0xe0] sm:$0xff]  ;;  %v587_v57 = vsel %vm505_vm0, %v5359_v54, 0.0  ;;  %v593_v58 = vsel %vm505_vm0, %v5362_v55, 0.0  ;;  %v5374_v60 = vld [vmem:[%s5209_s12 + $0xf8] sm:$0xff]  ;;  %v5377_v61 = vld [vmem:[%s5209_s12 + $0xf0] sm:$0xff] }
  0x50   : > { %510 = vadd.xlane.f32.xlu0 %v509_v11  ;;  %v590_v59 = vsel %vm505_vm0, %v5365_v56, 0.0  ;;  %v599_v62 = vsel %vm505_vm0, %v5374_v60, 0.0  ;;  %v596_v63 = vsel %vm505_vm0, %v5377_v61, 0.0  ;;  %v5018_v3 = vmov 64.0   ;;  %s4272_s3 = sshll.u32 %s5205_s13, 3  ;;  %s4536_s23 = sshll.u32 %s5100_s21, 3 }
  0x51   : > { %4636 = vrcp.f32 %v5018_v3  ;;  %vm950_vm4 = vcmask 261312   ;;  %vm1001_vm5 = vcmask 1041409   ;;  %vm1003_vm6 = vcmask 1042434   ;;  %s4142_s27 = scalar_lea.hbm %s7946_s11, %s4536_s23  ;;  %s471_s29 = scalar_lea.vmem [#allocation11], %s4272_s3 }
  0x52   : > { %vm1005_vm7 = vcmask 1043459   ;;  %vm1007_vm8 = vcmask 1044484   ;;  %vm1009_vm9 = vcmask 1045509   ;;  %vm1011_vm10 = vcmask 1046534   ;;  %s4144_s16 = sshll.u32 %s471_s29, 4  ;;  %s4146_s2 = sshll.u32 %s4142_s27, 4  ;;  %s4145_s16 = int_to_ptr.vmem [resolvable:$true] %s4144_s16  ;;  %s4147_s2 = int_to_ptr.hbm [resolvable:$true] %s4146_s2 }
  0x53   : > { %vm8115_vm11 = vcmask 1047559   ;;  %vm8114_vm12 = vcmask 261120   ;;  %vm2156_vm13 = vcmask 31744   ;;  %vm3569_vm14 = vcmask 1043456   ;;  %s4132_s25 = scalar_lea.sflag [#allocation4], %s5205_s13  ;;  %s4950_s14 = sshra.s32 %s4147_s2, 4  ;;  %s4951_s14 = int_to_ptr.hbm [resolvable:$true] %s4950_s14 }
  0x54   : > { %s4952_s15 = scalar_lea.hbm %s4951_s14, 8  ;;  %s4956_s8 = scalar_lea.hbm %s7946_s11, 16 }
  0x55   : > { %p4953_p1 = scmp.ne.s32.totalorder %s4951_s14, %s4952_s15  ;;  %p4957_p11 = scmp.lt.s32.totalorder %s4951_s14, %s7946_s11 }
  0x56   : > { %p4958_p2 = scmp.lt.s32.totalorder %s4956_s8, %s4952_s15 }
  0x57   : > { %534 = vadd.xlane.f32.xlu1 %v533_v15  ;;  %516 = vadd.xlane.f32.xlu2 %v515_v16  ;;  %v4637_v4 = vpop.eup %4636  ;;  %p4954_p4 = pnand %p4953_p1, %p5172_p3 }
  0x58   : > { %531 = vadd.xlane.f32.xlu0 %v530_v17  ;;  %v603_v5 = vmul.f32 64.0, %v4637_v4  ;;  %vm607_vm1 = vweird.f32 %v4637_v4  ;;  %v937_v17 = vlaneseq  ;;  %p4959_p9 = por %p4958_p2, %p4957_p11 }
  0x59   : > { %p4955_p8 = pneg %p4954_p4 }
  0x5a   : > { %v604_v9 = vsub.f32 1.0, %v603_v5 }
  0x5b   : > { %p4960_p10 = pnand %p4959_p9, %p4955_p8 }
  0x5c   : > { %v605_v10 = vmul.f32 %v4637_v4, %v604_v9 }
  0x5e   : > { %v606_v11 = vadd.f32 %v4637_v4, %v605_v10 }
  0x5f   : > { %537 = vadd.xlane.f32.xlu1 %v536_v21  ;;  %543 = vadd.xlane.f32.xlu2 %v542_v22 }
  0x60   : > { %528 = vadd.xlane.f32.xlu0 %v527_v23  ;;  %v5384_v22 = vsel %vm607_vm1, %v4637_v4, %v606_v11  ;;  %v5386_v23 = vand.u32 127, %v937_v17 }
  0x61   : > { %8133 = vst [vmem:[#allocation17_spill] sm:$0xff] %v5384_v22 }
  0x67   : > { %540 = vadd.xlane.f32.xlu1 %v539_v27  ;;  %549 = vadd.xlane.f32.xlu2 %v548_v28 }
  0x68   : > { %546 = vadd.xlane.f32.xlu0 %v545_v29  ;;  %v5392_v29 = vadd.s32 4294967288, %v5386_v23 }
  0x6f   : > { %558 = vadd.xlane.f32.xlu1 %v557_v33  ;;  %552 = vadd.xlane.f32.xlu2 %v551_v34 }
  0x70   : > { %555 = vadd.xlane.f32.xlu0 %v554_v35  ;;  %v5397_v35 = vadd.s32 4294967280, %v5386_v23 }
  0x77   : > { %567 = vadd.xlane.f32.xlu1 %v566_v39  ;;  %570 = vadd.xlane.f32.xlu2 %v569_v40 }
  0x78   : > { %561 = vadd.xlane.f32.xlu0 %v560_v41 }
  0x7f   : > { %573 = vadd.xlane.f32.xlu1 %v572_v45  ;;  %579 = vadd.xlane.f32.xlu2 %v578_v46 }
  0x80   : > { %564 = vadd.xlane.f32.xlu0 %v563_v47 }
  0x87   : > { %576 = vadd.xlane.f32.xlu1 %v575_v51  ;;  %585 = vadd.xlane.f32.xlu2 %v584_v52 }
  0x88   : > { %582 = vadd.xlane.f32.xlu0 %v581_v53 }
  0x8f   : > { %588 = vadd.xlane.f32.xlu2 %v587_v57  ;;  %594 = vadd.xlane.f32.xlu1 %v593_v58 }
  0x90   : > { %591 = vadd.xlane.f32.xlu0 %v590_v59 }
  0x97   : > { %600 = vadd.xlane.f32.xlu1 %v599_v62 }
  0x98   : > { %597 = vadd.xlane.f32.xlu0 %v596_v63  ;;  %v5413_v63 = vadd.s32 4294967272, %v5386_v23 }
  0xb8   : > { %641 = vxpose.xlu2.b32.start [1/4] (short) (narrow) %v5230_v2, 64 }
  0xba   : > { %v520_v15 = vpop.xlane.xlu1 %519  ;;  %v514_v16 = vpop.xlane.xlu2 %513 }
  0xbb   : > { %v508_v21 = vpop.xlane.xlu0 %507  ;;  %v613_v27 = vmul.f32 %v5384_v22, %v520_v15  ;;  %v611_v39 = vmul.f32 %v5384_v22, %v514_v16 }
  0xbc   : > { %v609_v28 = vmul.f32 %v5384_v22, %v508_v21 }
  0xbd   : > { %v952_v34 = vperm.slane %v613_v27, %v5386_v23  ;;  %v945_v47 = vperm.slane %v611_v39, %v5397_v35 }
  0xbe   : > { %v939_v45 = vperm.slane %v609_v28, %v5386_v23 }
  0xc0   : > { %642 = vxpose.xlu2.b32.cont [2/4] (short) (narrow) %v5245_v8, 64 }
  0xc1   : > { %673 = vxpose.xlu0.b32.start [1/4] (short) (narrow) %v5224_v0, 64 }
  0xc2   : > { %v523_v2 = vpop.xlane.xlu1 %522  ;;  %v526_v33 = vpop.xlane.xlu2 %525 }
  0xc3   : > { %v614_v40 = vmul.f32 %v5384_v22, %v523_v2  ;;  %v511_v41 = vpop.xlane.xlu0 %510  ;;  %v615_v62 = vmul.f32 %v5384_v22, %v526_v33 }
  0xc4   : > { %v610_v8 = vmul.f32 %v5384_v22, %v511_v41 }
  0xc5   : > { %v953_v46 = vperm.slane %v614_v40, %v5392_v29  ;;  %v900_v40 = vld [vmem:[%s7936_s1 + $0x18] sm:$0xff] }
  0xc6   : > { %v941_v0 = vperm.slane %v610_v8, %v5392_v29  ;;  %1030 = vmatpush.msra.mxu0 %v900_v40  ;;  %v1041_v8 = vld [vmem:[#allocation5 + $0x18] sm:$0xff] }
  0xc7   : > { %v954_v51 = vsel %vm942_vm2, %v953_v46, %v952_v34  ;;  %v2986_v46 = vld [vmem:[#allocation7 + $0x18] sm:$0xff]  ;;  %1250 = vmatpush.msra.mxu1 %v1041_v8 }
  0xc8   : > { %v943_v52 = vsel %vm942_vm2, %v941_v0, %v939_v45  ;;  %643 = vxpose.xlu2.b32.cont [3/4] (short) (narrow) %v5227_v1, 64  ;;  %v1040_v0 = vld [vmem:[#allocation5 + $0x10] sm:$0xff] }
  0xc9   : > { %v947_v53 = vsel %vm946_vm3, %v945_v47, %v943_v52  ;;  %674 = vxpose.xlu0.b32.cont [2/4] (short) (narrow) %v5239_v6, 64  ;;  %v955_v6 = vperm.slane %v615_v62, %v5397_v35  ;;  %v2985_v47 = vld [vmem:[#allocation7 + $0x10] sm:$0xff]  ;;  %v2984_v52 = vld [vmem:[#allocation7 + $0x8] sm:$0xff]  ;;  %1251 = vmatpush.msra.mxu1 %v1040_v0  ;;  %v1038_v62 = vld [vmem:[#allocation5] sm:$0xff] }
  0xca   : > { %v535_v57 = vpop.xlane.xlu1 %534  ;;  %v517_v58 = vpop.xlane.xlu2 %516 }
  0xcb   : > { %v532_v59 = vpop.xlane.xlu0 %531  ;;  %v612_v3 = vmul.f32 %v5384_v22, %v517_v58 }
  0xcc   : > { %v617_v58 = vmul.f32 %v5384_v22, %v532_v59 }
  0xcd   : > { %v949_v9 = vperm.slane %v612_v3, %v5413_v63  ;;  %v2983_v3 = vld [vmem:[#allocation7] sm:$0xff] }
  0xd0   : > { %644 = vxpose.xlu2.b32.end [4/4] (short) (narrow) %v5257_v13, 64  ;;  %v956_v13 = vsel %vm946_vm3, %v955_v6, %v954_v51  ;;  %v1039_v51 = vld [vmem:[#allocation5 + $0x8] sm:$0xff] }
  0xd1   : > { %675 = vxpose.xlu0.b32.cont [3/4] (short) (narrow) %v5242_v7, 64  ;;  %705 = vxpose.xlu1.b32.start [1/4] (short) (narrow) %v5260_v14, 64  ;;  %v951_v7 = vsel %vm950_vm4, %v949_v9, %v947_v53  ;;  %v618_v53 = vmul.f32 %v5384_v22, %v535_v57  ;;  %v959_v9 = vperm.slane %v617_v58, %v5386_v23 }
  0xd2   : > { %v538_v1 = vpop.xlane.xlu1 %537  ;;  %v5419_v4 = vpop.xlane.xlu2 %543  ;;  %1252 = vmatpush.msra.mxu1 %v1039_v51 }
  0xd3   : > { %v529_v5 = vpop.xlane.xlu0 %528  ;;  %v619_v6 = vmul.f32 %v5384_v22, %v538_v1  ;;  %v621_v1 = vmul.f32 %v5384_v22, %v5419_v4 }
  0xd4   : > { %v616_v10 = vmul.f32 %v5384_v22, %v529_v5  ;;  %v960_v5 = vperm.slane %v618_v53, %v5392_v29  ;;  %1253 = vmatpush.msra.mxu1 %v1038_v62 }
  0xd6   : > { %v957_v11 = vperm.slane %v616_v10, %v5413_v63 }
  0xd8   : > { %v958_v14 = vsel %vm950_vm4, %v957_v11, %v956_v13 }
  0xd9   : > { %v5429_v15 = vsel %vm1001_vm5, %v958_v14, %v951_v7  ;;  %676 = vxpose.xlu0.b32.end [4/4] (short) (narrow) %v5275_v20, 64  ;;  %706 = vxpose.xlu1.b32.cont [2/4] (short) (narrow) %v5254_v12, 64  ;;  %v899_v12 = vld [vmem:[%s7936_s1 + $0x10] sm:$0xff]  ;;  %v897_v20 = vld [vmem:[%s7936_s1] sm:$0xff]  ;;  %v962_v7 = vperm.slane %v619_v6, %v5397_v35 }
  0xda   : > { %v541_v16 = vpop.xlane.xlu1 %540  ;;  %v550_v17 = vpop.xlane.xlu2 %549  ;;  %1031 = vmatpush.msra.mxu0 %v899_v12 }
  0xdb   : > { %v547_v21 = vpop.xlane.xlu0 %546  ;;  %v620_v14 = vmul.f32 %v5384_v22, %v541_v16  ;;  %v623_v8 = vmul.f32 %v5384_v22, %v550_v17 }
  0xdc   : > { %v622_v40 = vmul.f32 %v5384_v22, %v547_v21 }
  0xdd   : > { %v964_v4 = vperm.slane %v620_v14, %v5413_v63  ;;  %v969_v62 = vperm.slane %v623_v8, %v5397_v35 }
  0xde   : > { %v967_v16 = vperm.slane %v622_v40, %v5392_v29 }
  0xe1   : > { %707 = vxpose.xlu1.b32.cont [3/4] (short) (narrow) %v5269_v18, 64  ;;  %v898_v18 = vld [vmem:[%s7936_s1 + $0x8] sm:$0xff] }
  0xe2   : > { %v559_v27 = vpop.xlane.xlu1 %558  ;;  %v553_v28 = vpop.xlane.xlu2 %552  ;;  %1032 = vmatpush.msra.mxu0 %v898_v18 }
  0xe3   : > { %v556_v2 = vpop.xlane.xlu0 %555  ;;  %v626_v57 = vmul.f32 %v5384_v22, %v559_v27  ;;  %v624_v21 = vmul.f32 %v5384_v22, %v553_v28 }
  0xe4   : > { %1033 = vmatpush.msra.mxu0 %v897_v20  ;;  %v625_v59 = vmul.f32 %v5384_v22, %v556_v2  ;;  %v966_v20 = vperm.slane %v621_v1, %v5386_v23 }
  0xe5   : > { %v974_v12 = vperm.slane %v626_v57, %v5392_v29 }
  0xe6   : > { %3003 = vmatpush.msrb.mxu0 %v2986_v46  ;;  %v973_v18 = vperm.slane %v625_v59, %v5386_v23 }
  0xe8   : > { %3004 = vmatpush.msrb.mxu0 %v2985_v47  ;;  %v975_v0 = vsel %vm942_vm2, %v974_v12, %v973_v18 }
  0xe9   : > { %708 = vxpose.xlu1.b32.end [4/4] (short) (narrow) %v5284_v24, 64 }
  0xea   : > { %v568_v33 = vpop.xlane.xlu1 %567  ;;  %v571_v34 = vpop.xlane.xlu2 %570  ;;  %3005 = vmatpush.msrb.mxu0 %v2984_v52 }
  0xeb   : > { %v562_v39 = vpop.xlane.xlu0 %561  ;;  %v629_v47 = vmul.f32 %v5384_v22, %v568_v33  ;;  %v630_v51 = vmul.f32 %v5384_v22, %v571_v34 }
  0xec   : > { %3006 = vmatpush.msrb.mxu0 %v2983_v3  ;;  %v627_v27 = vmul.f32 %v5384_v22, %v562_v39 }
  0xee   : > { %v976_v17 = vperm.slane %v627_v27, %v5397_v35 }
  0xf2   : > { %v574_v24 = vpop.xlane.xlu1 %573  ;;  %v580_v41 = vpop.xlane.xlu2 %579 }
  0xf3   : > { %v565_v45 = vpop.xlane.xlu0 %564  ;;  %v633_v53 = vmul.f32 %v5384_v22, %v580_v41 }
  0xf4   : > { %v628_v58 = vmul.f32 %v5384_v22, %v565_v45  ;;  %v971_v45 = vperm.slane %v624_v21, %v5413_v63 }
  0xf5   : > { %v987_v59 = vperm.slane %v633_v53, %v5386_v23  ;;  %v1623_v53 = vld [vmem:[%s7944_s9] sm:$0xff] }
  0xf8   : > { %737 = vxpose.xlu2.b32.start [1/4] (short) (narrow) %v5272_v19, 64  ;;  %v961_v19 = vsel %vm942_vm2, %v960_v5, %v959_v9  ;;  %v968_v5 = vsel %vm942_vm2, %v967_v16, %v966_v20  ;;  %v980_v9 = vperm.slane %v629_v47, %v5386_v23 }
  0xf9   : > { %v963_v2 = vsel %vm946_vm3, %v962_v7, %v961_v19  ;;  %v970_v40 = vsel %vm946_vm3, %v969_v62, %v968_v5 }
  0xfa   : > { %v577_v10 = vpop.xlane.xlu1 %576  ;;  %v586_v11 = vpop.xlane.xlu2 %585  ;;  %v965_v6 = vsel %vm950_vm4, %v964_v4, %v963_v2  ;;  %v972_v20 = vsel %vm950_vm4, %v971_v45, %v970_v40 }
  0xfb   : > { %v583_v13 = vpop.xlane.xlu0 %582  ;;  %v632_v28 = vmul.f32 %v5384_v22, %v577_v10  ;;  %v635_v3 = vmul.f32 %v5384_v22, %v586_v11  ;;  %v981_v10 = vperm.slane %v630_v51, %v5392_v29  ;;  %v977_v11 = vsel %vm946_vm3, %v976_v17, %v975_v0 }
  0xfc   : > { %v634_v46 = vmul.f32 %v5384_v22, %v583_v13  ;;  %v978_v13 = vperm.slane %v628_v58, %v5413_v63  ;;  %v1004_v2 = vsel %vm1003_vm6, %v965_v6, %v5429_v15 }
  0xfd   : > { %v985_v7 = vperm.slane %v632_v28, %v5413_v63  ;;  %v990_v1 = vperm.slane %v635_v3, %v5397_v35 }
  0xfe   : > { %v979_v8 = vsel %vm950_vm4, %v978_v13, %v977_v11 }
 0x100   : > { %738 = vxpose.xlu2.b32.cont [2/4] (short) (narrow) %v5290_v26, 64 }
 0x101   : > { %769 = vxpose.xlu0.b32.start [1/4] (short) (narrow) %v5305_v32, 64  ;;  %v631_v32 = vmul.f32 %v5384_v22, %v574_v24  ;;  %v988_v24 = vperm.slane %v634_v46, %v5392_v29 }
 0x102   : > { %v595_v39 = vpop.xlane.xlu1 %594  ;;  %v589_v26 = vpop.xlane.xlu2 %588 }
 0x103   : > { %v592_v52 = vpop.xlane.xlu0 %591  ;;  %v638_v34 = vmul.f32 %v5384_v22, %v595_v39  ;;  %v636_v41 = vmul.f32 %v5384_v22, %v589_v26  ;;  %v983_v57 = vperm.slane %v631_v32, %v5397_v35  ;;  %v989_v12 = vsel %vm942_vm2, %v988_v24, %v987_v59  ;;  %v1624_v32 = vld [vmem:[%s7944_s9 + $0x8] sm:$0xff]  ;;  %v5594_v24 = vld [vmem:[%s7941_s6] ss:$0 sm:$0xff] }
 0x104   : > { %v637_v33 = vmul.f32 %v5384_v22, %v592_v52  ;;  %v991_v46 = vsel %vm946_vm3, %v990_v1, %v989_v12  ;;  %v1006_v39 = vsel %vm1005_vm7, %v972_v20, %v1004_v2 }
 0x105   : > { %v995_v14 = vperm.slane %v638_v34, %v5392_v29  ;;  %v992_v18 = vperm.slane %v636_v41, %v5413_v63  ;;  %v1008_v51 = vsel %vm1007_vm8, %v979_v8, %v1006_v39  ;;  %v4632_v34 = vld [vmem:[%s7940_s5] ss:$0 sm:$0xff] }
 0x106   : > { %v994_v19 = vperm.slane %v637_v33, %v5386_v23  ;;  %v982_v23 = vsel %vm942_vm2, %v981_v10, %v980_v9 }
 0x107   : > { %v993_v47 = vsel %vm950_vm4, %v992_v18, %v991_v46 }
 0x108   : > { %739 = vxpose.xlu2.b32.cont [3/4] (short) (narrow) %v5287_v25, 64  ;;  %v996_v21 = vsel %vm942_vm2, %v995_v14, %v994_v19 }
 0x109   : > { %770 = vxpose.xlu0.b32.cont [2/4] (short) (narrow) %v5299_v30, 64  ;;  %v984_v30 = vsel %vm946_vm3, %v983_v57, %v982_v23 }
 0x10a   : > { %v601_v27 = vpop.xlane.xlu1 %600  ;;  %v986_v16 = vsel %vm950_vm4, %v985_v7, %v984_v30 }
 0x10b   : > { %v598_v29 = vpop.xlane.xlu0 %597  ;;  %v640_v25 = vmul.f32 %v5384_v22, %v601_v27  ;;  %v1010_v26 = vsel %vm1009_vm9, %v986_v16, %v1008_v51 }
 0x10c   : > { %v639_v4 = vmul.f32 %v5384_v22, %v598_v29 }
 0x10d   : > { %v999_v15 = vperm.slane %v640_v25, %v5413_v63  ;;  %v1012_v63 = vsel %vm1011_vm10, %v993_v47, %v1010_v26 }
 0x10e   : > { %v997_v0 = vperm.slane %v639_v4, %v5397_v35 }
 0x110   : > { %v998_v17 = vsel %vm946_vm3, %v997_v0, %v996_v21  ;;  %740 = vxpose.xlu2.b32.end [4/4] (short) (narrow) %v5302_v31, 64 }
 0x111   : > { %v1000_v52 = vsel %vm950_vm4, %v999_v15, %v998_v17  ;;  %771 = vxpose.xlu0.b32.cont [3/4] (short) (narrow) %v5320_v38, 64  ;;  %801 = vxpose.xlu1.b32.start [1/4] (short) (narrow) %v5314_v36, 64 }
 0x112   : > { %v1014_v35 = vsel %vm8115_vm11, %v1000_v52, %v1012_v63 }
 0x113   : > { %4273 = vmatmul.msk.f32.vlgmr.msra.gmra.mxu0 %vm8114_vm12, %v1014_v35 }
 0x119   : > { %772 = vxpose.xlu0.b32.end [4/4] (short) (narrow) %v5335_v44, 64  ;;  %802 = vxpose.xlu1.b32.cont [2/4] (short) (narrow) %v5317_v37, 64 }
 0x121   : > { %803 = vxpose.xlu1.b32.cont [3/4] (short) (narrow) %v5329_v42, 64 }
 0x129   : > { %804 = vxpose.xlu1.b32.end [4/4] (short) (narrow) %v5344_v48, 64 }
 0x138   : > { %833 = vxpose.xlu2.b32.start [1/4] (short) (narrow) %v5332_v43, 64 }
 0x140   : > { %834 = vxpose.xlu2.b32.cont [2/4] (short) (narrow) %v5350_v50, 64 }
 0x141   : > { %865 = vxpose.xlu0.b32.start [1/4] (short) (narrow) %v5365_v56, 64 }
 0x148   : > { %835 = vxpose.xlu2.b32.cont [3/4] (short) (narrow) %v5347_v49, 64 }
 0x149   : > { %866 = vxpose.xlu0.b32.cont [2/4] (short) (narrow) %v5362_v55, 64 }
 0x150   : > { %836 = vxpose.xlu2.b32.end [4/4] (short) (narrow) %v5359_v54, 64 }
 0x151   : > { %v657_v31 = vpop.trf.xlu2  ;;  %867 = vxpose.xlu0.b32.cont [3/4] (short) (narrow) %v5377_v61, 64  ;;  %v1625_v61 = vld [vmem:[%s7944_s9 + $0x10] sm:$0xff] }
 0x152   : > { %4274 = vmatmul.msk.f32.vlgmr.msra.gmra.mxu1 %vm8114_vm12, %v657_v31  ;;  %4403 = vmatmul.msk.f32.vlgmr.msrb.gmra.mxu0 %vm8114_vm12, %v657_v31 }
 0x159   : > { %v658_v36 = vpop.trf.xlu2  ;;  %868 = vxpose.xlu0.b32.end [4/4] (short) (narrow) %v5374_v60, 64  ;;  %v1626_v60 = vld [vmem:[%s7944_s9 + $0x18] sm:$0xff] }
 0x15a   : > { %4275 = vmatmul.msk.f32.gmra.mxu1 %vm8114_vm12, %v658_v36  ;;  %4404 = vmatmul.msk.f32.gmra.mxu0 %vm8114_vm12, %v658_v36 }
 0x15b   : > { %1919 = vmatpush.msra.mxu2 %v1626_v60  ;;  %2148 = vmatpush.msra.mxu3 %v1626_v60 }
 0x15d   : > { %1920 = vmatpush.msra.mxu2 %v1625_v61  ;;  %2149 = vmatpush.msra.mxu3 %v1625_v61 }
 0x15f   : > { %1921 = vmatpush.msra.mxu2 %v1624_v32  ;;  %2150 = vmatpush.msra.mxu3 %v1624_v32 }
 0x161   : > { %v659_v37 = vpop.trf.xlu2  ;;  %1922 = vmatpush.msra.mxu2 %v1623_v53  ;;  %2151 = vmatpush.msra.mxu3 %v1623_v53 }
 0x162   : > { %4276 = vmatmul.msk.f32.gmra.mxu1 %vm8114_vm12, %v659_v37  ;;  %4405 = vmatmul.msk.f32.gmra.mxu0 %vm8114_vm12, %v659_v37 }
 0x165   : > { %v689_v48 = vpop.trf.xlu0 }
 0x169   : > { %v660_v38 = vpop.trf.xlu2 }
 0x16a   : > { %4277 = vmatmul.msk.f32.gmra.mxu1 %vm8114_vm12, %v660_v38  ;;  %4406 = vmatmul.msk.f32.gmra.mxu0 %vm8114_vm12, %v660_v38 }
 0x16d   : > { %v690_v50 = vpop.trf.xlu0 }
 0x171   : > { %v661_v42 = vpop.trf.xlu2 }
 0x172   : > { %4278 = vmatmul.msk.f32.gmra.mxu1 %vm8114_vm12, %v661_v42  ;;  %4407 = vmatmul.msk.f32.gmra.mxu0 %vm8114_vm12, %v661_v42 }
 0x175   : > { %v691_v54 = vpop.trf.xlu0  ;;  %v721_v62 = vpop.trf.xlu1 }
 0x179   : > { %v662_v43 = vpop.trf.xlu2 }
 0x17a   : > { %4279 = vmatmul.msk.f32.gmra.mxu1 %vm8114_vm12, %v662_v43  ;;  %4408 = vmatmul.msk.f32.gmra.mxu0 %vm8114_vm12, %v662_v43 }
 0x17d   : > { %v692_v55 = vpop.trf.xlu0  ;;  %v722_v6 = vpop.trf.xlu1 }
 0x181   : > { %v663_v44 = vpop.trf.xlu2 }
 0x182   : > { %4280 = vmatmul.msk.f32.gmra.mxu1 %vm8114_vm12, %v663_v44  ;;  %4409 = vmatmul.msk.f32.gmra.mxu0 %vm8114_vm12, %v663_v44 }
 0x185   : > { %v693_v56 = vpop.trf.xlu0  ;;  %v723_v57 = vpop.trf.xlu1 }
 0x189   : > { %v664_v49 = vpop.trf.xlu2 }
 0x18a   : > { %4281 = vmatmul.msk.f32.gmra.mxu1 %vm8114_vm12, %v664_v49  ;;  %4410 = vmatmul.msk.f32.gmra.mxu0 %vm8114_vm12, %v664_v49 }
 0x18d   : > { %v694_v58 = vpop.trf.xlu0  ;;  %v724_v12 = vpop.trf.xlu1 }
 0x190   : > { %v1035_v3 = vpop.f32.mrf.mxu0 }
 0x191   : > { %v5589_v5 = vadd.f32 %v4632_v34, %v1035_v3 }
 0x192   : > { %4282 = vmatmul.msk.f32.gmra.mxu1 %vm8114_vm12, %v689_v48  ;;  %4411 = vmatmul.msk.f32.gmra.mxu0 %vm8114_vm12, %v689_v48  ;;  %v753_v48 = vpop.trf.xlu2 }
 0x193   : > { %v5600_v10 = vperm.slane %v5589_v5, 0 }
 0x195   : > { %v695_v28 = vpop.trf.xlu0  ;;  %v725_v4 = vpop.trf.xlu1 }
 0x19a   : > { %4283 = vmatmul.msk.f32.gmra.mxu1 %vm8114_vm12, %v690_v50  ;;  %4412 = vmatmul.msk.f32.gmra.mxu0 %vm8114_vm12, %v690_v50 }
 0x19d   : > { %v696_v33 = vpop.trf.xlu0  ;;  %v726_v17 = vpop.trf.xlu1 }
 0x1a2   : > { %4284 = vmatmul.msk.f32.gmra.mxu1 %vm8114_vm12, %v691_v54  ;;  %4413 = vmatmul.msk.f32.gmra.mxu0 %vm8114_vm12, %v691_v54 }
 0x1a5   : > { %v727_v38 = vpop.trf.xlu1 }
 0x1aa   : > { %4285 = vmatmul.msk.f32.gmra.mxu1 %vm8114_vm12, %v692_v55  ;;  %4414 = vmatmul.msk.f32.gmra.mxu0 %vm8114_vm12, %v692_v55 }
 0x1ad   : > { %v728_v55 = vpop.trf.xlu1 }
 0x1b2   : > { %4286 = vmatmul.msk.f32.gmra.mxu1 %vm8114_vm12, %v693_v56  ;;  %4415 = vmatmul.msk.f32.gmra.mxu0 %vm8114_vm12, %v693_v56 }
 0x1ba   : > { %4287 = vmatmul.msk.f32.gmra.mxu1 %vm8114_vm12, %v694_v58  ;;  %4416 = vmatmul.msk.f32.gmra.mxu0 %vm8114_vm12, %v694_v58  ;;  %v754_v58 = vpop.trf.xlu2 }
 0x1c2   : > { %4288 = vmatmul.msk.f32.gmra.mxu1 %vm8114_vm12, %v695_v28  ;;  %4417 = vmatmul.msk.f32.gmra.mxu0 %vm8114_vm12, %v695_v28 }
 0x1ca   : > { %4289 = vmatmul.msk.f32.gmra.mxu1 %vm8114_vm12, %v696_v33  ;;  %4418 = vmatmul.msk.f32.gmra.mxu0 %vm8114_vm12, %v696_v33 }
 0x1cf   : > { %v1255_v41 = vpop.f32.mrf.mxu1  ;;  %v5596_v45 = vpop.f32.mrf.mxu0 }
 0x1d0   : > { %v1256_v9 = vadd.f32 %v5594_v24, %v1255_v41 }
 0x1d2   : > { %v1651_v11 = vmul.f32 %v5600_v10, %v1256_v9  ;;  %4290 = vmatmul.msk.f32.gmra.mxu1 %vm8114_vm12, %v721_v62  ;;  %4419 = vmatmul.msk.f32.gmra.mxu0 %vm8114_vm12, %v721_v62  ;;  %v1447_v1 = vsel %vm8114_vm12, %v1256_v9, 0.0  ;;  %v1628_v62 = vrot.slane %v5589_v5, 1  ;;  %v755_v9 = vpop.trf.xlu2 }
 0x1d4   : > { %4338 = vmatmul.msk.f32.vlgmr.msra.gmra.mxu2 %vm8114_vm12, %v1651_v11 }
 0x1d7   : > { %v1258_v59 = vpop.f32.mrf.mxu1  ;;  %v5606_v13 = vpop.f32.mrf.mxu0 }
 0x1d8   : > { %v1259_v7 = vadd.f32 %v5594_v24, %v1258_v59 }
 0x1da   : > { %v1448_v19 = vsel %vm8114_vm12, %v1259_v7, 0.0  ;;  %v1652_v14 = vmul.f32 %v5600_v10, %v1259_v7  ;;  %4291 = vmatmul.msk.f32.gmra.mxu1 %vm8114_vm12, %v722_v6  ;;  %4420 = vmatmul.msk.f32.gmra.mxu0 %vm8114_vm12, %v722_v6  ;;  %v5669_v6 = vperm.slane %v1628_v62, 0 }
 0x1db   : > { %v1449_v40 = vadd.f32 %v1448_v19, %v1447_v1 }
 0x1dc   : > { %4339 = vmatmul.msk.f32.gmra.mxu2 %vm8114_vm12, %v1652_v14  ;;  %v756_v14 = vpop.trf.xlu2 }
 0x1df   : > { %v1261_v18 = vpop.f32.mrf.mxu1  ;;  %v5615_v27 = vpop.f32.mrf.mxu0 }
 0x1e0   : > { %v1262_v2 = vadd.f32 %v5594_v24, %v1261_v18 }
 0x1e2   : > { %v1450_v20 = vsel %vm8114_vm12, %v1262_v2, 0.0  ;;  %v1653_v23 = vmul.f32 %v5600_v10, %v1262_v2  ;;  %4292 = vmatmul.msk.f32.gmra.mxu1 %vm8114_vm12, %v723_v57  ;;  %4421 = vmatmul.msk.f32.gmra.mxu0 %vm8114_vm12, %v723_v57 }
 0x1e3   : > { %v1451_v29 = vadd.f32 %v1450_v20, %v1449_v40 }
 0x1e4   : > { %4340 = vmatmul.msk.f32.gmra.mxu2 %vm8114_vm12, %v1653_v23 }
 0x1e7   : > { %v1264_v25 = vpop.f32.mrf.mxu1  ;;  %v5623_v30 = vpop.f32.mrf.mxu0 }
 0x1e8   : > { %v1265_v8 = vadd.f32 %v5594_v24, %v1264_v25 }
 0x1ea   : > { %v1452_v16 = vsel %vm8114_vm12, %v1265_v8, 0.0  ;;  %v1654_v21 = vmul.f32 %v5600_v10, %v1265_v8  ;;  %4293 = vmatmul.msk.f32.gmra.mxu1 %vm8114_vm12, %v724_v12  ;;  %4422 = vmatmul.msk.f32.gmra.mxu0 %vm8114_vm12, %v724_v12 }
 0x1eb   : > { %v1453_v15 = vadd.f32 %v1452_v16, %v1451_v29 }
 0x1ec   : > { %4341 = vmatmul.msk.f32.gmra.mxu2 %vm8114_vm12, %v1654_v21 }
 0x1ef   : > { %v1267_v46 = vpop.f32.mrf.mxu1  ;;  %v5631_v39 = vpop.f32.mrf.mxu0 }
 0x1f0   : > { %v1268_v0 = vadd.f32 %v5594_v24, %v1267_v46 }
 0x1f2   : > { %v1454_v47 = vsel %vm8114_vm12, %v1268_v0, 0.0  ;;  %v1655_v51 = vmul.f32 %v5600_v10, %v1268_v0  ;;  %4294 = vmatmul.msk.f32.gmra.mxu1 %vm8114_vm12, %v725_v4  ;;  %4423 = vmatmul.msk.f32.gmra.mxu0 %vm8114_vm12, %v725_v4  ;;  %v757_v4 = vpop.trf.xlu2 }
 0x1f3   : > { %v1455_v26 = vadd.f32 %v1454_v47, %v1453_v15 }
 0x1f4   : > { %4342 = vmatmul.msk.f32.gmra.mxu2 %vm8114_vm12, %v1655_v51 }
 0x1f7   : > { %v1270_v52 = vpop.f32.mrf.mxu1  ;;  %v5639_v63 = vpop.f32.mrf.mxu0 }
 0x1f8   : > { %v1271_v35 = vadd.f32 %v5594_v24, %v1270_v52 }
 0x1fa   : > { %v1456_v31 = vsel %vm8114_vm12, %v1271_v35, 0.0  ;;  %v1656_v36 = vmul.f32 %v5600_v10, %v1271_v35  ;;  %4295 = vmatmul.msk.f32.gmra.mxu1 %vm8114_vm12, %v726_v17  ;;  %4424 = vmatmul.msk.f32.gmra.mxu0 %vm8114_vm12, %v726_v17 }
 0x1fb   : > { %v1457_v37 = vadd.f32 %v1456_v31, %v1455_v26  ;;  %v758_v26 = vpop.trf.xlu2 }
 0x1fc   : > { %4343 = vmatmul.msk.f32.gmra.mxu2 %vm8114_vm12, %v1656_v36 }
 0x1ff   : > { %v1273_v42 = vpop.f32.mrf.mxu1  ;;  %v5647_v43 = vpop.f32.mrf.mxu0 }
 0x200   : > { %v1274_v44 = vadd.f32 %v5594_v24, %v1273_v42 }
 0x202   : > { %v1458_v49 = vsel %vm8114_vm12, %v1274_v44, 0.0  ;;  %v1657_v50 = vmul.f32 %v5600_v10, %v1274_v44  ;;  %4296 = vmatmul.msk.f32.gmra.mxu1 %vm8114_vm12, %v727_v38  ;;  %4425 = vmatmul.msk.f32.gmra.mxu0 %vm8114_vm12, %v727_v38 }
 0x203   : > { %v1459_v54 = vadd.f32 %v1458_v49, %v1457_v37  ;;  %v759_v44 = vpop.trf.xlu2 }
 0x204   : > { %4344 = vmatmul.msk.f32.gmra.mxu2 %vm8114_vm12, %v1657_v50 }
 0x207   : > { %v1276_v56 = vpop.f32.mrf.mxu1  ;;  %v5655_v60 = vpop.f32.mrf.mxu0 }
 0x208   : > { %v1277_v61 = vadd.f32 %v5594_v24, %v1276_v56 }
 0x20a   : > { %v1460_v32 = vsel %vm8114_vm12, %v1277_v61, 0.0  ;;  %v1658_v53 = vmul.f32 %v5600_v10, %v1277_v61  ;;  %4297 = vmatmul.msk.f32.gmra.mxu1 %vm8114_vm12, %v728_v55  ;;  %4426 = vmatmul.msk.f32.gmra.mxu0 %vm8114_vm12, %v728_v55 }
 0x20b   : > { %v5662_v28 = vadd.f32 %v1460_v32, %v1459_v54  ;;  %v785_v54 = vpop.trf.xlu0 }
 0x20c   : > { %4345 = vmatmul.msk.f32.gmra.mxu2 %vm8114_vm12, %v1658_v53 }
 0x20d   : > { %v1462_v55 = vrot.slane %v5662_v28, 4 }
 0x20f   : > { %v1279_v3 = vpop.f32.mrf.mxu1  ;;  %v5666_v33 = vpop.f32.mrf.mxu0  ;;  %v1463_v53 = vadd.f32 %v1462_v55, %v5662_v28  ;;  %v1629_v28 = vrot.slane %v5589_v5, 2 }
 0x210   : > { %v1280_v34 = vadd.f32 %v5594_v24, %v1279_v3 }
 0x212   : > { %v1659_v41 = vmul.f32 %v5669_v6, %v1280_v34  ;;  %4298 = vmatmul.msk.f32.gmra.mxu1 %vm8114_vm12, %v753_v48  ;;  %4427 = vmatmul.msk.f32.gmra.mxu0 %vm8114_vm12, %v753_v48  ;;  %v1468_v59 = vsel %vm8114_vm12, %v1280_v34, 0.0 }
 0x214   : > { %4346 = vmatmul.msk.f32.gmra.mxu2 %vm8114_vm12, %v1659_v41  ;;  %v1464_v41 = vrot.slane %v1463_v53, 2 }
 0x217   : > { %v1282_v10 = vpop.f32.mrf.mxu1  ;;  %v5675_v11 = vpop.f32.mrf.mxu0 }
 0x218   : > { %v1283_v57 = vadd.f32 %v5594_v24, %v1282_v10 }
 0x21a   : > { %v1469_v7 = vsel %vm8114_vm12, %v1283_v57, 0.0  ;;  %v1660_v1 = vmul.f32 %v5669_v6, %v1283_v57  ;;  %4299 = vmatmul.msk.f32.gmra.mxu1 %vm8114_vm12, %v754_v58  ;;  %4428 = vmatmul.msk.f32.gmra.mxu0 %vm8114_vm12, %v754_v58  ;;  %v760_v58 = vpop.trf.xlu2  ;;  %v786_v57 = vpop.trf.xlu0 }
 0x21b   : > { %v1470_v19 = vadd.f32 %v1469_v7, %v1468_v59  ;;  %v1465_v7 = vadd.f32 %v1464_v41, %v1463_v53 }
 0x21c   : > { %4347 = vmatmul.msk.f32.gmra.mxu2 %vm8114_vm12, %v1660_v1 }
 0x21f   : > { %v1285_v40 = vpop.f32.mrf.mxu1  ;;  %v5684_v12 = vpop.f32.mrf.mxu0 }
 0x220   : > { %v1286_v18 = vadd.f32 %v5594_v24, %v1285_v40 }
 0x222   : > { %v1471_v2 = vsel %vm8114_vm12, %v1286_v18, 0.0  ;;  %v1661_v20 = vmul.f32 %v5669_v6, %v1286_v18  ;;  %4300 = vmatmul.msk.f32.gmra.mxu1 %vm8114_vm12, %v755_v9  ;;  %4429 = vmatmul.msk.f32.gmra.mxu0 %vm8114_vm12, %v755_v9 }
 0x223   : > { %v1472_v23 = vadd.f32 %v1471_v2, %v1470_v19  ;;  %v5738_v2 = vperm.slane %v1629_v28, 0 }
 0x224   : > { %4348 = vmatmul.msk.f32.gmra.mxu2 %vm8114_vm12, %v1661_v20 }
 0x227   : > { %v1288_v29 = vpop.f32.mrf.mxu1  ;;  %v5692_v25 = vpop.f32.mrf.mxu0 }
 0x228   : > { %v1289_v8 = vadd.f32 %v5594_v24, %v1288_v29 }
 0x22a   : > { %v1473_v16 = vsel %vm8114_vm12, %v1289_v8, 0.0  ;;  %v1662_v21 = vmul.f32 %v5669_v6, %v1289_v8  ;;  %4301 = vmatmul.msk.f32.gmra.mxu1 %vm8114_vm12, %v756_v14  ;;  %4430 = vmatmul.msk.f32.gmra.mxu0 %vm8114_vm12, %v756_v14  ;;  %v787_v8 = vpop.trf.xlu0 }
 0x22b   : > { %v1474_v15 = vadd.f32 %v1473_v16, %v1472_v23 }
 0x22c   : > { %4349 = vmatmul.msk.f32.gmra.mxu2 %vm8114_vm12, %v1662_v21 }
 0x22f   : > { %v1291_v46 = vpop.f32.mrf.mxu1  ;;  %v5700_v0 = vpop.f32.mrf.mxu0 }
 0x230   : > { %v1292_v47 = vadd.f32 %v5594_v24, %v1291_v46 }
 0x232   : > { %v1475_v51 = vsel %vm8114_vm12, %v1292_v47, 0.0  ;;  %v1663_v17 = vmul.f32 %v5669_v6, %v1292_v47  ;;  %4302 = vmatmul.msk.f32.gmra.mxu1 %vm8114_vm12, %v757_v4  ;;  %4431 = vmatmul.msk.f32.gmra.mxu0 %vm8114_vm12, %v757_v4 }
 0x233   : > { %v1476_v52 = vadd.f32 %v1475_v51, %v1474_v15 }
 0x234   : > { %4350 = vmatmul.msk.f32.gmra.mxu2 %vm8114_vm12, %v1663_v17 }
 0x237   : > { %v1294_v35 = vpop.f32.mrf.mxu1  ;;  %v5708_v31 = vpop.f32.mrf.mxu0 }
 0x238   : > { %v1295_v36 = vadd.f32 %v5594_v24, %v1294_v35 }
 0x23a   : > { %v1477_v37 = vsel %vm8114_vm12, %v1295_v36, 0.0  ;;  %v1664_v38 = vmul.f32 %v5669_v6, %v1295_v36  ;;  %4303 = vmatmul.msk.f32.gmra.mxu1 %vm8114_vm12, %v758_v26  ;;  %4432 = vmatmul.msk.f32.gmra.mxu0 %vm8114_vm12, %v758_v26 }
 0x23b   : > { %v1478_v42 = vadd.f32 %v1477_v37, %v1476_v52 }
 0x23c   : > { %4351 = vmatmul.msk.f32.gmra.mxu2 %vm8114_vm12, %v1664_v38 }
 0x23f   : > { %v1297_v48 = vpop.f32.mrf.mxu1  ;;  %v5716_v49 = vpop.f32.mrf.mxu0 }
 0x240   : > { %v1298_v50 = vadd.f32 %v5594_v24, %v1297_v48 }
 0x242   : > { %v1479_v56 = vsel %vm8114_vm12, %v1298_v50, 0.0  ;;  %v1665_v61 = vmul.f32 %v5669_v6, %v1298_v50  ;;  %4304 = vmatmul.msk.f32.gmra.mxu1 %vm8114_vm12, %v759_v44  ;;  %4433 = vmatmul.msk.f32.gmra.mxu0 %vm8114_vm12, %v759_v44 }
 0x243   : > { %v1480_v32 = vadd.f32 %v1479_v56, %v1478_v42  ;;  %v788_v42 = vpop.trf.xlu0 }
 0x244   : > { %4352 = vmatmul.msk.f32.gmra.mxu2 %vm8114_vm12, %v1665_v61 }
 0x247   : > { %v1300_v62 = vpop.f32.mrf.mxu1  ;;  %v5726_v3 = vpop.f32.mrf.mxu0 }
 0x248   : > { %v1301_v34 = vadd.f32 %v5594_v24, %v1300_v62 }
 0x24a   : > { %v1481_v9 = vsel %vm8114_vm12, %v1301_v34, 0.0  ;;  %v1666_v10 = vmul.f32 %v5669_v6, %v1301_v34  ;;  %4305 = vmatmul.msk.f32.gmra.mxu1 %vm8114_vm12, %v760_v58  ;;  %4434 = vmatmul.msk.f32.gmra.mxu0 %vm8114_vm12, %v760_v58  ;;  %v1466_v6 = vrot.slane %v1465_v7, 1 }
 0x24b   : > { %v1482_v59 = vadd.f32 %v1481_v9, %v1480_v32  ;;  %v789_v34 = vpop.trf.xlu0 }
 0x24c   : > { %4353 = vmatmul.msk.f32.gmra.mxu2 %vm8114_vm12, %v1666_v10  ;;  %v1467_v4 = vadd.f32 %v1466_v6, %v1465_v7 }
 0x24d   : > { %v1483_v1 = vrot.slane %v1482_v59, 4 }
 0x24e   : > { %v1615_v17 = vmul.f32 %v1467_v4, %v5384_v22 }
 0x24f   : > { %v1484_v19 = vadd.f32 %v1483_v1, %v1482_v59  ;;  %v1303_v14 = vpop.f32.mrf.mxu1  ;;  %v5735_v40 = vpop.f32.mrf.mxu0 }
 0x250   : > { %v1304_v18 = vadd.f32 %v5594_v24, %v1303_v14 }
 0x251   : > { %v1485_v20 = vrot.slane %v1484_v19, 2 }
 0x252   : > { %v1667_v23 = vmul.f32 %v5738_v2, %v1304_v18  ;;  %4306 = vmatmul.msk.f32.gmra.mxu1 %vm8114_vm12, %v785_v54  ;;  %4435 = vmatmul.msk.f32.gmra.mxu0 %vm8114_vm12, %v785_v54  ;;  %v1489_v52 = vsel %vm8114_vm12, %v1304_v18, 0.0 }
 0x253   : > { %v1486_v29 = vadd.f32 %v1485_v20, %v1484_v19  ;;  %v790_v14 = vpop.trf.xlu0 }
 0x254   : > { %4354 = vmatmul.msk.f32.gmra.mxu2 %vm8114_vm12, %v1667_v23 }
 0x255   : > { %v1487_v16 = vrot.slane %v1486_v29, 1 }
 0x257   : > { %v1488_v21 = vadd.f32 %v1487_v16, %v1486_v29  ;;  %v1306_v15 = vpop.f32.mrf.mxu1  ;;  %v5744_v46 = vpop.f32.mrf.mxu2 }
 0x258   : > { %8134 = vst [vmem:[#allocation18_spill] sm:$0xff] %v5744_v46  ;;  %v1307_v47 = vadd.f32 %v5594_v24, %v1306_v15  ;;  %v5747_v51 = vpop.f32.mrf.mxu0 }
 0x259   : > { %v1616_v26 = vmul.f32 %v1488_v21, %v5384_v22 }
 0x25a   : > { %v1490_v35 = vsel %vm8114_vm12, %v1307_v47, 0.0  ;;  %v1668_v36 = vmul.f32 %v5738_v2, %v1307_v47  ;;  %4307 = vmatmul.msk.f32.gmra.mxu1 %vm8114_vm12, %v786_v57  ;;  %4436 = vmatmul.msk.f32.gmra.mxu0 %vm8114_vm12, %v786_v57 }
 0x25b   : > { %v5757_v37 = vsel %vm1001_vm5, %v1616_v26, %v1615_v17  ;;  %v1491_v38 = vadd.f32 %v1490_v35, %v1489_v52  ;;  %v791_v21 = vpop.trf.xlu0  ;;  %v817_v52 = vpop.trf.xlu1 }
 0x25c   : > { %4355 = vmatmul.msk.f32.gmra.mxu2 %vm8114_vm12, %v1668_v36 }
 0x25f   : > { %v1309_v44 = vpop.f32.mrf.mxu1  ;;  %v5760_v48 = vpop.f32.mrf.mxu2 }
 0x260   : > { %8135 = vst [vmem:[#allocation19_spill] sm:$0xff] %v5760_v48  ;;  %v1310_v50 = vadd.f32 %v5594_v24, %v1309_v44  ;;  %v5763_v54 = vpop.f32.mrf.mxu0 }
 0x262   : > { %v1492_v55 = vsel %vm8114_vm12, %v1310_v50, 0.0  ;;  %v1669_v56 = vmul.f32 %v5738_v2, %v1310_v50  ;;  %4308 = vmatmul.msk.f32.gmra.mxu1 %vm8114_vm12, %v787_v8  ;;  %4437 = vmatmul.msk.f32.gmra.mxu0 %vm8114_vm12, %v787_v8 }
 0x263   : > { %v1493_v61 = vadd.f32 %v1492_v55, %v1491_v38 }
 0x264   : > { %4356 = vmatmul.msk.f32.gmra.mxu2 %vm8114_vm12, %v1669_v56 }
 0x267   : > { %v1312_v32 = vpop.f32.mrf.mxu1  ;;  %v5770_v53 = vpop.f32.mrf.mxu2 }
 0x268   : > { %8136 = vst [vmem:[#allocation20_spill] sm:$0xff] %v5770_v53  ;;  %v1313_v58 = vadd.f32 %v5594_v24, %v1312_v32  ;;  %v5773_v62 = vpop.f32.mrf.mxu0 }
 0x26a   : > { %v1494_v41 = vsel %vm8114_vm12, %v1313_v58, 0.0  ;;  %v1670_v9 = vmul.f32 %v5738_v2, %v1313_v58  ;;  %4309 = vmatmul.msk.f32.gmra.mxu1 %vm8114_vm12, %v788_v42  ;;  %4438 = vmatmul.msk.f32.gmra.mxu0 %vm8114_vm12, %v788_v42  ;;  %v792_v42 = vpop.trf.xlu0  ;;  %v818_v58 = vpop.trf.xlu1 }
 0x26b   : > { %v1495_v10 = vadd.f32 %v1494_v41, %v1493_v61  ;;  %v1630_v41 = vrot.slane %v5589_v5, 3 }
 0x26c   : > { %4357 = vmatmul.msk.f32.gmra.mxu2 %vm8114_vm12, %v1670_v9 }
 0x26f   : > { %v1315_v57 = vpop.f32.mrf.mxu1  ;;  %v5780_v59 = vpop.f32.mrf.mxu2 }
 0x270   : > { %8137 = vst [vmem:[#allocation21_spill] sm:$0xff] %v5780_v59  ;;  %v1316_v28 = vadd.f32 %v5594_v24, %v1315_v57  ;;  %v5783_v7 = vpop.f32.mrf.mxu0 }
 0x272   : > { %v1496_v1 = vsel %vm8114_vm12, %v1316_v28, 0.0  ;;  %v1671_v19 = vmul.f32 %v5738_v2, %v1316_v28  ;;  %4310 = vmatmul.msk.f32.gmra.mxu1 %vm8114_vm12, %v789_v34  ;;  %4439 = vmatmul.msk.f32.gmra.mxu0 %vm8114_vm12, %v789_v34 }
 0x273   : > { %v1497_v18 = vadd.f32 %v1496_v1, %v1495_v10 }
 0x274   : > { %4358 = vmatmul.msk.f32.gmra.mxu2 %vm8114_vm12, %v1671_v19  ;;  %v5824_v19 = vperm.slane %v1630_v41, 0 }
 0x277   : > { %v1318_v6 = vpop.f32.mrf.mxu1  ;;  %v5790_v20 = vpop.f32.mrf.mxu2 }
 0x278   : > { %8138 = vst [vmem:[#allocation22_spill] sm:$0xff] %v5790_v20  ;;  %v1319_v23 = vadd.f32 %v5594_v24, %v1318_v6  ;;  %v5793_v29 = vpop.f32.mrf.mxu0 }
 0x27a   : > { %v1498_v8 = vsel %vm8114_vm12, %v1319_v23, 0.0  ;;  %v1672_v4 = vmul.f32 %v5738_v2, %v1319_v23  ;;  %4311 = vmatmul.msk.f32.gmra.mxu1 %vm8114_vm12, %v790_v14  ;;  %4440 = vmatmul.msk.f32.gmra.mxu0 %vm8114_vm12, %v790_v14  ;;  %v819_v23 = vpop.trf.xlu1 }
 0x27b   : > { %v1499_v16 = vadd.f32 %v1498_v8, %v1497_v18 }
 0x27c   : > { %4359 = vmatmul.msk.f32.gmra.mxu2 %vm8114_vm12, %v1672_v4 }
 0x27f   : > { %v1321_v15 = vpop.f32.mrf.mxu1  ;;  %v5800_v47 = vpop.f32.mrf.mxu2 }
 0x280   : > { %8139 = vst [vmem:[#allocation23_spill] sm:$0xff] %v5800_v47  ;;  %v1322_v17 = vadd.f32 %v5594_v24, %v1321_v15  ;;  %v5803_v26 = vpop.f32.mrf.mxu0 }
 0x282   : > { %v1500_v35 = vsel %vm8114_vm12, %v1322_v17, 0.0  ;;  %v1673_v36 = vmul.f32 %v5738_v2, %v1322_v17  ;;  %4312 = vmatmul.msk.f32.gmra.mxu1 %vm8114_vm12, %v791_v21  ;;  %4441 = vmatmul.msk.f32.gmra.mxu0 %vm8114_vm12, %v791_v21 }
 0x283   : > { %v1501_v38 = vadd.f32 %v1500_v35, %v1499_v16 }
 0x284   : > { %4360 = vmatmul.msk.f32.gmra.mxu2 %vm8114_vm12, %v1673_v36 }
 0x287   : > { %v1324_v44 = vpop.f32.mrf.mxu1  ;;  %v5810_v50 = vpop.f32.mrf.mxu2 }
 0x288   : > { %8140 = vst [vmem:[#allocation24_spill] sm:$0xff] %v5810_v50  ;;  %v1325_v55 = vadd.f32 %v5594_v24, %v1324_v44  ;;  %v5813_v56 = vpop.f32.mrf.mxu0 }
 0x28a   : > { %v1502_v61 = vsel %vm8114_vm12, %v1325_v55, 0.0  ;;  %v1674_v32 = vmul.f32 %v5738_v2, %v1325_v55  ;;  %4313 = vmatmul.msk.f32.gmra.mxu1 %vm8114_vm12, %v792_v42  ;;  %4442 = vmatmul.msk.f32.gmra.mxu0 %vm8114_vm12, %v792_v42  ;;  %v820_v55 = vpop.trf.xlu1 }
 0x28b   : > { %v1503_v34 = vadd.f32 %v1502_v61, %v1501_v38 }
 0x28c   : > { %4361 = vmatmul.msk.f32.gmra.mxu2 %vm8114_vm12, %v1674_v32 }
 0x28d   : > { %v1504_v9 = vrot.slane %v1503_v34, 4 }
 0x28f   : > { %v1505_v10 = vadd.f32 %v1504_v9, %v1503_v34  ;;  %v1327_v57 = vpop.f32.mrf.mxu1  ;;  %v5821_v28 = vpop.f32.mrf.mxu2 }
 0x290   : > { %8141 = vst [vmem:[#allocation25_spill] sm:$0xff] %v5821_v28  ;;  %v1328_v1 = vadd.f32 %v5594_v24, %v1327_v57  ;;  %v5826_v2 = vpop.f32.mrf.mxu0 }
 0x291   : > { %v1506_v14 = vrot.slane %v1505_v10, 2 }
 0x292   : > { %v1675_v18 = vmul.f32 %v5824_v19, %v1328_v1  ;;  %4314 = vmatmul.msk.f32.gmra.mxu1 %vm8114_vm12, %v817_v52  ;;  %4443 = vmatmul.msk.f32.gmra.mxu0 %vm8114_vm12, %v817_v52  ;;  %v1510_v36 = vsel %vm8114_vm12, %v1328_v1, 0.0 }
 0x293   : > { %v1507_v6 = vadd.f32 %v1506_v14, %v1505_v10 }
 0x294   : > { %4362 = vmatmul.msk.f32.gmra.mxu2 %vm8114_vm12, %v1675_v18  ;;  %v821_v18 = vpop.trf.xlu1 }
 0x295   : > { %v1508_v8 = vrot.slane %v1507_v6, 1 }
 0x297   : > { %v1509_v4 = vadd.f32 %v1508_v8, %v1507_v6  ;;  %v1330_v16 = vpop.f32.mrf.mxu1  ;;  %v5832_v21 = vpop.f32.mrf.mxu2 }
 0x298   : > { %8142 = vst [vmem:[#allocation26_spill] sm:$0xff] %v5832_v21  ;;  %v1331_v15 = vadd.f32 %v5594_v24, %v1330_v16  ;;  %v5835_v17 = vpop.f32.mrf.mxu0 }
 0x299   : > { %v1617_v35 = vmul.f32 %v1509_v4, %v5384_v22 }
 0x29a   : > { %v1511_v38 = vsel %vm8114_vm12, %v1331_v15, 0.0  ;;  %v1676_v52 = vmul.f32 %v5824_v19, %v1331_v15  ;;  %4315 = vmatmul.msk.f32.gmra.mxu1 %vm8114_vm12, %v818_v58  ;;  %4444 = vmatmul.msk.f32.gmra.mxu0 %vm8114_vm12, %v818_v58 }
 0x29b   : > { %v1512_v42 = vadd.f32 %v1511_v38, %v1510_v36  ;;  %v5845_v44 = vsel %vm1003_vm6, %v1617_v35, %v5757_v37 }
 0x29c   : > { %4363 = vmatmul.msk.f32.gmra.mxu2 %vm8114_vm12, %v1676_v52  ;;  %v822_v52 = vpop.trf.xlu1 }
 0x29f   : > { %v1333_v61 = vpop.f32.mrf.mxu1  ;;  %v5848_v32 = vpop.f32.mrf.mxu2 }
 0x2a0   : > { %8143 = vst [vmem:[#allocation27_spill] sm:$0xff] %v5848_v32  ;;  %v1334_v34 = vadd.f32 %v5594_v24, %v1333_v61  ;;  %v5851_v41 = vpop.f32.mrf.mxu0 }
 0x2a2   : > { %v1513_v9 = vsel %vm8114_vm12, %v1334_v34, 0.0  ;;  %v1677_v10 = vmul.f32 %v5824_v19, %v1334_v34  ;;  %4316 = vmatmul.msk.f32.gmra.mxu1 %vm8114_vm12, %v819_v23  ;;  %4445 = vmatmul.msk.f32.gmra.mxu0 %vm8114_vm12, %v819_v23 }
 0x2a3   : > { %v1514_v37 = vadd.f32 %v1513_v9, %v1512_v42 }
 0x2a4   : > { %4364 = vmatmul.msk.f32.gmra.mxu2 %vm8114_vm12, %v1677_v10 }
 0x2a7   : > { %v1336_v58 = vpop.f32.mrf.mxu1  ;;  %v5858_v57 = vpop.f32.mrf.mxu2 }
 0x2a8   : > { %8144 = vst [vmem:[#allocation28_spill] sm:$0xff] %v5858_v57  ;;  %v1337_v1 = vadd.f32 %v5594_v24, %v1336_v58  ;;  %v5861_v14 = vpop.f32.mrf.mxu0 }
 0x2aa   : > { %v1515_v6 = vsel %vm8114_vm12, %v1337_v1, 0.0  ;;  %v1678_v8 = vmul.f32 %v5824_v19, %v1337_v1  ;;  %4317 = vmatmul.msk.f32.gmra.mxu1 %vm8114_vm12, %v820_v55  ;;  %4446 = vmatmul.msk.f32.gmra.mxu0 %vm8114_vm12, %v820_v55  ;;  %v823_v1 = vpop.trf.xlu1 }
 0x2ab   : > { %v1516_v23 = vadd.f32 %v1515_v6, %v1514_v37 }
 0x2ac   : > { %4365 = vmatmul.msk.f32.gmra.mxu2 %vm8114_vm12, %v1678_v8 }
 0x2af   : > { %v1339_v4 = vpop.f32.mrf.mxu1  ;;  %v5868_v16 = vpop.f32.mrf.mxu2 }
 0x2b0   : > { %8145 = vst [vmem:[#allocation29_spill] sm:$0xff] %v5868_v16  ;;  %v1340_v15 = vadd.f32 %v5594_v24, %v1339_v4  ;;  %v5871_v35 = vpop.f32.mrf.mxu0  ;;  %v849_v4 = vpop.trf.xlu2 }
 0x2b2   : > { %v1517_v36 = vsel %vm8114_vm12, %v1340_v15, 0.0  ;;  %v1679_v38 = vmul.f32 %v5824_v19, %v1340_v15  ;;  %4318 = vmatmul.msk.f32.gmra.mxu1 %vm8114_vm12, %v821_v18  ;;  %4447 = vmatmul.msk.f32.gmra.mxu0 %vm8114_vm12, %v821_v18 }
 0x2b3   : > { %v1518_v42 = vadd.f32 %v1517_v36, %v1516_v23 }
 0x2b4   : > { %4366 = vmatmul.msk.f32.gmra.mxu2 %vm8114_vm12, %v1679_v38 }
 0x2b7   : > { %v1342_v55 = vpop.f32.mrf.mxu1  ;;  %v5878_v61 = vpop.f32.mrf.mxu2 }
 0x2b8   : > { %8146 = vst [vmem:[#allocation30_spill] sm:$0xff] %v5878_v61  ;;  %v1343_v34 = vadd.f32 %v5594_v24, %v1342_v55  ;;  %v5881_v9 = vpop.f32.mrf.mxu0 }
 0x2ba   : > { %v1519_v10 = vsel %vm8114_vm12, %v1343_v34, 0.0  ;;  %v1680_v37 = vmul.f32 %v5824_v19, %v1343_v34  ;;  %4319 = vmatmul.msk.f32.gmra.mxu1 %vm8114_vm12, %v822_v52  ;;  %4448 = vmatmul.msk.f32.gmra.mxu0 %vm8114_vm12, %v822_v52  ;;  %v824_v52 = vpop.trf.xlu1 }
 0x2bb   : > { %v1520_v58 = vadd.f32 %v1519_v10, %v1518_v42 }
 0x2bc   : > { %4367 = vmatmul.msk.f32.gmra.mxu2 %vm8114_vm12, %v1680_v37 }
 0x2bf   : > { %v1345_v18 = vpop.f32.mrf.mxu1  ;;  %v5888_v6 = vpop.f32.mrf.mxu2 }
 0x2c0   : > { %8147 = vst [vmem:[#allocation31_spill] sm:$0xff] %v5888_v6  ;;  %v1346_v8 = vadd.f32 %v5594_v24, %v1345_v18  ;;  %v5891_v23 = vpop.f32.mrf.mxu0 }
 0x2c2   : > { %v1521_v15 = vsel %vm8114_vm12, %v1346_v8, 0.0  ;;  %v1681_v36 = vmul.f32 %v5824_v19, %v1346_v8  ;;  %4320 = vmatmul.msk.f32.gmra.mxu1 %vm8114_vm12, %v823_v1  ;;  %4449 = vmatmul.msk.f32.gmra.mxu0 %vm8114_vm12, %v823_v1  ;;  %v850_v1 = vpop.trf.xlu2  ;;  %v1631_v8 = vrot.slane %v5589_v5, 4 }
 0x2c3   : > { %v1522_v38 = vadd.f32 %v1521_v15, %v1520_v58 }
 0x2c4   : > { %4368 = vmatmul.msk.f32.gmra.mxu2 %vm8114_vm12, %v1681_v36  ;;  %v5912_v6 = vperm.slane %v1631_v8, 0 }
 0x2c7   : > { %v1348_v42 = vpop.f32.mrf.mxu1  ;;  %v5898_v55 = vpop.f32.mrf.mxu2 }
 0x2c8   : > { %8148 = vst [vmem:[#allocation32_spill] sm:$0xff] %v5898_v55  ;;  %v1349_v34 = vadd.f32 %v5594_v24, %v1348_v42  ;;  %v5901_v10 = vpop.f32.mrf.mxu0 }
 0x2ca   : > { %v1523_v37 = vsel %vm8114_vm12, %v1349_v34, 0.0  ;;  %v1682_v18 = vmul.f32 %v5824_v19, %v1349_v34  ;;  %4321 = vmatmul.msk.f32.gmra.mxu1 %vm8114_vm12, %v824_v52  ;;  %4450 = vmatmul.msk.f32.gmra.mxu0 %vm8114_vm12, %v824_v52 }
 0x2cb   : > { %v1524_v58 = vadd.f32 %v1523_v37, %v1522_v38  ;;  %v851_v37 = vpop.trf.xlu2 }
 0x2cc   : > { %4369 = vmatmul.msk.f32.gmra.mxu2 %vm8114_vm12, %v1682_v18 }
 0x2cd   : > { %v1525_v15 = vrot.slane %v1524_v58, 4 }
 0x2cf   : > { %v1526_v36 = vadd.f32 %v1525_v15, %v1524_v58  ;;  %v1351_v55 = vpop.f32.mrf.mxu1  ;;  %v5909_v42 = vpop.f32.mrf.mxu2 }
 0x2d0   : > { %8149 = vst [vmem:[#allocation33_spill] sm:$0xff] %v5909_v42  ;;  %v1352_v28 = vadd.f32 %v5594_v24, %v1351_v55  ;;  %v5914_v19 = vpop.f32.mrf.mxu0 }
 0x2d1   : > { %v1527_v34 = vrot.slane %v1526_v36, 2 }
 0x2d2   : > { %v1683_v52 = vmul.f32 %v5912_v6, %v1352_v28  ;;  %4322 = vmatmul.msk.f32.gmra.mxu1 %vm8114_vm12, %v849_v4  ;;  %4451 = vmatmul.msk.f32.gmra.mxu0 %vm8114_vm12, %v849_v4  ;;  %v1531_v61 = vsel %vm8114_vm12, %v1352_v28, 0.0 }
 0x2d3   : > { %v1528_v38 = vadd.f32 %v1527_v34, %v1526_v36 }
 0x2d4   : > { %4370 = vmatmul.msk.f32.gmra.mxu2 %vm8114_vm12, %v1683_v52  ;;  %v852_v52 = vpop.trf.xlu2 }
 0x2d5   : > { %v1529_v18 = vrot.slane %v1528_v38, 1 }
 0x2d7   : > { %v1530_v58 = vadd.f32 %v1529_v18, %v1528_v38  ;;  %v1354_v15 = vpop.f32.mrf.mxu1  ;;  %v5920_v42 = vpop.f32.mrf.mxu2 }
 0x2d8   : > { %8150 = vst [vmem:[#allocation34_spill] sm:$0xff] %v5920_v42  ;;  %v1355_v55 = vadd.f32 %v5594_v24, %v1354_v15  ;;  %v5923_v8 = vpop.f32.mrf.mxu0 }
 0x2d9   : > { %v1618_v50 = vmul.f32 %v1530_v58, %v5384_v22 }
 0x2da   : > { %v1532_v47 = vsel %vm8114_vm12, %v1355_v55, 0.0  ;;  %v1684_v4 = vmul.f32 %v5912_v6, %v1355_v55  ;;  %4323 = vmatmul.msk.f32.gmra.mxu1 %vm8114_vm12, %v850_v1  ;;  %4452 = vmatmul.msk.f32.gmra.mxu0 %vm8114_vm12, %v850_v1 }
 0x2db   : > { %v1533_v36 = vadd.f32 %v1532_v47, %v1531_v61  ;;  %v5933_v34 = vsel %vm1005_vm7, %v1618_v50, %v5845_v44 }
 0x2dc   : > { %4371 = vmatmul.msk.f32.gmra.mxu2 %vm8114_vm12, %v1684_v4  ;;  %v853_v4 = vpop.trf.xlu2 }
 0x2df   : > { %v1357_v38 = vpop.f32.mrf.mxu1  ;;  %v5936_v18 = vpop.f32.mrf.mxu2 }
 0x2e0   : > { %8151 = vst [vmem:[#allocation35_spill] sm:$0xff] %v5936_v18  ;;  %v1358_v28 = vadd.f32 %v5594_v24, %v1357_v38  ;;  %v5939_v58 = vpop.f32.mrf.mxu0 }
 0x2e2   : > { %v1534_v15 = vsel %vm8114_vm12, %v1358_v28, 0.0  ;;  %v1685_v55 = vmul.f32 %v5912_v6, %v1358_v28  ;;  %4324 = vmatmul.msk.f32.gmra.mxu1 %vm8114_vm12, %v851_v37  ;;  %4453 = vmatmul.msk.f32.gmra.mxu0 %vm8114_vm12, %v851_v37 }
 0x2e3   : > { %v1535_v47 = vadd.f32 %v1534_v15, %v1533_v36 }
 0x2e4   : > { %4372 = vmatmul.msk.f32.gmra.mxu2 %vm8114_vm12, %v1685_v55 }
 0x2e7   : > { %v1360_v50 = vpop.f32.mrf.mxu1  ;;  %v5946_v44 = vpop.f32.mrf.mxu2 }
 0x2e8   : > { %8152 = vst [vmem:[#allocation36_spill] sm:$0xff] %v5946_v44  ;;  %v1361_v61 = vadd.f32 %v5594_v24, %v1360_v50  ;;  %v5949_v1 = vpop.f32.mrf.mxu0 }
 0x2ea   : > { %v1536_v38 = vsel %vm8114_vm12, %v1361_v61, 0.0  ;;  %v1686_v16 = vmul.f32 %v5912_v6, %v1361_v61  ;;  %4325 = vmatmul.msk.f32.gmra.mxu1 %vm8114_vm12, %v852_v52  ;;  %4454 = vmatmul.msk.f32.gmra.mxu0 %vm8114_vm12, %v852_v52  ;;  %v854_v61 = vpop.trf.xlu2 }
 0x2eb   : > { %v1537_v37 = vadd.f32 %v1536_v38, %v1535_v47 }
 0x2ec   : > { %4373 = vmatmul.msk.f32.gmra.mxu2 %vm8114_vm12, %v1686_v16 }
 0x2ef   : > { %v1363_v36 = vpop.f32.mrf.mxu1  ;;  %v5956_v28 = vpop.f32.mrf.mxu2 }
 0x2f0   : > { %8153 = vst [vmem:[#allocation37_spill] sm:$0xff] %v5956_v28  ;;  %v1364_v15 = vadd.f32 %v5594_v24, %v1363_v36  ;;  %v5959_v55 = vpop.f32.mrf.mxu0 }
 0x2f2   : > { %v1538_v50 = vsel %vm8114_vm12, %v1364_v15, 0.0  ;;  %v1687_v44 = vmul.f32 %v5912_v6, %v1364_v15  ;;  %4326 = vmatmul.msk.f32.gmra.mxu1 %vm8114_vm12, %v853_v4  ;;  %4455 = vmatmul.msk.f32.gmra.mxu0 %vm8114_vm12, %v853_v4 }
 0x2f3   : > { %v1539_v52 = vadd.f32 %v1538_v50, %v1537_v37  ;;  %v855_v37 = vpop.trf.xlu2 }
 0x2f4   : > { %4374 = vmatmul.msk.f32.gmra.mxu2 %vm8114_vm12, %v1687_v44 }
 0x2f7   : > { %v1366_v16 = vpop.f32.mrf.mxu1  ;;  %v5966_v47 = vpop.f32.mrf.mxu2 }
 0x2f8   : > { %8154 = vst [vmem:[#allocation38_spill] sm:$0xff] %v5966_v47  ;;  %v1367_v38 = vadd.f32 %v5594_v24, %v1366_v16  ;;  %v5969_v36 = vpop.f32.mrf.mxu0  ;;  %v881_v47 = vpop.trf.xlu0 }
 0x2fa   : > { %v1540_v28 = vsel %vm8114_vm12, %v1367_v38, 0.0  ;;  %v1688_v42 = vmul.f32 %v5912_v6, %v1367_v38  ;;  %4327 = vmatmul.msk.f32.gmra.mxu1 %vm8114_vm12, %v854_v61  ;;  %4456 = vmatmul.msk.f32.gmra.mxu0 %vm8114_vm12, %v854_v61 }
 0x2fb   : > { %v1541_v4 = vadd.f32 %v1540_v28, %v1539_v52 }
 0x2fc   : > { %4375 = vmatmul.msk.f32.gmra.mxu2 %vm8114_vm12, %v1688_v42  ;;  %v856_v42 = vpop.trf.xlu2 }
 0x2ff   : > { %v1369_v44 = vpop.f32.mrf.mxu1  ;;  %v5976_v15 = vpop.f32.mrf.mxu2 }
 0x300   : > { %8155 = vst [vmem:[#allocation39_spill] sm:$0xff] %v5976_v15  ;;  %v1370_v50 = vadd.f32 %v5594_v24, %v1369_v44  ;;  %v5979_v16 = vpop.f32.mrf.mxu0 }
 0x302   : > { %v1542_v20 = vsel %vm8114_vm12, %v1370_v50, 0.0  ;;  %v1689_v38 = vmul.f32 %v5912_v6, %v1370_v50  ;;  %4328 = vmatmul.msk.f32.gmra.mxu1 %vm8114_vm12, %v855_v37  ;;  %4457 = vmatmul.msk.f32.gmra.mxu0 %vm8114_vm12, %v855_v37  ;;  %v882_v37 = vpop.trf.xlu0 }
 0x303   : > { %v1543_v28 = vadd.f32 %v1542_v20, %v1541_v4  ;;  %v1632_v4 = vrot.slane %v5589_v5, 5 }
 0x304   : > { %4376 = vmatmul.msk.f32.gmra.mxu2 %vm8114_vm12, %v1689_v38 }
 0x305   : > { %v6000_v59 = vperm.slane %v1632_v4, 0 }
 0x307   : > { %v1372_v61 = vpop.f32.mrf.mxu1  ;;  %v5986_v52 = vpop.f32.mrf.mxu2 }
 0x308   : > { %8156 = vst [vmem:[#allocation40_spill] sm:$0xff] %v5986_v52  ;;  %v1373_v44 = vadd.f32 %v5594_v24, %v1372_v61  ;;  %v5989_v15 = vpop.f32.mrf.mxu0 }
 0x30a   : > { %v1544_v57 = vsel %vm8114_vm12, %v1373_v44, 0.0  ;;  %v1690_v21 = vmul.f32 %v5912_v6, %v1373_v44  ;;  %4329 = vmatmul.msk.f32.gmra.mxu1 %vm8114_vm12, %v856_v42  ;;  %4458 = vmatmul.msk.f32.gmra.mxu0 %vm8114_vm12, %v856_v42 }
 0x30b   : > { %v1545_v20 = vadd.f32 %v1544_v57, %v1543_v28  ;;  %v883_v57 = vpop.trf.xlu0  ;;  %v6009_v28 = vld [vmem:[%s7942_s7] ss:$0 sm:$0xff] }
 0x30c   : > { %4377 = vmatmul.msk.f32.gmra.mxu2 %vm8114_vm12, %v1690_v21 }
 0x30d   : > { %v1546_v50 = vrot.slane %v1545_v20, 4 }
 0x30f   : > { %v1547_v38 = vadd.f32 %v1546_v50, %v1545_v20  ;;  %v1375_v52 = vpop.f32.mrf.mxu1  ;;  %v5997_v61 = vpop.f32.mrf.mxu2 }
 0x310   : > { %8157 = vst [vmem:[#allocation41_spill] sm:$0xff] %v5997_v61  ;;  %v1376_v18 = vadd.f32 %v5594_v24, %v1375_v52  ;;  %v3128_v6 = vpop.f32.mrf.mxu0 }
 0x311   : > { %v1548_v44 = vrot.slane %v1547_v38, 2  ;;  %v6012_v20 = vadd.f32 %v6009_v28, %v3128_v6 }
 0x312   : > { %v1691_v32 = vmul.f32 %v6000_v59, %v1376_v18  ;;  %4330 = vmatmul.msk.f32.gmra.mxu1 %vm8114_vm12, %v881_v47  ;;  %4459 = vmatmul.msk.f32.gmra.mxu0 %vm8114_vm12, %v881_v47 }
 0x313   : > { %v1549_v21 = vadd.f32 %v1548_v44, %v1547_v38  ;;  %8158 = vst [vmem:[#allocation42_spill] sm:$0xff] %v6012_v20  ;;  %v1552_v44 = vsel %vm8114_vm12, %v1376_v18, 0.0  ;;  %v3305_v6 = vsel %vm8114_vm12, %v6012_v20, 0.0 }
 0x314   : > { %4378 = vmatmul.msk.f32.gmra.mxu2 %vm8114_vm12, %v1691_v32 }
 0x315   : > { %v1550_v42 = vrot.slane %v1549_v21, 1 }
 0x317   : > { %v1551_v52 = vadd.f32 %v1550_v42, %v1549_v21  ;;  %v1378_v4 = vpop.f32.mrf.mxu1  ;;  %v6014_v50 = vpop.f32.mrf.mxu2 }
 0x318   : > { %8159 = vst [vmem:[#allocation43_spill] sm:$0xff] %v6014_v50  ;;  %v1379_v61 = vadd.f32 %v5594_v24, %v1378_v4  ;;  %v3131_v47 = vpop.f32.mrf.mxu0 }
 0x319   : > { %v1619_v38 = vmul.f32 %v1551_v52, %v5384_v22  ;;  %v6019_v32 = vadd.f32 %v6009_v28, %v3131_v47  ;;  %v884_v47 = vpop.trf.xlu0 }
 0x31a   : > { %v1553_v53 = vsel %vm8114_vm12, %v1379_v61, 0.0  ;;  %v1692_v21 = vmul.f32 %v6000_v59, %v1379_v61  ;;  %4331 = vmatmul.msk.f32.gmra.mxu1 %vm8114_vm12, %v882_v37  ;;  %4460 = vmatmul.msk.f32.gmra.mxu0 %vm8114_vm12, %v882_v37 }
 0x31b   : > { %8160 = vst [vmem:[#allocation44_spill] sm:$0xff] %v6019_v32  ;;  %v1554_v42 = vadd.f32 %v1553_v53, %v1552_v44  ;;  %v3306_v52 = vsel %vm8114_vm12, %v6019_v32, 0.0  ;;  %v6032_v4 = vsel %vm1007_vm8, %v1619_v38, %v5933_v34 }
 0x31c   : > { %v3307_v18 = vadd.f32 %v3306_v52, %v3305_v6  ;;  %4379 = vmatmul.msk.f32.gmra.mxu2 %vm8114_vm12, %v1692_v21 }
 0x31f   : > { %v1381_v61 = vpop.f32.mrf.mxu1  ;;  %v6035_v50 = vpop.f32.mrf.mxu2 }
 0x320   : > { %8161 = vst [vmem:[#allocation45_spill] sm:$0xff] %v6035_v50  ;;  %v1382_v37 = vadd.f32 %v5594_v24, %v1381_v61  ;;  %v3134_v46 = vpop.f32.mrf.mxu0 }
 0x321   : > { %v6039_v20 = vadd.f32 %v6009_v28, %v3134_v46  ;;  %v885_v32 = vpop.trf.xlu0 }
 0x322   : > { %v1555_v53 = vsel %vm8114_vm12, %v1382_v37, 0.0  ;;  %v1693_v44 = vmul.f32 %v6000_v59, %v1382_v37  ;;  %4332 = vmatmul.msk.f32.gmra.mxu1 %vm8114_vm12, %v883_v57  ;;  %4461 = vmatmul.msk.f32.gmra.mxu0 %vm8114_vm12, %v883_v57 }
 0x323   : > { %8162 = vst [vmem:[#allocation46_spill] sm:$0xff] %v6039_v20  ;;  %v1556_v34 = vadd.f32 %v1555_v53, %v1554_v42  ;;  %v3308_v38 = vsel %vm8114_vm12, %v6039_v20, 0.0 }
 0x324   : > { %v3309_v21 = vadd.f32 %v3308_v38, %v3307_v18  ;;  %4380 = vmatmul.msk.f32.gmra.mxu2 %vm8114_vm12, %v1693_v44  ;;  %v6066_v38 = vld [vmem:[%s7941_s6] ss:$0 sm:$0xff] }
 0x327   : > { %v1384_v6 = vpop.f32.mrf.mxu1  ;;  %v6048_v52 = vpop.f32.mrf.mxu2 }
 0x328   : > { %8163 = vst [vmem:[#allocation47_spill] sm:$0xff] %v6048_v52  ;;  %v1385_v46 = vadd.f32 %v5594_v24, %v1384_v6  ;;  %v3137_v61 = vpop.f32.mrf.mxu0 }
 0x329   : > { %v6052_v37 = vadd.f32 %v6009_v28, %v3137_v61 }
 0x32a   : > { %v1557_v50 = vsel %vm8114_vm12, %v1385_v46, 0.0  ;;  %v1694_v57 = vmul.f32 %v6000_v59, %v1385_v46  ;;  %4333 = vmatmul.msk.f32.gmra.mxu1 %vm8114_vm12, %v884_v47  ;;  %4462 = vmatmul.msk.f32.gmra.mxu0 %vm8114_vm12, %v884_v47 }
 0x32b   : > { %8164 = vst [vmem:[#allocation48_spill] sm:$0xff] %v6052_v37  ;;  %v1558_v42 = vadd.f32 %v1557_v50, %v1556_v34  ;;  %v3310_v18 = vsel %vm8114_vm12, %v6052_v37, 0.0 }
 0x32c   : > { %v3311_v53 = vadd.f32 %v3310_v18, %v3309_v21  ;;  %4381 = vmatmul.msk.f32.gmra.mxu2 %vm8114_vm12, %v1694_v57  ;;  %v886_v21 = vpop.trf.xlu0 }
 0x32f   : > { %v1387_v24 = vpop.f32.mrf.mxu1  ;;  %v6061_v44 = vpop.f32.mrf.mxu2 }
 0x330   : > { %8165 = vst [vmem:[#allocation49_spill] sm:$0xff] %v6061_v44  ;;  %v1388_v6 = vadd.f32 %v6066_v38, %v1387_v24  ;;  %v3140_v46 = vpop.f32.mrf.mxu0 }
 0x331   : > { %v6070_v47 = vadd.f32 %v6009_v28, %v3140_v46 }
 0x332   : > { %v1559_v50 = vsel %vm8114_vm12, %v1388_v6, 0.0  ;;  %v1695_v34 = vmul.f32 %v6000_v59, %v1388_v6  ;;  %4334 = vmatmul.msk.f32.gmra.mxu1 %vm8114_vm12, %v885_v32  ;;  %4463 = vmatmul.msk.f32.gmra.mxu0 %vm8114_vm12, %v885_v32 }
 0x333   : > { %8166 = vst [vmem:[#allocation50_spill] sm:$0xff] %v6070_v47  ;;  %v1560_v61 = vadd.f32 %v1559_v50, %v1558_v42  ;;  %v3312_v57 = vsel %vm8114_vm12, %v6070_v47, 0.0 }
 0x334   : > { %v3313_v18 = vadd.f32 %v3312_v57, %v3311_v53  ;;  %4382 = vmatmul.msk.f32.gmra.mxu2 %vm8114_vm12, %v1695_v34  ;;  %v887_v34 = vpop.trf.xlu0 }
 0x337   : > { %v1390_v24 = vpop.f32.mrf.mxu1  ;;  %v6079_v37 = vpop.f32.mrf.mxu2 }
 0x338   : > { %8167 = vst [vmem:[#allocation51_spill] sm:$0xff] %v6079_v37  ;;  %v1391_v46 = vadd.f32 %v6066_v38, %v1390_v24  ;;  %v3143_v20 = vpop.f32.mrf.mxu0 }
 0x339   : > { %v6083_v6 = vadd.f32 %v6009_v28, %v3143_v20 }
 0x33a   : > { %v1561_v44 = vsel %vm8114_vm12, %v1391_v46, 0.0  ;;  %v1696_v32 = vmul.f32 %v6000_v59, %v1391_v46  ;;  %4335 = vmatmul.msk.f32.gmra.mxu1 %vm8114_vm12, %v886_v21  ;;  %4464 = vmatmul.msk.f32.gmra.mxu0 %vm8114_vm12, %v886_v21 }
 0x33b   : > { %8168 = vst [vmem:[#allocation52_spill] sm:$0xff] %v6083_v6  ;;  %v1562_v42 = vadd.f32 %v1561_v44, %v1560_v61  ;;  %v3314_v53 = vsel %vm8114_vm12, %v6083_v6, 0.0 }
 0x33c   : > { %v3315_v50 = vadd.f32 %v3314_v53, %v3313_v18  ;;  %4383 = vmatmul.msk.f32.gmra.mxu2 %vm8114_vm12, %v1696_v32  ;;  %v888_v32 = vpop.trf.xlu0 }
 0x33f   : > { %v1393_v57 = vpop.f32.mrf.mxu1  ;;  %v6092_v24 = vpop.f32.mrf.mxu2 }
 0x340   : > { %8169 = vst [vmem:[#allocation53_spill] sm:$0xff] %v6092_v24  ;;  %v1394_v20 = vadd.f32 %v6066_v38, %v1393_v57  ;;  %v3146_v47 = vpop.f32.mrf.mxu0 }
 0x341   : > { %v6096_v46 = vadd.f32 %v6009_v28, %v3146_v47 }
 0x342   : > { %v1563_v37 = vsel %vm8114_vm12, %v1394_v20, 0.0  ;;  %v1697_v44 = vmul.f32 %v6000_v59, %v1394_v20  ;;  %4336 = vmatmul.msk.f32.gmra.mxu1 %vm8114_vm12, %v887_v34  ;;  %4465 = vmatmul.msk.f32.gmra.mxu0 %vm8114_vm12, %v887_v34 }
 0x343   : > { %8170 = vst [vmem:[#allocation54_spill] sm:$0xff] %v6096_v46  ;;  %v1564_v21 = vadd.f32 %v1563_v37, %v1562_v42  ;;  %v3316_v61 = vsel %vm8114_vm12, %v6096_v46, 0.0 }
 0x344   : > { %v3317_v18 = vadd.f32 %v3316_v61, %v3315_v50  ;;  %4384 = vmatmul.msk.f32.gmra.mxu2 %vm8114_vm12, %v1697_v44  ;;  %v1633_v44 = vrot.slane %v5589_v5, 6 }
 0x347   : > { %v1396_v53 = vpop.f32.mrf.mxu1  ;;  %v6105_v57 = vpop.f32.mrf.mxu2 }
 0x348   : > { %8171 = vst [vmem:[#allocation55_spill] sm:$0xff] %v6105_v57  ;;  %v1397_v47 = vadd.f32 %v6066_v38, %v1396_v53  ;;  %v3149_v6 = vpop.f32.mrf.mxu0 }
 0x349   : > { %v6109_v20 = vadd.f32 %v6009_v28, %v3149_v6 }
 0x34a   : > { %v1565_v24 = vsel %vm8114_vm12, %v1397_v47, 0.0  ;;  %v1698_v37 = vmul.f32 %v6000_v59, %v1397_v47  ;;  %4337 = vmatmul.msk.f32.gmra.mxu1 %vm8114_vm12, %v888_v32  ;;  %4466 = vmatmul.msk.f32.gmra.mxu0 %vm8114_vm12, %v888_v32  ;;  %v6124_v47 = vperm.slane %v1633_v44, 0 }
 0x34b   : > { %8172 = vst [vmem:[#allocation56_spill] sm:$0xff] %v6109_v20  ;;  %v1566_v42 = vadd.f32 %v1565_v24, %v1564_v21  ;;  %v3318_v50 = vsel %vm8114_vm12, %v6109_v20, 0.0 }
 0x34c   : > { %v6117_v34 = vadd.f32 %v3318_v50, %v3317_v18  ;;  %4385 = vmatmul.msk.f32.gmra.mxu2 %vm8114_vm12, %v1698_v37 }
 0x34d   : > { %v1567_v6 = vrot.slane %v1566_v42, 4 }
 0x34f   : > { %v1568_v61 = vadd.f32 %v1567_v6, %v1566_v42  ;;  %v1399_v53 = vpop.f32.mrf.mxu1  ;;  %v6121_v46 = vpop.f32.mrf.mxu2 }
 0x350   : > { %8173 = vst [vmem:[#allocation57_spill] sm:$0xff] %v6121_v46  ;;  %v1400_v59 = vadd.f32 %v6066_v38, %v1399_v53  ;;  %v3152_v32 = vpop.f32.mrf.mxu0 }
 0x351   : > { %v1569_v24 = vrot.slane %v1568_v61, 2  ;;  %v6129_v50 = vadd.f32 %v6009_v28, %v3152_v32 }
 0x352   : > { %v1699_v21 = vmul.f32 %v6124_v47, %v1400_v59 }
 0x353   : > { %v1570_v20 = vadd.f32 %v1569_v24, %v1568_v61  ;;  %8174 = vst [vmem:[#allocation58_spill] sm:$0xff] %v6129_v50  ;;  %v1573_v61 = vsel %vm8114_vm12, %v1400_v59, 0.0  ;;  %v3326_v32 = vsel %vm8114_vm12, %v6129_v50, 0.0 }
 0x354   : > { %4386 = vmatmul.msk.f32.gmra.mxu2 %vm8114_vm12, %v1699_v21 }
 0x355   : > { %v1571_v18 = vrot.slane %v1570_v20, 1 }
 0x357   : > { %v1572_v37 = vadd.f32 %v1571_v18, %v1570_v20  ;;  %v1402_v42 = vpop.f32.mrf.mxu1  ;;  %v6131_v6 = vpop.f32.mrf.mxu2 }
 0x358   : > { %8175 = vst [vmem:[#allocation59_spill] sm:$0xff] %v6131_v6  ;;  %v1403_v46 = vadd.f32 %v6066_v38, %v1402_v42  ;;  %v3155_v53 = vpop.f32.mrf.mxu0 }
 0x359   : > { %v1620_v44 = vmul.f32 %v1572_v37, %v5384_v22  ;;  %v6136_v57 = vadd.f32 %v6009_v28, %v3155_v53 }
 0x35a   : > { %v1574_v24 = vsel %vm8114_vm12, %v1403_v46, 0.0  ;;  %v1700_v20 = vmul.f32 %v6124_v47, %v1403_v46 }
 0x35b   : > { %8176 = vst [vmem:[#allocation60_spill] sm:$0xff] %v6136_v57  ;;  %v1575_v21 = vadd.f32 %v1574_v24, %v1573_v61  ;;  %v3327_v18 = vsel %vm8114_vm12, %v6136_v57, 0.0  ;;  %v6147_v42 = vsel %vm1009_vm9, %v1620_v44, %v6032_v4 }
 0x35c   : > { %v3328_v37 = vadd.f32 %v3327_v18, %v3326_v32  ;;  %4387 = vmatmul.msk.f32.gmra.mxu2 %vm8114_vm12, %v1700_v20 }
 0x35f   : > { %v1405_v53 = vpop.f32.mrf.mxu1  ;;  %v6150_v59 = vpop.f32.mrf.mxu2 }
 0x360   : > { %8177 = vst [vmem:[#allocation61_spill] sm:$0xff] %v6150_v59  ;;  %v1406_v6 = vadd.f32 %v6066_v38, %v1405_v53  ;;  %v3158_v46 = vpop.f32.mrf.mxu0 }
 0x361   : > { %v6154_v52 = vadd.f32 %v6009_v28, %v3158_v46 }
 0x362   : > { %v1576_v61 = vsel %vm8114_vm12, %v1406_v6, 0.0  ;;  %v1701_v24 = vmul.f32 %v6124_v47, %v1406_v6 }
 0x363   : > { %8178 = vst [vmem:[#allocation62_spill] sm:$0xff] %v6154_v52  ;;  %v1577_v57 = vadd.f32 %v1576_v61, %v1575_v21  ;;  %v3329_v4 = vsel %vm8114_vm12, %v6154_v52, 0.0 }
 0x364   : > { %v3330_v44 = vadd.f32 %v3329_v4, %v3328_v37  ;;  %4388 = vmatmul.msk.f32.gmra.mxu2 %vm8114_vm12, %v1701_v24 }
 0x367   : > { %v1408_v20 = vpop.f32.mrf.mxu1  ;;  %v6161_v32 = vpop.f32.mrf.mxu2 }
 0x368   : > { %8179 = vst [vmem:[#allocation63_spill] sm:$0xff] %v6161_v32  ;;  %v1409_v18 = vadd.f32 %v6066_v38, %v1408_v20  ;;  %v3161_v53 = vpop.f32.mrf.mxu0 }
 0x369   : > { %v6165_v46 = vadd.f32 %v6009_v28, %v3161_v53 }
 0x36a   : > { %v1578_v50 = vsel %vm8114_vm12, %v1409_v18, 0.0  ;;  %v1702_v6 = vmul.f32 %v6124_v47, %v1409_v18 }
 0x36b   : > { %8180 = vst [vmem:[#allocation64_spill] sm:$0xff] %v6165_v46  ;;  %v1579_v21 = vadd.f32 %v1578_v50, %v1577_v57  ;;  %v3331_v61 = vsel %vm8114_vm12, %v6165_v46, 0.0 }
 0x36c   : > { %v3332_v37 = vadd.f32 %v3331_v61, %v3330_v44  ;;  %4389 = vmatmul.msk.f32.gmra.mxu2 %vm8114_vm12, %v1702_v6 }
 0x36f   : > { %v1411_v24 = vpop.f32.mrf.mxu1  ;;  %v6172_v4 = vpop.f32.mrf.mxu2 }
 0x370   : > { %8181 = vst [vmem:[#allocation65_spill] sm:$0xff] %v6172_v4  ;;  %v1412_v20 = vadd.f32 %v6066_v38, %v1411_v24  ;;  %v3164_v52 = vpop.f32.mrf.mxu0 }
 0x371   : > { %v6176_v53 = vadd.f32 %v6009_v28, %v3164_v52 }
 0x372   : > { %v1580_v32 = vsel %vm8114_vm12, %v1412_v20, 0.0  ;;  %v1703_v18 = vmul.f32 %v6124_v47, %v1412_v20 }
 0x373   : > { %8182 = vst [vmem:[#allocation66_spill] sm:$0xff] %v6176_v53  ;;  %v1581_v57 = vadd.f32 %v1580_v32, %v1579_v21  ;;  %v3333_v50 = vsel %vm8114_vm12, %v6176_v53, 0.0 }
 0x374   : > { %v3334_v44 = vadd.f32 %v3333_v50, %v3332_v37  ;;  %4390 = vmatmul.msk.f32.gmra.mxu2 %vm8114_vm12, %v1703_v18  ;;  %v6196_v18 = vadd.f32 %v6009_v28, %v5606_v13  ;;  %v6200_v50 = vadd.f32 %v6009_v28, %v5596_v45  ;;  %v6213_v13 = vadd.f32 %v6009_v28, %v5623_v30 }
 0x376   : > { %8184 = vst [vmem:[#allocation68_spill] sm:$0xff] %v6196_v18 }
 0x377   : > { %v1414_v6 = vpop.f32.mrf.mxu1  ;;  %v6183_v61 = vpop.f32.mrf.mxu2  ;;  %8185 = vst [vmem:[#allocation69_spill] sm:$0xff] %v6200_v50 }
 0x378   : > { %v1415_v24 = vadd.f32 %v6066_v38, %v1414_v6  ;;  %v3167_v46 = vpop.f32.mrf.mxu0  ;;  %8187 = vst [vmem:[#allocation71_spill] sm:$0xff] %v6213_v13 }
 0x379   : > { %v6187_v52 = vadd.f32 %v6009_v28, %v3167_v46  ;;  %v6204_v46 = vadd.f32 %v6009_v28, %v5615_v27  ;;  %v3200_v27 = vsel %vm8114_vm12, %v6200_v50, 0.0  ;;  %v3205_v50 = vsel %vm8114_vm12, %v6213_v13, 0.0 }
 0x37a   : > { %v1582_v4 = vsel %vm8114_vm12, %v1415_v24, 0.0  ;;  %v1704_v20 = vmul.f32 %v6124_v47, %v1415_v24  ;;  %v3201_v24 = vsel %vm8114_vm12, %v6196_v18, 0.0 }
 0x37b   : > { %8183 = vst [vmem:[#allocation67_spill] sm:$0xff] %v6187_v52  ;;  %v1583_v32 = vadd.f32 %v1582_v4, %v1581_v57  ;;  %v3335_v21 = vsel %vm8114_vm12, %v6187_v52, 0.0  ;;  %v6226_v52 = vadd.f32 %v6009_v28, %v5631_v39  ;;  %v6241_v39 = vadd.f32 %v6009_v28, %v5639_v63 }
 0x37c   : > { %v3336_v37 = vadd.f32 %v3335_v21, %v3334_v44  ;;  %4391 = vmatmul.msk.f32.gmra.mxu2 %vm8114_vm12, %v1704_v20  ;;  %8186 = vst [vmem:[#allocation70_spill] sm:$0xff] %v6204_v46 }
 0x37d   : > { %8189 = vst [vmem:[#allocation73_spill] sm:$0xff] %v6226_v52 }
 0x37e   : > { %8191 = vst [vmem:[#allocation75_spill] sm:$0xff] %v6241_v39 }
 0x37f   : > { %v1417_v6 = vpop.f32.mrf.mxu1  ;;  %v6206_v4 = vpop.f32.mrf.mxu2 }
 0x380   : > { %v1418_v57 = vadd.f32 %v6066_v38, %v1417_v6  ;;  %v3170_v44 = vpop.f32.mrf.mxu0  ;;  %v3203_v6 = vsel %vm8114_vm12, %v6204_v46, 0.0 }
 0x381   : > { %v6216_v45 = vadd.f32 %v6009_v28, %v3170_v44  ;;  %v3202_v44 = vadd.f32 %v3201_v24, %v3200_v27  ;;  %v6251_v24 = vadd.f32 %v6009_v28, %v5684_v12  ;;  %v3209_v12 = vsel %vm8114_vm12, %v6241_v39, 0.0  ;;  %v8259_v39 = vld [vmem:[#allocation39_spill] sm:$0xff] }
 0x382   : > { %v1584_v20 = vsel %vm8114_vm12, %v1418_v57, 0.0  ;;  %v1705_v21 = vmul.f32 %v6124_v47, %v1418_v57  ;;  %v6237_v57 = vadd.f32 %v6009_v28, %v5675_v11 }
 0x383   : > { %8188 = vst [vmem:[#allocation72_spill] sm:$0xff] %v6216_v45  ;;  %v1585_v53 = vadd.f32 %v1584_v20, %v1583_v32  ;;  %v3337_v30 = vsel %vm8114_vm12, %v6216_v45, 0.0  ;;  %v3204_v46 = vadd.f32 %v3203_v6, %v3202_v44  ;;  %v3207_v32 = vsel %vm8114_vm12, %v6226_v52, 0.0 }
 0x384   : > { %v6230_v18 = vadd.f32 %v3337_v30, %v3336_v37  ;;  %4392 = vmatmul.msk.f32.gmra.mxu2 %vm8114_vm12, %v1705_v21  ;;  %8190 = vst [vmem:[#allocation74_spill] sm:$0xff] %v6237_v57  ;;  %v6247_v37 = vadd.f32 %v6009_v28, %v5666_v33  ;;  %v6257_v21 = vadd.f32 %v6009_v28, %v5692_v25  ;;  %v3222_v6 = vsel %vm8114_vm12, %v6237_v57, 0.0 }
 0x385   : > { %8193 = vst [vmem:[#allocation77_spill] sm:$0xff] %v6251_v24  ;;  %v3206_v11 = vadd.f32 %v3205_v50, %v3204_v46  ;;  %v1634_v33 = vrot.slane %v5589_v5, 7  ;;  %v3224_v25 = vsel %vm8114_vm12, %v6251_v24, 0.0  ;;  %v6273_v46 = vadd.f32 %v6009_v28, %v5747_v51 }
 0x386   : > { %8192 = vst [vmem:[#allocation76_spill] sm:$0xff] %v6247_v37  ;;  %v3221_v50 = vsel %vm8114_vm12, %v6247_v37, 0.0  ;;  %v3226_v57 = vsel %vm8114_vm12, %v6257_v21, 0.0  ;;  %v6292_v51 = vadd.f32 %v6009_v28, %v5735_v40 }
 0x387   : > { %v1420_v27 = vpop.f32.mrf.mxu1  ;;  %v6253_v20 = vpop.f32.mrf.mxu2  ;;  %8194 = vst [vmem:[#allocation78_spill] sm:$0xff] %v6257_v21  ;;  %v3208_v30 = vadd.f32 %v3207_v32, %v3206_v11  ;;  %v6277_v32 = vadd.f32 %v6009_v28, %v5647_v43  ;;  %v3223_v11 = vadd.f32 %v3222_v6, %v3221_v50  ;;  %v6296_v43 = vadd.f32 %v6009_v28, %v5763_v54 }
 0x388   : > { %v1421_v63 = vadd.f32 %v6066_v38, %v1420_v27  ;;  %8195 = vst [vmem:[#allocation79_spill] sm:$0xff] %v6273_v46 }
 0x389   : > { %8196 = vst [vmem:[#allocation80_spill] sm:$0xff] %v6277_v32  ;;  %v3225_v6 = vadd.f32 %v3224_v25, %v3223_v11  ;;  %v3211_v54 = vsel %vm8114_vm12, %v6277_v32, 0.0  ;;  %v3245_v25 = vsel %vm8114_vm12, %v6296_v43, 0.0  ;;  %v6323_v11 = vadd.f32 %v6009_v28, %v5716_v49 }
 0x38a   : > { %v1586_v44 = vsel %vm8114_vm12, %v1421_v63, 0.0  ;;  %v1706_v45 = vmul.f32 %v6124_v47, %v1421_v63  ;;  %v6283_v47 = vadd.f32 %v6009_v28, %v5700_v0  ;;  %v6288_v63 = vadd.f32 %v6009_v28, %v5708_v31  ;;  %8199 = vst [vmem:[#allocation83_spill] sm:$0xff] %v6292_v51 }
 0x38b   : > { %v1587_v27 = vadd.f32 %v1586_v44, %v1585_v53  ;;  %8200 = vst [vmem:[#allocation84_spill] sm:$0xff] %v6296_v43  ;;  %v6298_v44 = vperm.slane %v1634_v33, 0  ;;  %v3210_v0 = vadd.f32 %v3209_v12, %v3208_v30  ;;  %v6304_v31 = vadd.f32 %v6009_v28, %v5773_v62 }
 0x38c   : > { %8197 = vst [vmem:[#allocation81_spill] sm:$0xff] %v6283_v47  ;;  %4393 = vmatmul.msk.f32.gmra.mxu2 %vm8114_vm12, %v1706_v45  ;;  %v3243_v45 = vsel %vm8114_vm12, %v6273_v46, 0.0  ;;  %v3227_v24 = vadd.f32 %v3226_v57, %v3225_v6  ;;  %v3228_v33 = vsel %vm8114_vm12, %v6283_v47, 0.0  ;;  %v3230_v12 = vsel %vm8114_vm12, %v6288_v63, 0.0 }
 0x38d   : > { %8198 = vst [vmem:[#allocation82_spill] sm:$0xff] %v6288_v63  ;;  %v1588_v53 = vrot.slane %v1587_v27, 4  ;;  %v3242_v62 = vsel %vm8114_vm12, %v6292_v51, 0.0  ;;  %v6327_v57 = vadd.f32 %v6009_v28, %v5726_v3  ;;  %v3247_v46 = vsel %vm8114_vm12, %v6304_v31, 0.0 }
 0x38e   : > { %8201 = vst [vmem:[#allocation85_spill] sm:$0xff] %v6304_v31  ;;  %v3229_v6 = vadd.f32 %v3228_v33, %v3227_v24  ;;  %v6335_v43 = vadd.f32 %v6009_v28, %v5835_v17  ;;  %v6337_v63 = vadd.f32 %v3211_v54, %v3210_v0  ;;  %v6341_v49 = vadd.f32 %v6009_v28, %v5655_v60 }
 0x38f   : > { %v1589_v50 = vadd.f32 %v1588_v53, %v1587_v27  ;;  %v1423_v21 = vpop.f32.mrf.mxu1  ;;  %v6306_v40 = vpop.f32.mrf.mxu2  ;;  %8202 = vst [vmem:[#allocation86_spill] sm:$0xff] %v6323_v11  ;;  %v6350_v33 = vadd.f32 %v6009_v28, %v5826_v2  ;;  %v6354_v17 = vadd.f32 %v6009_v28, %v5923_v8  ;;  %v3232_v60 = vsel %vm8114_vm12, %v6323_v11, 0.0  ;;  %v8255_v11 = vld [vmem:[#allocation30_spill] sm:$0xff] }
 0x390   : > { %v6313_v30 = vadd.f32 %v6066_v38, %v1423_v21  ;;  %8203 = vst [vmem:[#allocation87_spill] sm:$0xff] %v6327_v57  ;;  %v3244_v21 = vadd.f32 %v3243_v45, %v3242_v62  ;;  %v6345_v45 = vadd.f32 %v6009_v28, %v5783_v7  ;;  %v3231_v24 = vadd.f32 %v3230_v12, %v3229_v6 }
 0x391   : > { %v1590_v27 = vrot.slane %v1589_v50, 2  ;;  %8204 = vst [vmem:[#allocation88_spill] sm:$0xff] %v6335_v43  ;;  %v6364_v54 = vadd.f32 %v6009_v28, %v5851_v41  ;;  %v3264_v2 = vsel %vm8114_vm12, %v6335_v43, 0.0  ;;  %v6370_v8 = vadd.f32 %v6009_v28, %v5914_v19 }
 0x392   : > { %v1707_v53 = vmul.f32 %v6298_v44, %v6313_v30  ;;  %8205 = vst [vmem:[#allocation89_spill] sm:$0xff] %v6341_v49  ;;  %v3246_v3 = vadd.f32 %v3245_v25, %v3244_v21  ;;  %v6374_v12 = vadd.f32 %v6009_v28, %v5939_v58  ;;  %v6382_v41 = vadd.f32 %v6009_v28, %v5793_v29 }
 0x393   : > { %v1591_v51 = vadd.f32 %v1590_v27, %v1589_v50  ;;  %8206 = vst [vmem:[#allocation90_spill] sm:$0xff] %v6345_v45  ;;  %v6360_v50 = vsel %vm8114_vm12, %v6327_v57, 0.0  ;;  %v6386_v21 = vadd.f32 %v6009_v28, %v5861_v14  ;;  %v3263_v58 = vsel %vm8114_vm12, %v6350_v33, 0.0  ;;  %v8254_v57 = vld [vmem:[#allocation37_spill] sm:$0xff] }
 0x394   : > { %4394 = vmatmul.msk.f32.gmra.mxu2 %vm8114_vm12, %v1707_v53  ;;  %8207 = vst [vmem:[#allocation91_spill] sm:$0xff] %v6350_v33  ;;  %v3248_v7 = vadd.f32 %v3247_v46, %v3246_v3  ;;  %v3249_v46 = vsel %vm8114_vm12, %v6345_v45, 0.0  ;;  %v6397_v53 = vadd.f32 %v6009_v28, %v5949_v1  ;;  %v3265_v6 = vadd.f32 %v3264_v2, %v3263_v58 }
 0x395   : > { %8208 = vst [vmem:[#allocation92_spill] sm:$0xff] %v6354_v17  ;;  %v1592_v0 = vrot.slane %v1591_v51, 1  ;;  %v3266_v14 = vsel %vm8114_vm12, %v6364_v54, 0.0  ;;  %v6404_v3 = vadd.f32 %v6009_v28, %v5871_v35  ;;  %v3287_v1 = vsel %vm8114_vm12, %v6374_v12, 0.0 }
 0x396   : > { %8209 = vst [vmem:[#allocation93_spill] sm:$0xff] %v6364_v54  ;;  %v3250_v58 = vadd.f32 %v3249_v46, %v3248_v7  ;;  %v3268_v35 = vsel %vm8114_vm12, %v6386_v21, 0.0  ;;  %v6435_v7 = vadd.f32 %v6009_v28, %v5969_v36  ;;  %v3251_v46 = vsel %vm8114_vm12, %v6382_v41, 0.0 }
 0x397   : > { %8210 = vst [vmem:[#allocation94_spill] sm:$0xff] %v6370_v8  ;;  %v1593_v62 = vadd.f32 %v1592_v0, %v1591_v51  ;;  %v1426_v25 = vpop.f32.mrf.mxu1  ;;  %v6376_v27 = vpop.f32.mrf.mxu2  ;;  %v3285_v51 = vsel %vm8114_vm12, %v6354_v17, 0.0  ;;  %v6424_v17 = vadd.f32 %v6009_v28, %v5881_v9  ;;  %v3270_v9 = vsel %vm8114_vm12, %v6404_v3, 0.0 }
 0x398   : > { %8211 = vst [vmem:[#allocation95_spill] sm:$0xff] %v6374_v12  ;;  %v6389_v19 = vadd.f32 %v6066_v38, %v1426_v25  ;;  %v3284_v25 = vsel %vm8114_vm12, %v6370_v8, 0.0  ;;  %v6429_v12 = vadd.f32 %v6009_v28, %v5803_v26  ;;  %v2185_v47 = vsel %vm2156_vm13, %v8255_v11, -inf }
 0x399   : > { %8212 = vst [vmem:[#allocation96_spill] sm:$0xff] %v6376_v27  ;;  %v1621_v29 = vmul.f32 %v1593_v62, %v5384_v22  ;;  %v6414_v62 = vadd.f32 %v6009_v28, %v5959_v55  ;;  %v3286_v8 = vadd.f32 %v3285_v51, %v3284_v25  ;;  %v3267_v55 = vadd.f32 %v3266_v14, %v3265_v6 }
 0x39a   : > { %8213 = vst [vmem:[#allocation97_spill] sm:$0xff] %v6382_v41  ;;  %v1708_v0 = vmul.f32 %v6298_v44, %v6389_v19  ;;  %v6443_v51 = vadd.f32 %v6009_v28, %v5891_v23  ;;  %v6453_v14 = vadd.f32 %v6009_v28, %v5979_v16  ;;  %v3272_v23 = vsel %vm8114_vm12, %v6424_v17, 0.0  ;;  %v8253_v41 = vld [vmem:[#allocation23_spill] sm:$0xff] }
 0x39b   : > { %8214 = vst [vmem:[#allocation98_spill] sm:$0xff] %v6386_v21  ;;  %v6418_v2 = vsel %vm1011_vm10, %v1621_v29, %v6147_v42  ;;  %v3289_v42 = vsel %vm8114_vm12, %v6397_v53, 0.0  ;;  %v3288_v26 = vadd.f32 %v3287_v1, %v3286_v8  ;;  %v6447_v29 = vadd.f32 %v6009_v28, %v5813_v56 }
 0x39c   : > { %8215 = vst [vmem:[#allocation99_spill] sm:$0xff] %v6397_v53  ;;  %4395 = vmatmul.msk.f32.gmra.mxu2 %vm8114_vm12, %v1708_v0  ;;  %v3269_v6 = vadd.f32 %v3268_v35, %v3267_v55  ;;  %v3291_v36 = vsel %vm8114_vm12, %v6414_v62, 0.0  ;;  %v6461_v8 = vadd.f32 %v6009_v28, %v5901_v10  ;;  %v3253_v35 = vsel %vm8114_vm12, %v6429_v12, 0.0 }
 0x39d   : > { %8216 = vst [vmem:[#allocation100_spill] sm:$0xff] %v6404_v3  ;;  %v3290_v56 = vadd.f32 %v3289_v42, %v3288_v26  ;;  %v3293_v16 = vsel %vm8114_vm12, %v6435_v7, 0.0  ;;  %v3252_v53 = vadd.f32 %v3251_v46, %v3250_v58  ;;  %v3274_v10 = vsel %vm8114_vm12, %v6443_v51, 0.0  ;;  %v3173_v42 = vpop.f32.mrf.mxu0 }
 0x39e   : > { %8217 = vst [vmem:[#allocation101_spill] sm:$0xff] %v6414_v62  ;;  %v3271_v55 = vadd.f32 %v3270_v9, %v3269_v6  ;;  %v6472_v62 = vadd.f32 %v6009_v28, %v5989_v15  ;;  %v3255_v9 = vsel %vm8114_vm12, %v6447_v29, 0.0  ;;  %v3213_v15 = vsel %vm8114_vm12, %v6341_v49, 0.0  ;;  %v8258_v49 = vld [vmem:[#allocation31_spill] sm:$0xff] }
 0x39f   : > { %8218 = vst [vmem:[#allocation102_spill] sm:$0xff] %v6424_v17  ;;  %v1429_v0 = vpop.f32.mrf.mxu1  ;;  %v6455_v25 = vpop.f32.mrf.mxu2  ;;  %v3292_v17 = vadd.f32 %v3291_v36, %v3290_v56  ;;  %v3254_v58 = vadd.f32 %v3253_v35, %v3252_v53  ;;  %v3276_v46 = vsel %vm8114_vm12, %v6461_v8, 0.0  ;;  %v2166_v45 = vsel %vm2156_vm13, %v8253_v41, -inf }
 0x3a0   : > { %8219 = vst [vmem:[#allocation103_spill] sm:$0xff] %v6429_v12  ;;  %v6464_v1 = vadd.f32 %v6066_v38, %v1429_v0  ;;  %v3233_v0 = vadd.f32 %v3232_v60, %v3231_v24  ;;  %v3273_v6 = vadd.f32 %v3272_v23, %v3271_v55  ;;  %v3297_v60 = vsel %vm8114_vm12, %v6472_v62, 0.0 }
 0x3a1   : > { %8220 = vst [vmem:[#allocation104_spill] sm:$0xff] %v6435_v7  ;;  %v3295_v7 = vsel %vm8114_vm12, %v6453_v14, 0.0  ;;  %v3294_v36 = vadd.f32 %v3293_v16, %v3292_v17  ;;  %v6491_v23 = vadd.f32 %v6009_v28, %v3173_v42  ;;  %v3256_v55 = vadd.f32 %v3255_v9, %v3254_v58 }
 0x3a2   : > { %8221 = vst [vmem:[#allocation105_spill] sm:$0xff] %v6443_v51  ;;  %v1709_v26 = vmul.f32 %v6298_v44, %v6464_v1  ;;  %v3235_v56 = vadd.f32 %v6360_v50, %v3233_v0  ;;  %v3275_v24 = vadd.f32 %v3274_v10, %v3273_v6  ;;  %v3214_v51 = vadd.f32 %v3213_v15, %v6337_v63 }
 0x3a3   : > { %8222 = vst [vmem:[#allocation106_spill] sm:$0xff] %v6447_v29  ;;  %v3339_v50 = vsel %vm8114_vm12, %v6491_v23, 0.0  ;;  %v3257_v10 = vrot.slane %v3256_v55, 4  ;;  %v3320_v6 = vrot.slane %v6117_v34, 4  ;;  %v8251_v29 = vld [vmem:[#allocation29_spill] sm:$0xff]  ;;  %v2187_v32 = vsel %vm2156_vm13, %v8258_v49, -inf }
 0x3a4   : > { %8223 = vst [vmem:[#allocation107_spill] sm:$0xff] %v6453_v14  ;;  %4396 = vmatmul.msk.f32.gmra.mxu2 %vm8114_vm12, %v1709_v26  ;;  %v3296_v14 = vadd.f32 %v3295_v7, %v3294_v36  ;;  %v3277_v53 = vadd.f32 %v3276_v46, %v3275_v24  ;;  %v3236_v26 = vrot.slane %v3235_v56, 4  ;;  %v3215_v28 = vrot.slane %v3214_v51, 4 }
 0x3a5   : > { %8224 = vst [vmem:[#allocation108_spill] sm:$0xff] %v6455_v25  ;;  %v3340_v7 = vadd.f32 %v3339_v50, %v6230_v18 }
 0x3a6   : > { %8225 = vst [vmem:[#allocation109_spill] sm:$0xff] %v6461_v8  ;;  %v3298_v17 = vadd.f32 %v3297_v60, %v3296_v14  ;;  %v3278_v42 = vrot.slane %v3277_v53, 4  ;;  %v3237_v63 = vadd.f32 %v3236_v26, %v3235_v56  ;;  %v3258_v14 = vadd.f32 %v3257_v10, %v3256_v55 }
 0x3a7   : > { %8226 = vst [vmem:[#allocation110_spill] sm:$0xff] %v6472_v62  ;;  %v1432_v35 = vpop.f32.mrf.mxu1  ;;  %v6494_v3 = vpop.f32.mrf.mxu2  ;;  %v3216_v15 = vadd.f32 %v3215_v28, %v3214_v51  ;;  %v3341_v60 = vrot.slane %v3340_v7, 4  ;;  %v3321_v62 = vadd.f32 %v3320_v6, %v6117_v34 }
 0x3a8   : > { %8227 = vst [vmem:[#allocation111_spill] sm:$0xff] %v6491_v23  ;;  %v1433_v16 = vadd.f32 %v6066_v38, %v1432_v35  ;;  %v3299_v9 = vrot.slane %v3298_v17, 4  ;;  %v3279_v58 = vadd.f32 %v3278_v42, %v3277_v53  ;;  %v3238_v23 = vrot.slane %v3237_v63, 2 }
 0x3a9   : > { %8228 = vst [vmem:[#allocation112_spill] sm:$0xff] %v6494_v3  ;;  %v3259_v8 = vrot.slane %v3258_v14, 2  ;;  %v3217_v50 = vrot.slane %v3216_v15, 2  ;;  %v3322_v55 = vrot.slane %v3321_v62, 2 }
 0x3aa   : > { %v1710_v0 = vmul.f32 %v6298_v44, %v1433_v16  ;;  %v3300_v24 = vadd.f32 %v3299_v9, %v3298_v17  ;;  %v3280_v56 = vrot.slane %v3279_v58, 2  ;;  %v3239_v51 = vadd.f32 %v3238_v23, %v3237_v63 }
 0x3ab   : > { %v3260_v53 = vadd.f32 %v3259_v8, %v3258_v14  ;;  %v3218_v10 = vadd.f32 %v3217_v50, %v3216_v15  ;;  %v3323_v21 = vadd.f32 %v3322_v55, %v3321_v62  ;;  %v1595_v8 = vsel %vm8114_vm12, %v6389_v19, 0.0 }
 0x3ac   : > { %4397 = vmatmul.msk.f32.gmra.mxu2 %vm8114_vm12, %v1710_v0  ;;  %v3301_v26 = vrot.slane %v3300_v24, 2  ;;  %v3342_v0 = vadd.f32 %v3341_v60, %v3340_v7  ;;  %v3281_v17 = vadd.f32 %v3280_v56, %v3279_v58  ;;  %v3240_v6 = vrot.slane %v3239_v51, 1 }
 0x3ad   : > { %v3261_v54 = vrot.slane %v3260_v53, 1  ;;  %v3219_v7 = vrot.slane %v3218_v10, 1  ;;  %v3324_v14 = vrot.slane %v3323_v21, 1  ;;  %v1594_v58 = vsel %vm8114_vm12, %v6313_v30, 0.0 }
 0x3ae   : > { %v3302_v9 = vadd.f32 %v3301_v26, %v3300_v24  ;;  %v3282_v60 = vrot.slane %v3281_v17, 1  ;;  %v3241_v63 = vadd.f32 %v3240_v6, %v3239_v51  ;;  %v1597_v62 = vsel %vm8114_vm12, %v6464_v1, 0.0 }
 0x3af   : > { %v1435_v46 = vpop.f32.mrf.mxu1  ;;  %v6503_v36 = vpop.f32.mrf.mxu2  ;;  %v3262_v15 = vadd.f32 %v3261_v54, %v3260_v53  ;;  %v3220_v24 = vadd.f32 %v3219_v7, %v3218_v10  ;;  %v1596_v56 = vadd.f32 %v1595_v8, %v1594_v58  ;;  %v1599_v19 = vsel %vm8114_vm12, %v1433_v16, 0.0 }
 0x3b0   : > { %v1436_v35 = vadd.f32 %v6066_v38, %v1435_v46  ;;  %v3343_v46 = vrot.slane %v3342_v0, 2  ;;  %v3283_v50 = vadd.f32 %v3282_v60, %v3281_v17  ;;  %v3369_v54 = vmul.f32 %v3241_v63, %v5384_v22 }
 0x3b1   : > { %v3325_v51 = vadd.f32 %v3324_v14, %v3323_v21  ;;  %v1598_v53 = vadd.f32 %v1597_v62, %v1596_v56  ;;  %v3370_v30 = vmul.f32 %v3262_v15, %v5384_v22  ;;  %v3368_v17 = vmul.f32 %v3220_v24, %v5384_v22 }
 0x3b2   : > { %v1711_v18 = vmul.f32 %v6298_v44, %v1436_v35  ;;  %v3344_v23 = vadd.f32 %v3343_v46, %v3342_v0  ;;  %v1601_v1 = vsel %vm8114_vm12, %v1436_v35, 0.0  ;;  %v3371_v46 = vmul.f32 %v3283_v50, %v5384_v22 }
 0x3b3   : > { %v3373_v60 = vmul.f32 %v3325_v51, %v5384_v22 }
 0x3b4   : > { %4398 = vmatmul.msk.f32.gmra.mxu2 %vm8114_vm12, %v1711_v18  ;;  %v3303_v18 = vrot.slane %v3302_v9, 1 }
 0x3b6   : > { %v3304_v0 = vadd.f32 %v3303_v18, %v3302_v9  ;;  %v1600_v9 = vadd.f32 %v1599_v19, %v1598_v53  ;;  %v4045_v18 = vsel %vm1001_vm5, %v3369_v54, %v3368_v17 }
 0x3b7   : > { %v1438_v28 = vpop.f32.mrf.mxu1  ;;  %v6509_v42 = vpop.f32.mrf.mxu2  ;;  %v4046_v8 = vsel %vm1003_vm6, %v3370_v30, %v4045_v18 }
 0x3b8   : > { %v1439_v34 = vadd.f32 %v6066_v38, %v1438_v28  ;;  %v3345_v28 = vrot.slane %v3344_v23, 1  ;;  %v3372_v7 = vmul.f32 %v3304_v0, %v5384_v22  ;;  %v1602_v21 = vadd.f32 %v1601_v1, %v1600_v9 }
 0x3ba   : > { %v1712_v43 = vmul.f32 %v6298_v44, %v1439_v34  ;;  %v3346_v6 = vadd.f32 %v3345_v28, %v3344_v23  ;;  %v1603_v16 = vsel %vm8114_vm12, %v1439_v34, 0.0  ;;  %v4047_v23 = vsel %vm1005_vm7, %v3371_v46, %v4046_v8  ;;  %v8241_v8 = vld [vmem:[#allocation18_spill] sm:$0xff] }
 0x3bb   : > { %v1604_v63 = vadd.f32 %v1603_v16, %v1602_v21  ;;  %v4048_v62 = vsel %vm1007_vm8, %v3372_v7, %v4047_v23 }
 0x3bc   : > { %4399 = vmatmul.msk.f32.gmra.mxu2 %vm8114_vm12, %v1712_v43  ;;  %v3374_v58 = vmul.f32 %v3346_v6, %v5384_v22  ;;  %v4049_v50 = vsel %vm1009_vm9, %v3373_v60, %v4048_v62 }
 0x3be   : > { %v6547_v0 = vsel %vm1011_vm10, %v3374_v58, %v4049_v50  ;;  %v8243_v58 = vld [vmem:[#allocation27_spill] sm:$0xff] }
 0x3bf   : > { %v1441_v26 = vpop.f32.mrf.mxu1  ;;  %v6520_v55 = vpop.f32.mrf.mxu2  ;;  %8229 = vst [vmem:[#allocation113_spill] sm:$0xff] %v6547_v0  ;;  %v2179_v62 = vsel %vm2156_vm13, %v8243_v58, -inf  ;;  %v8256_v0 = vld [vmem:[#allocation24_spill] sm:$0xff] }
 0x3c0   : > { %v1442_v43 = vadd.f32 %v6066_v38, %v1441_v26 }
 0x3c2   : > { %v1713_v10 = vmul.f32 %v6298_v44, %v1442_v43  ;;  %v1605_v35 = vsel %vm8114_vm12, %v1442_v43, 0.0 }
 0x3c3   : > { %v1606_v24 = vadd.f32 %v1605_v35, %v1604_v63  ;;  %v2158_v35 = vsel %vm2156_vm13, %v5760_v48, -inf  ;;  %v2157_v63 = vsel %vm2156_vm13, %v8241_v8, -inf  ;;  %v8269_v8 = vld [vmem:[#allocation51_spill] sm:$0xff] }
 0x3c4   : > { %4400 = vmatmul.msk.f32.gmra.mxu2 %vm8114_vm12, %v1713_v10 }
 0x3c7   : > { %v1444_v14 = vpop.f32.mrf.mxu1  ;;  %v6537_v15 = vpop.f32.mrf.mxu2 }
 0x3c8   : > { %v1445_v34 = vadd.f32 %v6066_v38, %v1444_v14  ;;  %v8242_v14 = vld [vmem:[#allocation20_spill] sm:$0xff] }
 0x3c9   : > { %v2160_v23 = vsel %vm2156_vm13, %v8242_v14, -inf  ;;  %v8267_v14 = vld [vmem:[#allocation49_spill] sm:$0xff] }
 0x3ca   : > { %v1607_v56 = vsel %vm8114_vm12, %v1445_v34, 0.0  ;;  %v1714_v26 = vmul.f32 %v6298_v44, %v1445_v34  ;;  %v2159_v34 = vmax.f32 %v2157_v63, %v2158_v35  ;;  %v8250_v35 = vld [vmem:[#allocation36_spill] sm:$0xff] }
 0x3cb   : > { %v1608_v28 = vadd.f32 %v1607_v56, %v1606_v24  ;;  %v8244_v24 = vld [vmem:[#allocation21_spill] sm:$0xff]  ;;  %v8245_v56 = vld [vmem:[#allocation35_spill] sm:$0xff]  ;;  %v2202_v63 = vsel %vm2156_vm13, %v8250_v35, -inf }
 0x3cc   : > { %4401 = vmatmul.msk.f32.gmra.mxu2 %vm8114_vm12, %v1714_v26  ;;  %v2162_v50 = vsel %vm2156_vm13, %v8244_v24, -inf  ;;  %v2200_v26 = vsel %vm2156_vm13, %v8245_v56, -inf }
 0x3cd   : > { %v1609_v19 = vrot.slane %v1608_v28, 4 }
 0x3cf   : > { %v1610_v43 = vadd.f32 %v1609_v19, %v1608_v28  ;;  %v6550_v38 = vpop.f32.mrf.mxu2  ;;  %v2161_v28 = vmax.f32 %v2159_v34, %v2160_v23  ;;  %v8246_v19 = vld [vmem:[#allocation26_spill] sm:$0xff]  ;;  %v2183_v23 = vsel %vm2156_vm13, %v8251_v29, -inf }
 0x3d1   : > { %v1611_v54 = vrot.slane %v1610_v43, 2  ;;  %v2163_v33 = vmax.f32 %v2161_v28, %v2162_v50  ;;  %v2168_v50 = vsel %vm2156_vm13, %v8256_v0, -inf }
 0x3d3   : > { %v1612_v51 = vadd.f32 %v1611_v54, %v1610_v43  ;;  %v2178_v43 = vsel %vm2156_vm13, %v8246_v19, -inf  ;;  %v8247_v54 = vld [vmem:[#allocation28_spill] sm:$0xff] }
 0x3d5   : > { %v1613_v53 = vrot.slane %v1612_v51, 1 }
 0x3d7   : > { %v1614_v30 = vadd.f32 %v1613_v53, %v1612_v51  ;;  %v6552_v1 = vpop.f32.mrf.mxu2  ;;  %v2181_v51 = vsel %vm2156_vm13, %v8247_v54, -inf  ;;  %v8248_v53 = vld [vmem:[#allocation22_spill] sm:$0xff] }
 0x3d8   : > { %8230 = vst [vmem:[#allocation114_spill] sm:$0xff] %v6552_v1 }
 0x3d9   : > { %v1622_v10 = vmul.f32 %v1614_v30, %v5384_v22  ;;  %v2164_v30 = vsel %vm2156_vm13, %v8248_v53, -inf  ;;  %v8257_v22 = vld [vmem:[#allocation38_spill] sm:$0xff] }
 0x3db   : > { %v2130_v44 = vsel %vm8115_vm11, %v1622_v10, %v6418_v2  ;;  %v2180_v10 = vmax.f32 %v2178_v43, %v2179_v62  ;;  %v2204_v62 = vsel %vm2156_vm13, %v8254_v57, -inf  ;;  %v2165_v43 = vmax.f32 %v2163_v33, %v2164_v30  ;;  %v8260_v30 = vld [vmem:[#allocation45_spill] sm:$0xff] }
 0x3dc   : > { %v2132_v17 = vmul.f32 %v2130_v44, %v5589_v5  ;;  %v8249_v44 = vld [vmem:[#allocation34_spill] sm:$0xff]  ;;  %v2208_v33 = vsel %vm2156_vm13, %v8259_v39, -inf  ;;  %v2221_v52 = vsel %vm2156_vm13, %v8260_v30, -inf }
 0x3dd   : > { %v2182_v31 = vmax.f32 %v2180_v10, %v2181_v51 }
 0x3de   : > { %4402 = vmatmul.msk.f32.vlgmr.msra.gmra.mxu3 %vm8114_vm12, %v2132_v17  ;;  %v2199_v17 = vsel %vm2156_vm13, %v8249_v44, -inf }
 0x3df   : > { %v6559_v46 = vpop.f32.mrf.mxu2  ;;  %v2201_v34 = vmax.f32 %v2199_v17, %v2200_v26  ;;  %v2184_v28 = vmax.f32 %v2182_v31, %v2183_v23  ;;  %v2206_v26 = vsel %vm2156_vm13, %v8257_v22, -inf  ;;  %v2167_v17 = vmax.f32 %v2165_v43, %v2166_v45  ;;  %v8262_v31 = vld [vmem:[#allocation32_spill] sm:$0xff] }
 0x3e0   : > { %8231 = vst [vmem:[#allocation115_spill] sm:$0xff] %v6559_v46  ;;  %v2189_v23 = vsel %vm2156_vm13, %v8262_v31, -inf  ;;  %v8263_v43 = vld [vmem:[#allocation40_spill] sm:$0xff] }
 0x3e1   : > { %v2203_v37 = vmax.f32 %v2201_v34, %v2202_v63  ;;  %v2186_v10 = vmax.f32 %v2184_v28, %v2185_v47  ;;  %v2169_v63 = vmax.f32 %v2167_v17, %v2168_v50  ;;  %v8261_v34 = vld [vmem:[#allocation25_spill] sm:$0xff]  ;;  %v2210_v41 = vsel %vm2156_vm13, %v8263_v43, -inf }
 0x3e2   : > { %v2170_v13 = vsel %vm2156_vm13, %v8261_v34, -inf }
 0x3e3   : > { %v2205_v51 = vmax.f32 %v2203_v37, %v2204_v62  ;;  %v2188_v45 = vmax.f32 %v2186_v10, %v2187_v32  ;;  %v8264_v37 = vld [vmem:[#allocation43_spill] sm:$0xff]  ;;  %v6633_v17 = vmax.f32 %v2169_v63, %v2170_v13  ;;  %v2242_v32 = vsel %vm2156_vm13, %v6150_v59, -inf  ;;  %v8272_v59 = vld [vmem:[#allocation53_spill] sm:$0xff] }
 0x3e4   : > { %v2220_v47 = vsel %vm2156_vm13, %v8264_v37, -inf  ;;  %v8265_v62 = vld [vmem:[#allocation47_spill] sm:$0xff] }
 0x3e5   : > { %v2207_v0 = vmax.f32 %v2205_v51, %v2206_v26  ;;  %v2223_v28 = vsel %vm2156_vm13, %v8265_v62, -inf  ;;  %v2222_v24 = vmax.f32 %v2220_v47, %v2221_v52  ;;  %v2190_v34 = vmax.f32 %v2188_v45, %v2189_v23  ;;  %v8268_v51 = vld [vmem:[#allocation33_spill] sm:$0xff]  ;;  %v8270_v52 = vld [vmem:[#allocation59_spill] sm:$0xff] }
 0x3e6   : > { %v2225_v26 = vsel %vm2156_vm13, %v8267_v14, -inf  ;;  %v2191_v10 = vsel %vm2156_vm13, %v8268_v51, -inf  ;;  %v8271_v13 = vld [vmem:[#allocation63_spill] sm:$0xff]  ;;  %v2263_v23 = vsel %vm2156_vm13, %v6455_v25, -inf  ;;  %v2284_v45 = vsel %vm2156_vm13, %v6559_v46, -inf }
 0x3e7   : > { %v6561_v9 = vpop.f32.mrf.mxu2  ;;  %v2209_v53 = vmax.f32 %v2207_v0, %v2208_v33  ;;  %v2224_v48 = vmax.f32 %v2222_v24, %v2223_v28  ;;  %v2227_v0 = vsel %vm2156_vm13, %v8269_v8, -inf  ;;  %v2241_v33 = vsel %vm2156_vm13, %v8270_v52, -inf }
 0x3e8   : > { %8232 = vst [vmem:[#allocation116_spill] sm:$0xff] %v6561_v9  ;;  %v2244_v63 = vsel %vm2156_vm13, %v8271_v13, -inf  ;;  %v2243_v24 = vmax.f32 %v2241_v33, %v2242_v32  ;;  %v2262_v8 = vsel %vm2156_vm13, %v6376_v27, -inf  ;;  %v2265_v51 = vsel %vm2156_vm13, %v6494_v3, -inf  ;;  %v8274_v32 = vld [vmem:[#allocation55_spill] sm:$0xff] }
 0x3e9   : > { %v2211_v43 = vmax.f32 %v2209_v53, %v2210_v41  ;;  %v2226_v47 = vmax.f32 %v2224_v48, %v2225_v26  ;;  %v2229_v41 = vsel %vm2156_vm13, %v8272_v59, -inf  ;;  %v8273_v53 = vld [vmem:[#allocation65_spill] sm:$0xff]  ;;  %v2283_v25 = vsel %vm2156_vm13, %v6552_v1, -inf }
 0x3ea   : > { %v2246_v28 = vsel %vm2156_vm13, %v8273_v53, -inf  ;;  %v2286_v46 = vsel %vm2156_vm13, %v6561_v9, -inf  ;;  %v2245_v26 = vmax.f32 %v2243_v24, %v2244_v63  ;;  %v2264_v13 = vmax.f32 %v2262_v8, %v2263_v23  ;;  %v8276_v8 = vld [vmem:[#allocation41_spill] sm:$0xff] }
 0x3eb   : > { %v2228_v48 = vmax.f32 %v2226_v47, %v2227_v0  ;;  %v2285_v59 = vmax.f32 %v2283_v25, %v2284_v45  ;;  %v2231_v33 = vsel %vm2156_vm13, %v8274_v32, -inf  ;;  %v2248_v53 = vsel %vm2156_vm13, %v6183_v61, -inf }
 0x3ec   : > { %v2267_v27 = vsel %vm2156_vm13, %v6503_v36, -inf  ;;  %v2247_v52 = vmax.f32 %v2245_v26, %v2246_v28  ;;  %v2266_v14 = vmax.f32 %v2264_v13, %v2265_v51  ;;  %v2212_v25 = vsel %vm2156_vm13, %v8276_v8, -inf  ;;  %v8277_v51 = vld [vmem:[#allocation57_spill] sm:$0xff] }
 0x3ed   : > { %v2230_v1 = vmax.f32 %v2228_v48, %v2229_v41  ;;  %v2287_v9 = vmax.f32 %v2285_v59, %v2286_v46  ;;  %v2250_v63 = vsel %vm2156_vm13, %v6206_v4, -inf  ;;  %v2269_v23 = vsel %vm2156_vm13, %v6509_v42, -inf }
 0x3ee   : > { %v2249_v24 = vmax.f32 %v2247_v52, %v2248_v53  ;;  %v2268_v41 = vmax.f32 %v2266_v14, %v2267_v27  ;;  %v2233_v59 = vsel %vm2156_vm13, %v8277_v51, -inf  ;;  %v2271_v46 = vsel %vm2156_vm13, %v6520_v55, -inf }
 0x3ef   : > { %v6563_v6 = vpop.f32.mrf.mxu2  ;;  %v2232_v47 = vmax.f32 %v2230_v1, %v2231_v33  ;;  %v2273_v27 = vsel %vm2156_vm13, %v6537_v15, -inf  ;;  %v2254_v53 = vsel %vm2156_vm13, %v6306_v40, -inf }
 0x3f0   : > { %8233 = vst [vmem:[#allocation117_spill] sm:$0xff] %v6563_v6  ;;  %v2288_v3 = vsel %vm2156_vm13, %v6563_v6, -inf  ;;  %v2251_v26 = vmax.f32 %v2249_v24, %v2250_v63  ;;  %v2270_v1 = vmax.f32 %v2268_v41, %v2269_v23  ;;  %v2213_v6 = vmax.f32 %v2211_v43, %v2212_v25 }
 0x3f1   : > { %v2289_v28 = vmax.f32 %v2287_v9, %v2288_v3 }
 0x3f2   : > { %v2272_v33 = vmax.f32 %v2270_v1, %v2271_v46  ;;  %v2234_v46 = vmax.f32 %v2232_v47, %v2233_v59 }
 0x3f7   : > { %v6565_v16 = vpop.f32.mrf.mxu2 }
 0x3f8   : > { %8234 = vst [vmem:[#allocation118_spill] sm:$0xff] %v6565_v16  ;;  %v2290_v45 = vsel %vm2156_vm13, %v6565_v16, -inf  ;;  %v2252_v16 = vsel %vm2156_vm13, %v6253_v20, -inf }
 0x3f9   : > { %v2291_v52 = vmax.f32 %v2289_v28, %v2290_v45  ;;  %v2253_v23 = vmax.f32 %v2251_v26, %v2252_v16  ;;  %v2275_v45 = vsel %vm2156_vm13, %v6550_v38, -inf }
 0x3ff   : > { %v6567_v7 = vpop.f32.mrf.mxu2 }
 0x400   : > { %8235 = vst [vmem:[#allocation119_spill] sm:$0xff] %v6567_v7  ;;  %v2292_v13 = vsel %vm2156_vm13, %v6567_v7, -inf }
 0x401   : > { %v2293_v63 = vmax.f32 %v2291_v52, %v2292_v13  ;;  %v2255_v13 = vmax.f32 %v2253_v23, %v2254_v53 }
 0x407   : > { %v6569_v21 = vpop.f32.mrf.mxu2 }
 0x408   : > { %8236 = vst [vmem:[#allocation120_spill] sm:$0xff] %v6569_v21  ;;  %v2294_v3 = vsel %vm2156_vm13, %v6569_v21, -inf }
 0x409   : > { %v2295_v21 = vmax.f32 %v2293_v63, %v2294_v3  ;;  %v2235_v3 = vrot.slane %v2234_v46, 4 }
 0x40b   : > { %v2236_v63 = vmax.f32 %v2234_v46, %v2235_v3 }
 0x40f   : > { %v6571_v60 = vpop.f32.mrf.mxu2 }
 0x410   : > { %8237 = vst [vmem:[#allocation121_spill] sm:$0xff] %v6571_v60  ;;  %v2296_v41 = vsel %vm2156_vm13, %v6571_v60, -inf }
 0x411   : > { %v2297_v26 = vmax.f32 %v2295_v21, %v2296_v41 }
 0x413   : > { %v2298_v47 = vrot.slane %v2297_v26, 4 }
 0x415   : > { %v2299_v41 = vmax.f32 %v2297_v26, %v2298_v47 }
 0x417   : > { %v6573_v18 = vpop.f32.mrf.mxu2 }
 0x418   : > { %8238 = vst [vmem:[#allocation122_spill] sm:$0xff] %v6573_v18  ;;  %v2304_v9 = vsel %vm2156_vm13, %v6573_v18, -inf  ;;  %v2274_v18 = vmax.f32 %v2272_v33, %v2273_v27  ;;  %v2214_v27 = vrot.slane %v2213_v6, 4 }
 0x41a   : > { %v2215_v33 = vmax.f32 %v2213_v6, %v2214_v27 }
 0x41f   : > { %v6575_v2 = vpop.f32.mrf.mxu2 }
 0x420   : > { %8239 = vst [vmem:[#allocation123_spill] sm:$0xff] %v6575_v2  ;;  %v2305_v48 = vsel %vm2156_vm13, %v6575_v2, -inf  ;;  %v2192_v2 = vmax.f32 %v2190_v34, %v2191_v10 }
 0x421   : > { %v2306_v24 = vmax.f32 %v2304_v9, %v2305_v48  ;;  %v2276_v48 = vmax.f32 %v2274_v18, %v2275_v45  ;;  %v2172_v9 = vrot.slane %v6633_v17, 4 }
 0x422   : > { %v2193_v34 = vrot.slane %v2192_v2, 4 }
 0x423   : > { %v2277_v25 = vrot.slane %v2276_v48, 4  ;;  %v2173_v18 = vmax.f32 %v6633_v17, %v2172_v9 }
 0x424   : > { %v2194_v21 = vmax.f32 %v2192_v2, %v2193_v34  ;;  %v2300_v2 = vrot.slane %v2299_v41, 2 }
 0x425   : > { %v2278_v45 = vmax.f32 %v2276_v48, %v2277_v25 }
 0x427   : > { %v6577_v5 = vpop.f32.mrf.mxu2  ;;  %v2279_v17 = vrot.slane %v2278_v45, 2 }
 0x428   : > { %8240 = vst [vmem:[#allocation124_spill] sm:$0xff] %v6577_v5  ;;  %v2307_v14 = vsel %vm2156_vm13, %v6577_v5, -inf }
 0x429   : > { %v2308_v5 = vmax.f32 %v2306_v24, %v2307_v14  ;;  %v2256_v14 = vrot.slane %v2255_v13, 4  ;;  %v2280_v3 = vmax.f32 %v2278_v45, %v2279_v17 }
 0x42b   : > { %v2257_v24 = vmax.f32 %v2255_v13, %v2256_v14  ;;  %v2301_v14 = vmax.f32 %v2299_v41, %v2300_v2 }
 0x42f   : > { %v6603_v12 = vpop.f32.mrf.mxu2 }
 0x430   : > { %8252 = vst [vmem:[#allocation27_spill] sm:$0xff] %v6603_v12  ;;  %v2309_v28 = vsel %vm2156_vm13, %v6603_v12, -inf }
 0x431   : > { %v2310_v1 = vmax.f32 %v2308_v5, %v2309_v28 }
 0x437   : > { %v6631_v50 = vpop.f32.mrf.mxu2 }
 0x438   : > { %8266 = vst [vmem:[#allocation35_spill] sm:$0xff] %v6631_v50  ;;  %v2311_v16 = vsel %vm2156_vm13, %v6631_v50, -inf }
 0x439   : > { %v2312_v10 = vmax.f32 %v2310_v1, %v2311_v16  ;;  %v2174_v16 = vrot.slane %v2173_v18, 2  ;;  %v2195_v1 = vrot.slane %v2194_v21, 2 }
 0x43b   : > { %v2175_v34 = vmax.f32 %v2173_v18, %v2174_v16 }
 0x43d   : > { %v2176_v26 = vrot.slane %v2175_v34, 1 }
 0x43f   : > { %v6671_v0 = vpop.f32.mrf.mxu2  ;;  %v2177_v12 = vmax.f32 %v2175_v34, %v2176_v26 }
 0x440   : > { %8275 = vst [vmem:[#allocation26_spill] sm:$0xff] %v6671_v0  ;;  %v2313_v52 = vsel %vm2156_vm13, %v6671_v0, -inf  ;;  %v2216_v0 = vrot.slane %v2215_v33, 2 }
 0x441   : > { %v2314_v59 = vmax.f32 %v2312_v10, %v2313_v52  ;;  %v2237_v52 = vrot.slane %v2236_v63, 2  ;;  %v2258_v10 = vrot.slane %v2257_v24, 2 }
 0x442   : > { %v2217_v46 = vmax.f32 %v2215_v33, %v2216_v0  ;;  %v3376_v0 = vld [vmem:[%s7945_s10] sm:$0xf] }
 0x443   : > { %v2238_v13 = vmax.f32 %v2236_v63, %v2237_v52  ;;  %v2259_v27 = vmax.f32 %v2257_v24, %v2258_v10  ;;  %4467 = vmatpush.msk.msrb.mxu3 %vm3569_vm14, %v3376_v0  ;;  %4532 = vmatpush.msk.msrb.mxu1 %vm3569_vm14, %v3376_v0 }
 0x444   : > { %v2218_v47 = vrot.slane %v2217_v46, 1 }
 0x447   : > { %v6707_v7 = vpop.f32.mrf.mxu2 }
 0x448   : > { %8278 = vst [vmem:[#allocation28_spill] sm:$0xff] %v6707_v7  ;;  %v2315_v43 = vsel %vm2156_vm13, %v6707_v7, -inf }
 0x449   : > { %v2316_v5 = vmax.f32 %v2314_v59, %v2315_v43  ;;  %v2196_v43 = vmax.f32 %v2194_v21, %v2195_v1  ;;  %v2239_v59 = vrot.slane %v2238_v13, 1 }
 0x44b   : > { %v2197_v25 = vrot.slane %v2196_v43, 1  ;;  %v2240_v18 = vmax.f32 %v2238_v13, %v2239_v59 }
 0x44d   : > { %v2198_v60 = vmax.f32 %v2196_v43, %v2197_v25 }
 0x44f   : > { %v6717_v53 = vpop.f32.mrf.mxu2 }
 0x450   : > { %8279 = vst [vmem:[#allocation34_spill] sm:$0xff] %v6717_v53  ;;  %v2317_v23 = vsel %vm2156_vm13, %v6717_v53, -inf  ;;  %v2302_v53 = vrot.slane %v2301_v14, 1 }
 0x451   : > { %v2318_v28 = vmax.f32 %v2316_v5, %v2317_v23  ;;  %v2260_v5 = vrot.slane %v2259_v27, 1  ;;  %v2281_v23 = vrot.slane %v2280_v3, 1 }
 0x452   : > { %v2303_v63 = vmax.f32 %v2301_v14, %v2302_v53 }
 0x453   : > { %v2319_v7 = vrot.slane %v2318_v28, 4  ;;  %v2261_v21 = vmax.f32 %v2259_v27, %v2260_v5  ;;  %v2282_v33 = vmax.f32 %v2280_v3, %v2281_v23 }
 0x455   : > { %v2320_v9 = vmax.f32 %v2318_v28, %v2319_v7  ;;  %v2219_v7 = vmax.f32 %v2217_v46, %v2218_v47 }
 0x457   : > { %v2321_v6 = vrot.slane %v2320_v9, 2 }
 0x459   : > { %v2322_v48 = vmax.f32 %v2320_v9, %v2321_v6 }
 0x45b   : > { %v2323_v50 = vrot.slane %v2322_v48, 1 }
 0x45d   : > { %v2324_v24 = vmax.f32 %v2322_v48, %v2323_v50 }
 0x461   : > { %v6724_v45 = vpop.f32.mrf.mxu3 }
 0x462   : > { %v2326_v41 = vrot.slane %v6724_v45, 1  ;;  %v2327_v28 = vrot.slane %v6724_v45, 2  ;;  %v2328_v16 = vrot.slane %v6724_v45, 3  ;;  %v2329_v1 = vrot.slane %v6724_v45, 4 }
 0x463   : > { %v2330_v52 = vrot.slane %v6724_v45, 5  ;;  %v2331_v10 = vrot.slane %v6724_v45, 6  ;;  %v2332_v17 = vrot.slane %v6724_v45, 7  ;;  %v2341_v50 = vmax.f32 %v2177_v12, %v6724_v45 }
 0x464   : > { %v2342_v53 = vmax.f32 %v2198_v60, %v2326_v41  ;;  %v6734_v2 = vmax.f32 %v2219_v7, %v2327_v28  ;;  %v6736_v9 = vmax.f32 %v2240_v18, %v2328_v16  ;;  %v6738_v34 = vmax.f32 %v2261_v21, %v2329_v1  ;;  %v8282_v16 = vld [vmem:[#allocation61_spill] sm:$0xff] }
 0x465   : > { %v6740_v43 = vmax.f32 %v2282_v33, %v2330_v52  ;;  %v6742_v6 = vmax.f32 %v2303_v63, %v2331_v10  ;;  %v6744_v46 = vmax.f32 %v2324_v24, %v2332_v17  ;;  %v6751_v3 = vperm.slane %v2341_v50, 0  ;;  %v8280_v63 = vld [vmem:[#allocation49_spill] sm:$0xff]  ;;  %v8284_v10 = vld [vmem:[#allocation96_spill] sm:$0xff] }
 0x466   : > { %v6746_v13 = vperm.slane %v2342_v53, 0  ;;  %v6749_v27 = vperm.slane %v6734_v2, 0  ;;  %v6754_v12 = vperm.slane %v6736_v9, 0  ;;  %v6757_v60 = vperm.slane %v6738_v34, 0 }
 0x467   : > { %v6760_v14 = vperm.slane %v6740_v43, 0  ;;  %v6763_v48 = vperm.slane %v6742_v6, 0  ;;  %v6766_v26 = vperm.slane %v6744_v46, 0  ;;  %v2557_v7 = vrot.slane %v2342_v53, 7  ;;  %v8285_v53 = vld [vmem:[#allocation108_spill] sm:$0xff] }
 0x468   : > { %v2365_v25 = vsub.f32 %v8246_v19, %v6746_v13  ;;  %v2366_v47 = vsub.f32 %v8243_v58, %v6746_v13  ;;  %v2367_v59 = vsub.f32 %v8247_v54, %v6746_v13  ;;  %v2368_v5 = vsub.f32 %v8251_v29, %v6746_v13 }
 0x469   : > { %v2369_v23 = vsub.f32 %v8255_v11, %v6746_v13  ;;  %v2370_v18 = vsub.f32 %v8258_v49, %v6746_v13  ;;  %v2373_v19 = vsub.f32 %v8249_v44, %v6749_v27  ;;  %v2374_v58 = vsub.f32 %v8245_v56, %v6749_v27  ;;  %v8328_v49 = vld [vmem:[#allocation122_spill] sm:$0xff] }
 0x46a   : > { %v2375_v54 = vsub.f32 %v8250_v35, %v6749_v27  ;;  %v2376_v29 = vsub.f32 %v8254_v57, %v6749_v27  ;;  %v2377_v11 = vsub.f32 %v8257_v22, %v6749_v27  ;;  %v2381_v0 = vsub.f32 %v8264_v37, %v6754_v12  ;;  %v8281_v22 = vld [vmem:[#allocation59_spill] sm:$0xff] }
 0x46b   : > { %v2382_v44 = vsub.f32 %v8260_v30, %v6754_v12  ;;  %v2437_v33 = vmul.f32 1.442695, %v2365_v25  ;;  %v2439_v56 = vmul.f32 1.442695, %v2366_v47  ;;  %v2383_v35 = vsub.f32 %v8265_v62, %v6754_v12  ;;  %v8283_v30 = vld [vmem:[#allocation63_spill] sm:$0xff] }
 0x46c   : > { %v2384_v57 = vsub.f32 %v8280_v63, %v6754_v12  ;;  %v2441_v24 = vmul.f32 1.442695, %v2367_v59  ;;  %v2443_v41 = vmul.f32 1.442695, %v2368_v5  ;;  %v2389_v28 = vsub.f32 %v8281_v22, %v6757_v60 }
 0x46d   : > { %v2390_v1 = vsub.f32 %v8282_v16, %v6757_v60  ;;  %4638 = vpow2.f32 %v2437_v33  ;;  %v2445_v37 = vmul.f32 1.442695, %v2369_v23  ;;  %v2391_v52 = vsub.f32 %v8283_v30, %v6757_v60 }
 0x46e   : > { %v2397_v17 = vsub.f32 %v8284_v10, %v6760_v14  ;;  %4640 = vpow2.f32 %v2439_v56  ;;  %v2447_v62 = vmul.f32 1.442695, %v2370_v18  ;;  %v2398_v25 = vsub.f32 %v8285_v53, %v6760_v14 }
 0x46f   : > { %4642 = vpow2.f32 %v2441_v24  ;;  %v2453_v47 = vmul.f32 1.442695, %v2373_v19  ;;  %v2558_v59 = vsel %vm1001_vm5, %v2557_v7, %v2341_v50  ;;  %v2455_v5 = vmul.f32 1.442695, %v2374_v58 }
 0x470   : > { %4644 = vpow2.f32 %v2443_v41  ;;  %v2457_v63 = vmul.f32 1.442695, %v2375_v54  ;;  %v2459_v33 = vmul.f32 1.442695, %v2376_v29  ;;  %v2461_v23 = vmul.f32 1.442695, %v2377_v11 }
 0x471   : > { %4646 = vpow2.f32 %v2445_v37  ;;  %v2469_v22 = vmul.f32 1.442695, %v2381_v0  ;;  %v2471_v16 = vmul.f32 1.442695, %v2382_v44  ;;  %v2473_v30 = vmul.f32 1.442695, %v2383_v35 }
 0x472   : > { %4648 = vpow2.f32 %v2447_v62  ;;  %v6813_v10 = vmul.f32 1.442695, %v2384_v57  ;;  %v2559_v18 = vrot.slane %v6734_v2, 6  ;;  %v2485_v19 = vmul.f32 1.442695, %v2389_v28  ;;  %v8289_v44 = vld [vmem:[#allocation18_spill] sm:$0xff] }
 0x473   : > { %v6816_v56 = vpop.eup %4638  ;;  %4650 = vpow2.f32 %v2453_v47  ;;  %v2487_v24 = vmul.f32 1.442695, %v2390_v1  ;;  %v2561_v50 = vrot.slane %v6736_v9, 5  ;;  %v2563_v54 = vrot.slane %v6738_v34, 4  ;;  %v8291_v34 = vld [vmem:[#allocation19_spill] sm:$0xff]  ;;  %v8294_v62 = vld [vmem:[#allocation21_spill] sm:$0xff] }
 0x474   : > { %8286 = vst [vmem:[#allocation36_spill] sm:$0xff] %v6816_v56  ;;  %v6819_v7 = vpop.eup %4640  ;;  %4652 = vpow2.f32 %v2455_v5  ;;  %v2560_v58 = vsel %vm1003_vm6, %v2559_v18, %v2558_v59  ;;  %v2565_v29 = vrot.slane %v6740_v43, 3  ;;  %v2567_v0 = vrot.slane %v6742_v6, 2  ;;  %v8293_v6 = vld [vmem:[#allocation20_spill] sm:$0xff] }
 0x475   : > { %8287 = vst [vmem:[#allocation29_spill] sm:$0xff] %v6819_v7  ;;  %v6824_v11 = vpop.eup %4642  ;;  %4654 = vpow2.f32 %v2457_v63  ;;  %v2562_v2 = vsel %vm1005_vm7, %v2561_v50, %v2560_v58  ;;  %v2357_v35 = vsub.f32 %v8289_v44, %v6751_v3  ;;  %v2569_v41 = vrot.slane %v6744_v46, 1  ;;  %v8296_v46 = vld [vmem:[#allocation22_spill] sm:$0xff]  ;;  %v8297_v63 = vld [vmem:[#allocation23_spill] sm:$0xff]  ;;  %v8299_v50 = vld [vmem:[#allocation24_spill] sm:$0xff] }
 0x476   : > { %8288 = vst [vmem:[#allocation37_spill] sm:$0xff] %v6824_v11  ;;  %v6830_v9 = vpop.eup %4644  ;;  %4656 = vpow2.f32 %v2459_v33  ;;  %v2564_v57 = vsel %vm1007_vm8, %v2563_v54, %v2562_v2  ;;  %v2358_v43 = vsub.f32 %v8291_v34, %v6751_v3  ;;  %v2359_v37 = vsub.f32 %v8293_v6, %v6751_v3 }
 0x477   : > { %8290 = vst [vmem:[#allocation30_spill] sm:$0xff] %v6830_v9  ;;  %v6836_v28 = vpop.eup %4646  ;;  %4658 = vpow2.f32 %v2461_v23  ;;  %v2566_v1 = vsel %vm1009_vm9, %v2565_v29, %v2564_v57  ;;  %v2360_v53 = vsub.f32 %v8294_v62, %v6751_v3  ;;  %v2361_v5 = vsub.f32 %v8296_v46, %v6751_v3 }
 0x478   : > { %8292 = vst [vmem:[#allocation38_spill] sm:$0xff] %v6836_v28  ;;  %v6843_v47 = vpop.eup %4648  ;;  %4660 = vpow2.f32 %v2469_v22  ;;  %v2568_v59 = vsel %vm1011_vm10, %v2567_v0, %v2566_v1  ;;  %v2362_v33 = vsub.f32 %v8297_v63, %v6751_v3  ;;  %v2363_v58 = vsub.f32 %v8299_v50, %v6751_v3  ;;  %v8301_v0 = vld [vmem:[#allocation25_spill] sm:$0xff] }
 0x479   : > { %8295 = vst [vmem:[#allocation31_spill] sm:$0xff] %v6843_v47  ;;  %v6850_v23 = vpop.eup %4650  ;;  %4662 = vpow2.f32 %v2471_v16  ;;  %v2570_v18 = vsel %vm8115_vm11, %v2569_v41, %v2568_v59  ;;  %v2421_v54 = vmul.f32 1.442695, %v2357_v35  ;;  %v6857_v22 = vmul.f32 1.442695, %v2391_v52  ;;  %v8310_v63 = vld [vmem:[#allocation53_spill] sm:$0xff] }
 0x47a   : > { %8298 = vst [vmem:[#allocation39_spill] sm:$0xff] %v6850_v23  ;;  %v6855_v29 = vpop.eup %4652  ;;  %4664 = vpow2.f32 %v2473_v30  ;;  %v2572_v2 = vsub.f32 %v6724_v45, %v2570_v18  ;;  %v2364_v44 = vsub.f32 %v8301_v0, %v6751_v3  ;;  %v6864_v16 = vmul.f32 1.442695, %v2397_v17 }
 0x47b   : > { %8300 = vst [vmem:[#allocation45_spill] sm:$0xff] %v6855_v29  ;;  %v6862_v57 = vpop.eup %4654  ;;  %4666 = vpow2.f32 %v2485_v19  ;;  %v6866_v41 = vmul.f32 1.442695, %v2398_v25  ;;  %v2423_v34 = vmul.f32 1.442695, %v2358_v43  ;;  %v8306_v25 = vld [vmem:[#allocation33_spill] sm:$0xff] }
 0x47c   : > { %8302 = vst [vmem:[#allocation32_spill] sm:$0xff] %v6862_v57  ;;  %v6868_v1 = vpop.eup %4656  ;;  %4668 = vpow2.f32 %v2487_v24  ;;  %v2573_v35 = vmul.f32 1.442695, %v2572_v2  ;;  %v2425_v30 = vmul.f32 1.442695, %v2359_v37  ;;  %v2372_v19 = vsub.f32 %v8306_v25, %v6746_v13  ;;  %v8307_v43 = vld [vmem:[#allocation40_spill] sm:$0xff] }
 0x47d   : > { %8303 = vst [vmem:[#allocation43_spill] sm:$0xff] %v6868_v1  ;;  %v2427_v52 = vmul.f32 1.442695, %v2360_v53  ;;  %v6870_v6 = vpop.eup %4658  ;;  %4670 = vpow2.f32 %v2421_v54  ;;  %v2429_v45 = vmul.f32 1.442695, %v2361_v5  ;;  %v2379_v46 = vsub.f32 %v8307_v43, %v6749_v27  ;;  %v8309_v53 = vld [vmem:[#allocation51_spill] sm:$0xff] }
 0x47e   : > { %8304 = vst [vmem:[#allocation47_spill] sm:$0xff] %v6870_v6  ;;  %v2431_v62 = vmul.f32 1.442695, %v2362_v33  ;;  %v2433_v3 = vmul.f32 1.442695, %v2363_v58  ;;  %v6872_v59 = vpop.eup %4660  ;;  %4672 = vpow2.f32 %v2573_v35  ;;  %v2380_v37 = vsub.f32 %v8276_v8, %v6749_v27  ;;  %v8312_v54 = vld [vmem:[#allocation65_spill] sm:$0xff] }
 0x47f   : > { %8305 = vst [vmem:[#allocation55_spill] sm:$0xff] %v6872_v59  ;;  %v2435_v17 = vmul.f32 1.442695, %v2364_v44  ;;  %v6878_v24 = vpop.eup %4662  ;;  %4674 = vpow2.f32 %v2423_v34  ;;  %v2385_v5 = vsub.f32 %v8309_v53, %v6754_v12  ;;  %v8315_v25 = vld [vmem:[#allocation112_spill] sm:$0xff]  ;;  %v8318_v53 = vld [vmem:[#allocation114_spill] sm:$0xff]  ;;  %v8325_v58 = vld [vmem:[#allocation119_spill] sm:$0xff]  ;;  %v8333_v6 = vsub.f32 %v8259_v39, %v6749_v27 }
 0x480   : > { %8308 = vst [vmem:[#allocation41_spill] sm:$0xff] %v6878_v24  ;;  %v6886_v18 = vpop.eup %4664  ;;  %4676 = vpow2.f32 %v2425_v30  ;;  %v8321_v44 = vld [vmem:[#allocation116_spill] sm:$0xff]  ;;  %v8322_v30 = vld [vmem:[#allocation117_spill] sm:$0xff]  ;;  %v2465_v47 = vmul.f32 1.442695, %v2379_v46  ;;  %v8337_v46 = vld [vmem:[#allocation26_spill] sm:$0xff] }
 0x481   : > { %8311 = vst [vmem:[#allocation57_spill] sm:$0xff] %v6886_v18  ;;  %v6894_v0 = vpop.eup %4666  ;;  %4678 = vpow2.f32 %v2427_v52  ;;  %v8327_v33 = vld [vmem:[#allocation121_spill] sm:$0xff]  ;;  %v2463_v1 = vmul.f32 1.442695, %v8333_v6  ;;  %v2477_v27 = vmul.f32 1.442695, %v2385_v5  ;;  %v8340_v5 = vsub.f32 %v8274_v32, %v6754_v12 }
 0x482   : > { %8313 = vst [vmem:[#allocation49_spill] sm:$0xff] %v6894_v0  ;;  %v6902_v35 = vpop.eup %4668  ;;  %4680 = vpow2.f32 %v2429_v45  ;;  %v8319_v45 = vld [vmem:[#allocation115_spill] sm:$0xff] }
 0x483   : > { %8314 = vst [vmem:[#allocation59_spill] sm:$0xff] %v6902_v35  ;;  %v6912_v8 = vpop.eup %4670  ;;  %4682 = vpow2.f32 %v2431_v62  ;;  %v8323_v62 = vld [vmem:[#allocation118_spill] sm:$0xff]  ;;  %v8331_v35 = vsub.f32 %v8262_v31, %v6746_v13  ;;  %v2467_v13 = vmul.f32 1.442695, %v2380_v37  ;;  %v8338_v37 = vsub.f32 %v8310_v63, %v6754_v12 }
 0x484   : > { %8316 = vst [vmem:[#allocation61_spill] sm:$0xff] %v6912_v8  ;;  %v6920_v2 = vpop.eup %4672  ;;  %v2575_v52 = vsel %vm2156_vm13, %v6912_v8, 0.0  ;;  %4684 = vpow2.f32 %v2433_v3  ;;  %v8326_v3 = vld [vmem:[#allocation120_spill] sm:$0xff] }
 0x485   : > { %8317 = vst [vmem:[#allocation63_spill] sm:$0xff] %v6920_v2  ;;  %v6928_v50 = vpop.eup %4674  ;;  %4686 = vpow2.f32 %v2435_v17  ;;  %v8329_v17 = vld [vmem:[#allocation123_spill] sm:$0xff]  ;;  %v8330_v8 = vld [vmem:[#allocation124_spill] sm:$0xff]  ;;  %v2449_v2 = vmul.f32 1.442695, %v8331_v35 }
 0x486   : > { %8320 = vst [vmem:[#allocation96_spill] sm:$0xff] %v6928_v50  ;;  %v6936_v21 = vpop.eup %4676  ;;  %v2576_v43 = vsel %vm2156_vm13, %v6928_v50, 0.0  ;;  %4688 = vpow2.f32 %v6813_v10 }
 0x487   : > { %8324 = vst [vmem:[#allocation108_spill] sm:$0xff] %v6936_v21  ;;  %v6944_v0 = vpop.eup %4678  ;;  %v2577_v34 = vadd.f32 %v2576_v43, %v2575_v52  ;;  %v2578_v50 = vsel %vm2156_vm13, %v6936_v21, 0.0  ;;  %v2451_v43 = vmul.f32 1.442695, %v2372_v19  ;;  %v8334_v21 = vld [vmem:[#allocation27_spill] sm:$0xff]  ;;  %4690 = vpow2.f32 %v2449_v2 }
 0x488   : > { %v6959_v52 = vpop.eup %4680  ;;  %v2580_v59 = vsel %vm2156_vm13, %v6944_v0, 0.0  ;;  %v2479_v2 = vmul.f32 1.442695, %v8338_v37 }
 0x489   : > { %8332 = vst [vmem:[#allocation18_spill] sm:$0xff] %v6959_v52  ;;  %v2579_v18 = vadd.f32 %v2578_v50, %v2577_v34  ;;  %v6965_v24 = vpop.eup %4682  ;;  %v8335_v34 = vld [vmem:[#allocation35_spill] sm:$0xff]  ;;  %4692 = vpow2.f32 %v2451_v43  ;;  %v2582_v10 = vsel %vm2156_vm13, %v6959_v52, 0.0  ;;  %v2481_v43 = vmul.f32 1.442695, %v8340_v5  ;;  %v8341_v52 = vld [vmem:[#allocation34_spill] sm:$0xff] }
 0x48a   : > { %v6971_v19 = vpop.eup %4684  ;;  %4694 = vpow2.f32 %v2463_v1  ;;  %v2584_v39 = vsel %vm2156_vm13, %v6965_v24, 0.0  ;;  %v8342_v1 = vsub.f32 %v8277_v51, %v6754_v12  ;;  %v8346_v51 = vsub.f32 %v6183_v61, %v6757_v60 }
 0x48b   : > { %v2581_v50 = vadd.f32 %v2580_v59, %v2579_v18  ;;  %v6975_v6 = vpop.eup %4686  ;;  %v8339_v59 = vld [vmem:[#allocation28_spill] sm:$0xff]  ;;  %4696 = vpow2.f32 %v2465_v47  ;;  %v2586_v47 = vsel %vm2156_vm13, %v6971_v19, 0.0  ;;  %v8352_v61 = vsub.f32 %v8315_v25, %v6760_v14 }
 0x48c   : > { %8336 = vst [vmem:[#allocation19_spill] sm:$0xff] %v6975_v6  ;;  %4698 = vpow2.f32 %v2467_v13  ;;  %v2483_v63 = vmul.f32 1.442695, %v8342_v1  ;;  %v2588_v32 = vsel %vm2156_vm13, %v6975_v6, 0.0  ;;  %v8345_v13 = vsub.f32 %v8312_v54, %v6757_v60 }
 0x48d   : > { %v2583_v31 = vadd.f32 %v2582_v10, %v2581_v50  ;;  %v6996_v50 = vpop.eup %4688  ;;  %4700 = vpow2.f32 %v2477_v27  ;;  %v2493_v12 = vmul.f32 1.442695, %v8346_v51  ;;  %v8349_v27 = vsub.f32 %v6253_v20, %v6757_v60 }
 0x48e   : > { %8343 = vst [vmem:[#allocation20_spill] sm:$0xff] %v6996_v50  ;;  %v7002_v37 = vpop.eup %4690  ;;  %4702 = vpow2.f32 %v2479_v2  ;;  %v2491_v5 = vmul.f32 1.442695, %v8345_v13  ;;  %v8350_v54 = vsub.f32 %v6306_v40, %v6757_v60  ;;  %v8353_v51 = vsub.f32 %v6503_v36, %v6760_v14 }
 0x48f   : > { %v2585_v10 = vadd.f32 %v2584_v39, %v2583_v31  ;;  %8344 = vst [vmem:[#allocation21_spill] sm:$0xff] %v7002_v37  ;;  %v8347_v31 = vsub.f32 %v6206_v4, %v6757_v60  ;;  %v7013_v1 = vpop.eup %4692  ;;  %4704 = vpow2.f32 %v2481_v43  ;;  %v2497_v2 = vmul.f32 1.442695, %v8349_v27 }
 0x490   : > { %8348 = vst [vmem:[#allocation22_spill] sm:$0xff] %v7013_v1  ;;  %v2499_v13 = vmul.f32 1.442695, %v8350_v54  ;;  %v7021_v18 = vpop.eup %4694  ;;  %4706 = vpow2.f32 %v2483_v63  ;;  %v2505_v4 = vmul.f32 1.442695, %v8352_v61  ;;  %v8354_v43 = vsub.f32 %v6509_v42, %v6760_v14 }
 0x491   : > { %v2495_v39 = vmul.f32 1.442695, %v8347_v31  ;;  %v2587_v35 = vadd.f32 %v2586_v47, %v2585_v10  ;;  %8351 = vst [vmem:[#allocation23_spill] sm:$0xff] %v7021_v18  ;;  %v2507_v10 = vmul.f32 1.442695, %v8353_v51  ;;  %v7032_v47 = vpop.eup %4696  ;;  %4708 = vpow2.f32 %v6857_v22 }
 0x492   : > { %v2509_v20 = vmul.f32 1.442695, %v8354_v43  ;;  %8355 = vst [vmem:[#allocation24_spill] sm:$0xff] %v7032_v47  ;;  %v8356_v40 = vsub.f32 %v6520_v55, %v6760_v14  ;;  %v8357_v25 = vsub.f32 %v6537_v15, %v6760_v14  ;;  %v7041_v27 = vpop.eup %4698  ;;  %4710 = vpow2.f32 %v2491_v5 }
 0x493   : > { %v2589_v31 = vadd.f32 %v2588_v32, %v2587_v35  ;;  %8358 = vst [vmem:[#allocation25_spill] sm:$0xff] %v7041_v27  ;;  %v8359_v36 = vsub.f32 %v6550_v38, %v6760_v14  ;;  %v8360_v35 = vsub.f32 %v8318_v53, %v6763_v48  ;;  %v8361_v55 = vsub.f32 %v8319_v45, %v6763_v48  ;;  %v7056_v54 = vpop.eup %4700 }
 0x494   : > { %v2511_v60 = vmul.f32 1.442695, %v8356_v40  ;;  %v2513_v63 = vmul.f32 1.442695, %v8357_v25  ;;  %8362 = vst [vmem:[#allocation33_spill] sm:$0xff] %v7056_v54  ;;  %4712 = vpow2.f32 %v2493_v12  ;;  %v8363_v5 = vsub.f32 %v8321_v44, %v6763_v48  ;;  %v7068_v53 = vpop.eup %4702 }
 0x495   : > { %v2515_v42 = vmul.f32 1.442695, %v8359_v36  ;;  %v7049_v32 = vmul.f32 1.442695, %v8360_v35  ;;  %v7054_v22 = vmul.f32 1.442695, %v8361_v55  ;;  %v8364_v38 = vsub.f32 %v8322_v30, %v6763_v48  ;;  %v7085_v30 = vpop.eup %4704 }
 0x496   : > { %v2590_v15 = vrot.slane %v2589_v31, 4  ;;  %v7061_v61 = vmul.f32 1.442695, %v8363_v5  ;;  %8365 = vst [vmem:[#allocation40_spill] sm:$0xff] %v7068_v53  ;;  %4714 = vpow2.f32 %v2495_v39  ;;  %v8366_v45 = vsub.f32 %v8323_v62, %v6763_v48  ;;  %v7097_v35 = vpop.eup %4706 }
 0x497   : > { %v7066_v14 = vmul.f32 1.442695, %v8364_v38  ;;  %v8367_v12 = vsub.f32 %v8325_v58, %v6763_v48  ;;  %v8368_v44 = vsub.f32 %v8326_v3, %v6763_v48  ;;  %8369 = vst [vmem:[#allocation51_spill] sm:$0xff] %v7085_v30  ;;  %4716 = vpow2.f32 %v2497_v2 }
 0x498   : > { %v7073_v51 = vmul.f32 1.442695, %v8366_v45  ;;  %v2591_v25 = vadd.f32 %v2590_v15, %v2589_v31  ;;  %v8370_v39 = vsub.f32 %v8327_v33, %v6763_v48  ;;  %v8371_v36 = vsub.f32 %v8328_v49, %v6766_v26  ;;  %8372 = vst [vmem:[#allocation53_spill] sm:$0xff] %v7097_v35  ;;  %v7108_v33 = vpop.eup %4708 }
 0x499   : > { %v7078_v43 = vmul.f32 1.442695, %v8367_v12  ;;  %v7083_v40 = vmul.f32 1.442695, %v8368_v44  ;;  %4718 = vpow2.f32 %v2499_v13  ;;  %v8373_v3 = vsub.f32 %v8329_v17, %v6766_v26  ;;  %8374 = vst [vmem:[#allocation65_spill] sm:$0xff] %v7108_v33  ;;  %v7116_v17 = vpop.eup %4710 }
 0x49a   : > { %v7090_v62 = vmul.f32 1.442695, %v8370_v39  ;;  %v7095_v58 = vmul.f32 1.442695, %v8371_v36  ;;  %v2596_v2 = vsel %vm2156_vm13, %v6816_v56, 0.0  ;;  %v2597_v48 = vsel %vm2156_vm13, %v6819_v7, 0.0 }
 0x49b   : > { %v7102_v55 = vmul.f32 1.442695, %v8373_v3  ;;  %v2592_v31 = vrot.slane %v2591_v25, 2  ;;  %4720 = vpow2.f32 %v6864_v16  ;;  %v8375_v49 = vsub.f32 %v8330_v8, %v6766_v26  ;;  %8376 = vst [vmem:[#allocation112_spill] sm:$0xff] %v7116_v17  ;;  %v7131_v8 = vpop.eup %4712 }
 0x49c   : > { %v2598_v15 = vadd.f32 %v2597_v48, %v2596_v2  ;;  %4722 = vpow2.f32 %v6866_v41  ;;  %v8377_v5 = vsub.f32 %v8334_v21, %v6766_v26  ;;  %v8378_v45 = vsub.f32 %v8335_v34, %v6766_v26  ;;  %8379 = vst [vmem:[#allocation114_spill] sm:$0xff] %v7131_v8  ;;  %v7138_v36 = vpop.eup %4714 }
 0x49d   : > { %v7114_v13 = vmul.f32 1.442695, %v8375_v49  ;;  %v2599_v16 = vsel %vm2156_vm13, %v6824_v11, 0.0  ;;  %v2593_v44 = vadd.f32 %v2592_v31, %v2591_v25  ;;  %4724 = vpow2.f32 %v2505_v4  ;;  %v7146_v25 = vpop.eup %4716 }
 0x49e   : > { %v7122_v38 = vmul.f32 1.442695, %v8377_v5  ;;  %v7127_v12 = vmul.f32 1.442695, %v8378_v45  ;;  %v8380_v41 = vsub.f32 %v8337_v46, %v6766_v26  ;;  %v2600_v21 = vadd.f32 %v2599_v16, %v2598_v15 }
 0x49f   : > { %4726 = vpow2.f32 %v2507_v10  ;;  %v2601_v34 = vsel %vm2156_vm13, %v6830_v9, 0.0  ;;  %v2617_v3 = vsel %vm2156_vm13, %v6850_v23, 0.0  ;;  %v2618_v2 = vsel %vm2156_vm13, %v6855_v29, 0.0  ;;  %v7148_v31 = vpop.eup %4718 }
 0x4a0   : > { %v7136_v39 = vmul.f32 1.442695, %v8380_v41  ;;  %v2594_v4 = vrot.slane %v2593_v44, 1  ;;  %4728 = vpow2.f32 %v2509_v20  ;;  %v2602_v46 = vadd.f32 %v2601_v34, %v2600_v21  ;;  %v8383_v34 = vld [vmem:[#allocation31_spill] sm:$0xff] }
 0x4a1   : > { %v2619_v48 = vadd.f32 %v2618_v2, %v2617_v3  ;;  %4730 = vpow2.f32 %v2511_v60  ;;  %v8381_v10 = vsub.f32 %v8339_v59, %v6766_v26  ;;  %v2603_v15 = vsel %vm2156_vm13, %v6836_v28, 0.0  ;;  %v7159_v45 = vpop.eup %4720  ;;  %v8384_v2 = vld [vmem:[#allocation43_spill] sm:$0xff] }
 0x4a2   : > { %v2620_v5 = vsel %vm2156_vm13, %v6862_v57, 0.0  ;;  %v2595_v16 = vadd.f32 %v2594_v4, %v2593_v44  ;;  %4732 = vpow2.f32 %v2513_v63  ;;  %v2604_v20 = vadd.f32 %v2603_v15, %v2602_v46  ;;  %v7161_v21 = vpop.eup %4722  ;;  %v8385_v44 = vld [vmem:[#allocation63_spill] sm:$0xff] }
 0x4a3   : > { %v7153_v49 = vmul.f32 1.442695, %v8381_v10  ;;  %v2621_v41 = vadd.f32 %v2620_v5, %v2619_v48  ;;  %4734 = vpow2.f32 %v2515_v42  ;;  %v8382_v59 = vsub.f32 %v8341_v52, %v6766_v26  ;;  %v7172_v57 = vpop.eup %4724  ;;  %v8386_v48 = vld [vmem:[#allocation55_spill] sm:$0xff]  ;;  %v8387_v5 = vld [vmem:[#allocation41_spill] sm:$0xff] }
 0x4a4   : > { %v2605_v3 = vsel %vm2156_vm13, %v8383_v34, 0.0  ;;  %v2622_v10 = vsel %vm2156_vm13, %v8384_v2, 0.0  ;;  %v7175_v63 = vadd.f32 %v8385_v44, %v2595_v16  ;;  %v2638_v42 = vsel %vm2156_vm13, %v8386_v48, 0.0 }
 0x4a5   : > { %v7166_v60 = vmul.f32 1.442695, %v8382_v59  ;;  %v2606_v4 = vadd.f32 %v2605_v3, %v2604_v20  ;;  %v2623_v46 = vadd.f32 %v2622_v10, %v2621_v41  ;;  %v7179_v15 = vpop.eup %4726  ;;  %4736 = vpow2.f32 %v7049_v32  ;;  %v8388_v41 = vld [vmem:[#allocation47_spill] sm:$0xff] }
 0x4a6   : > { %v2607_v26 = vsel %vm2156_vm13, %v7002_v37, 0.0  ;;  %v2609_v52 = vsel %vm2156_vm13, %v7013_v1, 0.0  ;;  %v2639_v59 = vsel %vm2156_vm13, %v8387_v5, 0.0  ;;  %v7188_v16 = vpop.eup %4728  ;;  %4738 = vrcp.f32 %v7175_v63  ;;  %v8389_v1 = vld [vmem:[#allocation57_spill] sm:$0xff] }
 0x4a7   : > { %v2778_v20 = vand.u32 2147483648, %v7175_v63  ;;  %v2624_v3 = vsel %vm2156_vm13, %v8388_v41, 0.0  ;;  %v2626_v32 = vsel %vm2156_vm13, %v7021_v18, 0.0  ;;  %v7196_v10 = vpop.eup %4730  ;;  %4740 = vpow2.f32 %v7054_v22 }
 0x4a8   : > { %v2608_v48 = vadd.f32 %v2607_v26, %v2606_v4  ;;  %v2625_v2 = vadd.f32 %v2624_v3, %v2623_v46  ;;  %v2640_v29 = vadd.f32 %v2639_v59, %v2638_v42  ;;  %v7199_v5 = vpop.eup %4732  ;;  %4742 = vpow2.f32 %v7061_v61 }
 0x4a9   : > { %v2628_v23 = vsel %vm2156_vm13, %v7032_v47, 0.0  ;;  %v2630_v41 = vsel %vm2156_vm13, %v7041_v27, 0.0  ;;  %v2641_v18 = vsel %vm2156_vm13, %v8389_v1, 0.0  ;;  %v7208_v37 = vpop.eup %4734  ;;  %4744 = vpow2.f32 %v7066_v14 }
 0x4aa   : > { %v2610_v22 = vadd.f32 %v2609_v52, %v2608_v48  ;;  %v2627_v4 = vadd.f32 %v2626_v32, %v2625_v2  ;;  %v2642_v46 = vadd.f32 %v2641_v18, %v2640_v29  ;;  %v2776_v42 = vand.u32 2147483647, %v7175_v63  ;;  %v8390_v18 = vld [vmem:[#allocation49_spill] sm:$0xff]  ;;  %v8391_v2 = vld [vmem:[#allocation59_spill] sm:$0xff] }
 0x4ab   : > { %v2779_v26 = vor.u32 1.1754944e-38, %v2778_v20  ;;  %4746 = vpow2.f32 %v7073_v51  ;;  %v2643_v61 = vsel %vm2156_vm13, %v6996_v50, 0.0  ;;  %v7215_v59 = vpop.eup %4736  ;;  %vm2772_vm15 = vweird.f32 %v7175_v63 }
 0x4ac   : > { %4748 = vpow2.f32 %v7078_v43  ;;  %v2611_v3 = vrot.slane %v2610_v22, 4  ;;  %v2629_v1 = vadd.f32 %v2628_v23, %v2627_v4  ;;  %v2644_v14 = vadd.f32 %v2643_v61, %v2642_v46  ;;  %v4739_v48 = vpop.eup %4738 }
 0x4ad   : > { %4750 = vpow2.f32 %v7083_v40  ;;  %v2645_v29 = vsel %vm2156_vm13, %v7056_v54, 0.0  ;;  %v2659_v51 = vsel %vm2156_vm13, %v8390_v18, 0.0  ;;  %v2660_v52 = vsel %vm2156_vm13, %v8391_v2, 0.0  ;;  %v7226_v20 = vpop.eup %4740 }
 0x4ae   : > { %v2768_v32 = vmul.f32 %v4739_v48, %v7175_v63  ;;  %4752 = vpow2.f32 %v7090_v62  ;;  %v2612_v23 = vadd.f32 %v2611_v3, %v2610_v22  ;;  %v2647_v43 = vsel %vm2156_vm13, %v7068_v53, 0.0  ;;  %v7232_v40 = vpop.eup %4742 }
 0x4af   : > { %4754 = vpow2.f32 %v7095_v58  ;;  %v2631_v4 = vadd.f32 %v2630_v41, %v2629_v1  ;;  %v2646_v46 = vadd.f32 %v2645_v29, %v2644_v14  ;;  %v2661_v61 = vadd.f32 %v2660_v52, %v2659_v51  ;;  %v7235_v18 = vpop.eup %4744 }
 0x4b0   : > { %v2769_v2 = vsub.f32 1.0, %v2768_v32  ;;  %4756 = vpow2.f32 %v7102_v55  ;;  %v2649_v54 = vsel %vm2156_vm13, %v7085_v30, 0.0  ;;  %v2662_v62 = vsel %vm2156_vm13, %v7108_v33, 0.0 }
 0x4b1   : > { %v7242_v22 = vpop.eup %4746  ;;  %v2613_v3 = vrot.slane %v2612_v23, 2  ;;  %v2632_v53 = vrot.slane %v2631_v4, 4  ;;  %v2648_v50 = vadd.f32 %v2647_v43, %v2646_v46  ;;  %v2663_v58 = vadd.f32 %v2662_v62, %v2661_v61 }
 0x4b2   : > { %v7244_v1 = vpop.eup %4748  ;;  %v2770_v41 = vmul.f32 %v4739_v48, %v2769_v2  ;;  %vm2773_vm0 = vweird.f32 %v4739_v48  ;;  %4758 = vpow2.f32 %v7114_v13  ;;  %v2664_v55 = vsel %vm2156_vm13, %v7116_v17, 0.0 }
 0x4b3   : > { %v7249_v14 = vpop.eup %4750  ;;  %4760 = vpow2.f32 %v7122_v38  ;;  %v2633_v29 = vadd.f32 %v2632_v53, %v2631_v4  ;;  %v2650_v51 = vadd.f32 %v2649_v54, %v2648_v50  ;;  %v2665_v52 = vadd.f32 %v2664_v55, %v2663_v58  ;;  %vm2774_vm1 = vmor %vm2772_vm15, %vm2773_vm0 }
 0x4b4   : > { %v7252_v32 = vpop.eup %4752  ;;  %v2771_v43 = vadd.f32 %v4739_v48, %v2770_v41  ;;  %4762 = vpow2.f32 %v7127_v12  ;;  %v2651_v2 = vsel %vm2156_vm13, %v7097_v35, 0.0  ;;  %v2666_v13 = vsel %vm2156_vm13, %v7131_v8, 0.0 }
 0x4b5   : > { %v7259_v46 = vpop.eup %4754  ;;  %v2614_v38 = vadd.f32 %v2613_v3, %v2612_v23  ;;  %v2634_v53 = vrot.slane %v2633_v29, 2  ;;  %v2652_v50 = vadd.f32 %v2651_v2, %v2650_v51  ;;  %v2667_v54 = vadd.f32 %v2666_v13, %v2665_v52  ;;  %v8392_v2 = vld [vmem:[#allocation61_spill] sm:$0xff] }
 0x4b6   : > { %v7263_v4 = vpop.eup %4756  ;;  %v2775_v61 = vsel %vm2774_vm1, %v4739_v48, %v2771_v43  ;;  %vm2777_vm2 = vcmp.eq.f32.partialorder %v2776_v42, 8.507059e+37  ;;  %4764 = vpow2.f32 %v7136_v39  ;;  %v2668_v12 = vsel %vm2156_vm13, %v7138_v36, 0.0 }
 0x4b7   : > { %v7268_v62 = vsel %vm2777_vm2, %v2779_v26, %v2775_v61  ;;  %v2635_v58 = vadd.f32 %v2634_v53, %v2633_v29  ;;  %v2653_v41 = vrot.slane %v2652_v50, 4  ;;  %v2669_v55 = vadd.f32 %v2668_v12, %v2667_v54 }
 0x4b8   : > { %v7270_v63 = vpop.eup %4758  ;;  %v7273_v23 = vperm.slane %v7268_v62, 0  ;;  %v2670_v3 = vsel %vm2156_vm13, %v7146_v25, 0.0  ;;  %v2680_v42 = vsel %vm2156_vm13, %v7159_v45, 0.0  ;;  %v2681_v39 = vsel %vm2156_vm13, %v7161_v21, 0.0 }
 0x4b9   : > { %v7281_v48 = vpop.eup %4760  ;;  %v2615_v26 = vrot.slane %v2614_v38, 1  ;;  %v2654_v29 = vadd.f32 %v2653_v41, %v2652_v50  ;;  %v2671_v51 = vadd.f32 %v2670_v3, %v2669_v55  ;;  %v2682_v52 = vadd.f32 %v2681_v39, %v2680_v42 }
 0x4ba   : > { %v7283_v43 = vpop.eup %4762  ;;  %v2895_v13 = vmul.f32 %v8392_v2, %v7273_v23  ;;  %4766 = vpow2.f32 %v7153_v49  ;;  %v2672_v53 = vsel %vm2156_vm13, %v7148_v31, 0.0  ;;  %v2683_v54 = vsel %vm2156_vm13, %v7172_v57, 0.0 }
 0x4bb   : > { %v2636_v61 = vrot.slane %v2635_v58, 1  ;;  %v2655_v12 = vrot.slane %v2654_v29, 2  ;;  %v2673_v8 = vadd.f32 %v2672_v53, %v2671_v51  ;;  %v2684_v17 = vadd.f32 %v2683_v54, %v2682_v52  ;;  %v8393_v51 = vld [vmem:[#allocation96_spill] sm:$0xff] }
 0x4bc   : > { %v7292_v50 = vpop.eup %4764  ;;  %4468 = vmatmul.msk.f32.vlgmr.msrb.gmra.mxu3 %vm2156_vm13, %v2895_v13  ;;  %4768 = vpow2.f32 %v7166_v60  ;;  %v2685_v41 = vsel %vm2156_vm13, %v7179_v15, 0.0  ;;  %v2701_v49 = vsel %vm2156_vm13, %v7215_v59, 0.0  ;;  %v2616_v55 = vadd.f32 %v2615_v26, %v2614_v38 }
 0x4bd   : > { %v2674_v3 = vrot.slane %v2673_v8, 4  ;;  %v2686_v42 = vadd.f32 %v2685_v41, %v2684_v17  ;;  %v2702_v39 = vsel %vm2156_vm13, %v7226_v20, 0.0  ;;  %v2896_v52 = vmul.f32 %v8393_v51, %v7273_v23 }
 0x4be   : > { %v2656_v2 = vadd.f32 %v2655_v12, %v2654_v29  ;;  %v2687_v13 = vsel %vm2156_vm13, %v7188_v16, 0.0  ;;  %v2703_v60 = vadd.f32 %v2702_v39, %v2701_v49  ;;  %v2637_v53 = vadd.f32 %v2636_v61, %v2635_v58 }
 0x4bf   : > { %v2675_v54 = vadd.f32 %v2674_v3, %v2673_v8  ;;  %v2688_v33 = vadd.f32 %v2687_v13, %v2686_v42  ;;  %v2704_v35 = vsel %vm2156_vm13, %v7232_v40, 0.0  ;;  %v2689_v17 = vsel %vm2156_vm13, %v7196_v10, 0.0 }
 0x4c0   : > { %v7308_v38 = vpop.eup %4766  ;;  %v2691_v26 = vsel %vm2156_vm13, %v7199_v5, 0.0  ;;  %v2705_v41 = vadd.f32 %v2704_v35, %v2703_v60  ;;  %v2722_v29 = vsel %vm2156_vm13, %v7259_v46, 0.0  ;;  %v2706_v8 = vsel %vm2156_vm13, %v7235_v18, 0.0 }
 0x4c1   : > { %v2676_v12 = vrot.slane %v2675_v54, 2  ;;  %v2690_v49 = vadd.f32 %v2689_v17, %v2688_v33  ;;  %v2723_v58 = vsel %vm2156_vm13, %v7263_v4, 0.0  ;;  %v2657_v3 = vrot.slane %v2656_v2, 1 }
 0x4c2   : > { %v7320_v61 = vpop.eup %4768  ;;  %v2693_v42 = vsel %vm2156_vm13, %v7208_v37, 0.0  ;;  %v2707_v39 = vadd.f32 %v2706_v8, %v2705_v41  ;;  %v2724_v51 = vadd.f32 %v2723_v58, %v2722_v29  ;;  %v2708_v60 = vsel %vm2156_vm13, %v7242_v22, 0.0 }
 0x4c3   : > { %v2677_v35 = vadd.f32 %v2676_v12, %v2675_v54  ;;  %v2692_v13 = vadd.f32 %v2691_v26, %v2690_v49  ;;  %v2725_v33 = vsel %vm2156_vm13, %v7270_v63, 0.0  ;;  %v2710_v30 = vsel %vm2156_vm13, %v7244_v1, 0.0 }
 0x4c4   : > { %4469 = vmatmul.msk.f32.gmra.mxu3 %vm2156_vm13, %v2896_v52  ;;  %v2709_v17 = vadd.f32 %v2708_v60, %v2707_v39  ;;  %v2712_v27 = vsel %vm2156_vm13, %v7249_v14, 0.0  ;;  %v2726_v47 = vadd.f32 %v2725_v33, %v2724_v51  ;;  %v2714_v54 = vsel %vm2156_vm13, %v7252_v32, 0.0 }
 0x4c5   : > { %v2678_v41 = vrot.slane %v2677_v35, 1  ;;  %v2694_v29 = vadd.f32 %v2693_v42, %v2692_v13  ;;  %v2727_v26 = vsel %vm2156_vm13, %v7281_v48, 0.0  ;;  %v2658_v12 = vadd.f32 %v2657_v3, %v2656_v2 }
 0x4c6   : > { %v2711_v49 = vadd.f32 %v2710_v30, %v2709_v17  ;;  %v2728_v8 = vadd.f32 %v2727_v26, %v2726_v47  ;;  %v2744_v52 = vrot.slane %v8385_v44, 1  ;;  %v2729_v39 = vsel %vm2156_vm13, %v7283_v43, 0.0 }
 0x4c7   : > { %v2695_v58 = vrot.slane %v2694_v29, 4  ;;  %v2745_v60 = vrot.slane %v8385_v44, 2  ;;  %v2746_v51 = vrot.slane %v8385_v44, 3  ;;  %v2679_v42 = vadd.f32 %v2678_v41, %v2677_v35 }
 0x4c8   : > { %v2713_v13 = vadd.f32 %v2712_v27, %v2711_v49  ;;  %v2730_v33 = vadd.f32 %v2729_v39, %v2728_v8  ;;  %v7342_v34 = vadd.f32 %v2744_v52, %v2616_v55  ;;  %v2731_v30 = vsel %vm2156_vm13, %v7292_v50, 0.0 }
 0x4c9   : > { %v2696_v28 = vadd.f32 %v2695_v58, %v2694_v29  ;;  %v2747_v47 = vrot.slane %v8385_v44, 4  ;;  %v7347_v2 = vadd.f32 %v2745_v60, %v2637_v53  ;;  %v7349_v26 = vadd.f32 %v2746_v51, %v2658_v12 }
 0x4ca   : > { %v2715_v3 = vadd.f32 %v2714_v54, %v2713_v13  ;;  %v2732_v17 = vadd.f32 %v2731_v30, %v2730_v33  ;;  %4770 = vrcp.f32 %v7342_v34  ;;  %v2733_v27 = vsel %vm2156_vm13, %v7308_v38, 0.0 }
 0x4cb   : > { %v2697_v9 = vrot.slane %v2696_v28, 2  ;;  %4772 = vrcp.f32 %v7347_v2  ;;  %v7355_v41 = vadd.f32 %v2747_v47, %v2679_v42  ;;  %v2735_v53 = vsel %vm2156_vm13, %v7320_v61, 0.0 }
 0x4cc   : > { %v2716_v55 = vrot.slane %v2715_v3, 4  ;;  %v2734_v35 = vadd.f32 %v2733_v27, %v2732_v17  ;;  %4774 = vrcp.f32 %v7349_v26  ;;  %v2748_v51 = vrot.slane %v8385_v44, 5 }
 0x4cd   : > { %v2698_v29 = vadd.f32 %v2697_v9, %v2696_v28  ;;  %4776 = vrcp.f32 %v7355_v41  ;;  %v2791_v28 = vand.u32 2147483647, %v7342_v34  ;;  %v2793_v33 = vand.u32 2147483648, %v7342_v34 }
 0x4ce   : > { %v2717_v54 = vadd.f32 %v2716_v55, %v2715_v3  ;;  %v2736_v49 = vadd.f32 %v2735_v53, %v2734_v35  ;;  %v2749_v47 = vrot.slane %v8385_v44, 6  ;;  %v2750_v3 = vrot.slane %v8385_v44, 7 }
 0x4cf   : > { %v2699_v12 = vrot.slane %v2698_v29, 1  ;;  %vm2787_vm3 = vweird.f32 %v7342_v34  ;;  %vm2802_vm4 = vweird.f32 %v7347_v2  ;;  %vm7381_vm14 = vcmp.eq.f32.partialorder %v2791_v28, 8.507059e+37 }
 0x4d0   : > { %v7360_v8 = vpop.eup %4770  ;;  %v2718_v52 = vrot.slane %v2717_v54, 2  ;;  %v2737_v58 = vrot.slane %v2736_v49, 4  ;;  %v2794_v7 = vor.u32 1.1754944e-38, %v2793_v33  ;;  %vm2817_vm1 = vweird.f32 %v7349_v26 }
 0x4d1   : > { %v7363_v39 = vpop.eup %4772  ;;  %v2700_v60 = vadd.f32 %v2699_v12, %v2698_v29  ;;  %v2783_v9 = vmul.f32 %v7360_v8, %v7342_v34  ;;  %vm2788_vm15 = vweird.f32 %v7360_v8 }
 0x4d2   : > { %v2719_v42 = vadd.f32 %v2718_v52, %v2717_v54  ;;  %v2738_v13 = vadd.f32 %v2737_v58, %v2736_v49  ;;  %v2798_v30 = vmul.f32 %v7363_v39, %v7347_v2  ;;  %v4775_v27 = vpop.eup %4774  ;;  %v2806_v49 = vand.u32 2147483647, %v7347_v2  ;;  %vm7401_vm12 = vmor %vm2787_vm3, %vm2788_vm15 }
 0x4d3   : > { %v2784_v17 = vsub.f32 1.0, %v2783_v9  ;;  %v7376_v53 = vadd.f32 %v2748_v51, %v2700_v60  ;;  %v2813_v12 = vmul.f32 %v4775_v27, %v7349_v26  ;;  %v4777_v52 = vpop.eup %4776  ;;  %v2808_v60 = vand.u32 2147483648, %v7347_v2 }
 0x4d4   : > { %v2720_v55 = vrot.slane %v2719_v42, 1  ;;  %v2739_v35 = vrot.slane %v2738_v13, 2  ;;  %v2799_v29 = vsub.f32 1.0, %v2798_v30  ;;  %vm2803_vm0 = vweird.f32 %v7363_v39 }
 0x4d5   : > { %v2785_v54 = vmul.f32 %v7360_v8, %v2784_v17  ;;  %v2814_v51 = vsub.f32 1.0, %v2813_v12  ;;  %v2828_v17 = vmul.f32 %v4777_v52, %v7355_v41  ;;  %4778 = vrcp.f32 %v7376_v53  ;;  %vm7416_vm3 = vmor %vm2802_vm4, %vm2803_vm0 }
 0x4d6   : > { %v2721_v58 = vadd.f32 %v2720_v55, %v2719_v42  ;;  %v2740_v11 = vadd.f32 %v2739_v35, %v2738_v13  ;;  %v2800_v30 = vmul.f32 %v7363_v39, %v2799_v29  ;;  %vm2818_vm2 = vweird.f32 %v4775_v27 }
 0x4d7   : > { %v2786_v42 = vadd.f32 %v7360_v8, %v2785_v54  ;;  %v2815_v13 = vmul.f32 %v4775_v27, %v2814_v51  ;;  %v2829_v33 = vsub.f32 1.0, %v2828_v17  ;;  %v2821_v35 = vand.u32 2147483647, %v7349_v26  ;;  %vm7426_vm11 = vmor %vm2817_vm1, %vm2818_vm2 }
 0x4d8   : > { %v2741_v56 = vrot.slane %v2740_v11, 1  ;;  %v7389_v6 = vadd.f32 %v2749_v47, %v2721_v58  ;;  %v2801_v28 = vadd.f32 %v7363_v39, %v2800_v30  ;;  %v2823_v54 = vand.u32 2147483648, %v7349_v26 }
 0x4d9   : > { %v2816_v29 = vadd.f32 %v4775_v27, %v2815_v13  ;;  %v2830_v12 = vmul.f32 %v4777_v52, %v2829_v33  ;;  %v2836_v58 = vand.u32 2147483647, %v7355_v41  ;;  %vm2833_vm15 = vweird.f32 %v4777_v52 }
 0x4da   : > { %v2742_v55 = vadd.f32 %v2741_v56, %v2740_v11  ;;  %v2790_v11 = vsel %vm7401_vm12, %v7360_v8, %v2786_v42  ;;  %4780 = vrcp.f32 %v7389_v6  ;;  %v2809_v30 = vor.u32 1.1754944e-38, %v2808_v60 }
 0x4db   : > { %v2831_v51 = vadd.f32 %v4777_v52, %v2830_v12  ;;  %v2838_v2 = vand.u32 2147483648, %v7355_v41  ;;  %v2820_v17 = vsel %vm7426_vm11, %v4775_v27, %v2816_v29  ;;  %vm2832_vm12 = vweird.f32 %v7355_v41 }
 0x4dc   : > { %v7407_v56 = vadd.f32 %v2750_v3, %v2742_v55  ;;  %v2805_v3 = vsel %vm7416_vm3, %v7363_v39, %v2801_v28  ;;  %v2851_v42 = vand.u32 2147483647, %v7376_v53  ;;  %v4779_v39 = vpop.eup %4778  ;;  %v7438_v26 = vsel %vm7381_vm14, %v2794_v7, %v2790_v11  ;;  %vm2834_vm1 = vmor %vm2832_vm12, %vm2833_vm15 }
 0x4dd   : > { %vm2807_vm4 = vcmp.eq.f32.partialorder %v2806_v49, 8.507059e+37  ;;  %vm2822_vm0 = vcmp.eq.f32.partialorder %v2821_v35, 8.507059e+37  ;;  %v2824_v60 = vor.u32 1.1754944e-38, %v2823_v54  ;;  %v2835_v13 = vsel %vm2834_vm1, %v4777_v52, %v2831_v51 }
 0x4de   : > { %4782 = vrcp.f32 %v7407_v56  ;;  %v7441_v28 = vsel %vm2807_vm4, %v2809_v30, %v2805_v3  ;;  %vm2837_vm11 = vcmp.eq.f32.partialorder %v2836_v58, 8.507059e+37  ;;  %v2843_v41 = vmul.f32 %v4779_v39, %v7376_v53 }
 0x4df   : > { %v7444_v27 = vsel %vm2822_vm0, %v2824_v60, %v2820_v17  ;;  %v2839_v33 = vor.u32 1.1754944e-38, %v2838_v2  ;;  %vm2847_vm2 = vweird.f32 %v7376_v53  ;;  %v2853_v9 = vand.u32 2147483648, %v7376_v53  ;;  %v8404_v60 = vld [vmem:[#allocation108_spill] sm:$0xff] }
 0x4e0   : > { %v4781_v7 = vpop.eup %4780  ;;  %v2844_v55 = vsub.f32 1.0, %v2843_v41  ;;  %vm7448_vm14 = vcmp.eq.f32.partialorder %v2851_v42, 8.507059e+37  ;;  %vm2862_vm3 = vweird.f32 %v7389_v6  ;;  %v2967_v52 = vrot.slane %v7438_v26, 7 }
 0x4e1   : > { %v2840_v35 = vsel %vm2837_vm11, %v2839_v33, %v2835_v13  ;;  %v2858_v47 = vmul.f32 %v4781_v7, %v7389_v6  ;;  %v2866_v29 = vand.u32 2147483647, %v7389_v6  ;;  %v2969_v54 = vrot.slane %v7441_v28, 6 }
 0x4e2   : > { %v2845_v58 = vmul.f32 %v4779_v39, %v2844_v55  ;;  %vm2848_vm15 = vweird.f32 %v4779_v39  ;;  %v2968_v11 = vsel %vm1001_vm5, %v2967_v52, %v7268_v62  ;;  %v2971_v34 = vrot.slane %v7444_v27, 5 }
 0x4e3   : > { %v2854_v3 = vor.u32 1.1754944e-38, %v2853_v9  ;;  %v2859_v30 = vsub.f32 1.0, %v2858_v47  ;;  %v2970_v51 = vsel %vm1003_vm6, %v2969_v54, %v2968_v11  ;;  %v2868_v17 = vand.u32 2147483648, %v7389_v6  ;;  %vm2849_vm12 = vmor %vm2847_vm2, %vm2848_vm15 }
 0x4e4   : > { %v4783_v12 = vpop.eup %4782  ;;  %v2846_v2 = vadd.f32 %v4779_v39, %v2845_v58  ;;  %v2972_v42 = vsel %vm1005_vm7, %v2971_v34, %v2970_v51  ;;  %v2897_v13 = vmul.f32 %v8404_v60, %v7273_v23  ;;  %vm2863_vm4 = vweird.f32 %v4781_v7 }
 0x4e5   : > { %v2873_v8 = vmul.f32 %v4783_v12, %v7407_v56  ;;  %v2860_v62 = vmul.f32 %v4781_v7, %v2859_v30  ;;  %v2973_v33 = vrot.slane %v2840_v35, 4  ;;  %vm2878_vm0 = vweird.f32 %v4783_v12  ;;  %vm2864_vm1 = vmor %vm2862_vm3, %vm2863_vm4 }
 0x4e6   : > { %v2850_v9 = vsel %vm2849_vm12, %v4779_v39, %v2846_v2  ;;  %v2881_v55 = vand.u32 2147483647, %v7407_v56  ;;  %v2883_v52 = vand.u32 2147483648, %v7407_v56  ;;  %4470 = vmatmul.msk.f32.gmra.mxu3 %vm2156_vm13, %v2897_v13  ;;  %v2869_v11 = vor.u32 1.1754944e-38, %v2868_v17 }
 0x4e7   : > { %v2874_v41 = vsub.f32 1.0, %v2873_v8  ;;  %v2855_v47 = vsel %vm7448_vm14, %v2854_v3, %v2850_v9  ;;  %v2861_v54 = vadd.f32 %v4781_v7, %v2860_v62  ;;  %v2974_v53 = vsel %vm1007_vm8, %v2973_v33, %v2972_v42 }
 0x4e8   : > { %v2975_v34 = vrot.slane %v2855_v47, 3  ;;  %vm2867_vm11 = vcmp.eq.f32.partialorder %v2866_v29, 8.507059e+37  ;;  %vm2877_vm2 = vweird.f32 %v7407_v56  ;;  %v2884_v51 = vor.u32 1.1754944e-38, %v2883_v52 }
 0x4e9   : > { %v2875_v58 = vmul.f32 %v4783_v12, %v2874_v41  ;;  %v2865_v39 = vsel %vm2864_vm1, %v4781_v7, %v2861_v54  ;;  %vm2879_vm15 = vmor %vm2877_vm2, %vm2878_vm0  ;;  %vm2882_vm14 = vcmp.eq.f32.partialorder %v2881_v55, 8.507059e+37  ;;  %v2898_v6 = vmul.f32 %v6944_v0, %v7273_v23  ;;  %v8406_v41 = vld [vmem:[#allocation18_spill] sm:$0xff]  ;;  %v8409_v54 = vld [vmem:[#allocation29_spill] sm:$0xff] }
 0x4ea   : > { %v2870_v8 = vsel %vm2867_vm11, %v2869_v11, %v2865_v39  ;;  %v2976_v49 = vsel %vm1009_vm9, %v2975_v34, %v2974_v53  ;;  %v7482_v29 = vperm.slane %v2840_v35, 0  ;;  %v2892_v56 = vperm.slane %v2855_v47, 0  ;;  %v8412_v34 = vld [vmem:[#allocation38_spill] sm:$0xff] }
 0x4eb   : > { %v2876_v30 = vadd.f32 %v4783_v12, %v2875_v58  ;;  %v2977_v2 = vrot.slane %v2870_v8, 2  ;;  %vm8405_vm3 = vcmask 1047559   ;;  %v2893_v62 = vperm.slane %v2870_v8, 0  ;;  %v8410_v58 = vld [vmem:[#allocation37_spill] sm:$0xff] }
 0x4ec   : > { %v2899_v33 = vmul.f32 %v8406_v41, %v7273_v23  ;;  %v7492_v0 = vmul.f32 %v7138_v36, %v7482_v29  ;;  %v7496_v35 = vmul.f32 %v7146_v25, %v7482_v29  ;;  %v7500_v9 = vmul.f32 %v7148_v31, %v7482_v29 }
 0x4ed   : > { %v2880_v3 = vsel %vm2879_vm15, %v4783_v12, %v2876_v30  ;;  %v2978_v17 = vsel %vm1011_vm10, %v2977_v2, %v2976_v49  ;;  %v7506_v55 = vmul.f32 %v7161_v21, %v2892_v56  ;;  %v7509_v52 = vmul.f32 %v7172_v57, %v2892_v56  ;;  %v8413_v30 = vld [vmem:[#allocation31_spill] sm:$0xff]  ;;  %v8414_v49 = vld [vmem:[#allocation21_spill] sm:$0xff]  ;;  %v8415_v2 = vld [vmem:[#allocation22_spill] sm:$0xff] }
 0x4ee   : > { %v2885_v42 = vsel %vm2882_vm14, %v2884_v51, %v2880_v3  ;;  %4471 = vmatmul.msk.f32.gmra.mxu3 %vm2156_vm13, %v2898_v6  ;;  %v7512_v36 = vmul.f32 %v7179_v15, %v2892_v56  ;;  %v7515_v47 = vmul.f32 %v7188_v16, %v2892_v56  ;;  %v7518_v25 = vmul.f32 %v7196_v10, %v2892_v56 }
 0x4ef   : > { %v2979_v7 = vrot.slane %v2885_v42, 1  ;;  %v2894_v12 = vperm.slane %v2885_v42, 0  ;;  %v7521_v31 = vmul.f32 %v7199_v5, %v2892_v56  ;;  %v7527_v21 = vmul.f32 %v7215_v59, %v2893_v62 }
 0x4f0   : > { %v7530_v57 = vmul.f32 %v7226_v20, %v2893_v62  ;;  %v7534_v15 = vmul.f32 %v7232_v40, %v2893_v62  ;;  %v7537_v16 = vmul.f32 %v7235_v18, %v2893_v62  ;;  %v7540_v5 = vmul.f32 %v7242_v22, %v2893_v62 }
 0x4f1   : > { %v2980_v60 = vsel %vm8405_vm3, %v2979_v7, %v2978_v17  ;;  %v7546_v10 = vmul.f32 %v7249_v14, %v2893_v62  ;;  %v7549_v59 = vmul.f32 %v7252_v32, %v2893_v62  ;;  %v7552_v20 = vmul.f32 %v7259_v46, %v2894_v12  ;;  %v4081_v7 = vld [vmem:[#allocation8 + $0x18] sm:$0xff] }
 0x4f2   : > { %v2982_v13 = vmul.f32 %v8385_v44, %v2980_v60  ;;  %v7503_v44 = vmul.f32 %v7159_v45, %v2892_v56  ;;  %v7524_v45 = vmul.f32 %v7208_v37, %v2892_v56  ;;  %v7543_v37 = vmul.f32 %v7244_v1, %v2893_v62  ;;  %4122 = vmatpush.msrb.mxu2 %v4081_v7  ;;  %v8416_v56 = vld [vmem:[#allocation39_spill] sm:$0xff] }
 0x4f3   : > { %v7555_v40 = vmul.f32 %v7263_v4, %v2894_v12  ;;  %v7558_v18 = vmul.f32 %v7270_v63, %v2894_v12  ;;  %v7561_v22 = vmul.f32 %v7281_v48, %v2894_v12  ;;  %v7564_v1 = vmul.f32 %v7283_v43, %v2894_v12  ;;  %v8407_v48 = vld [vmem:[#allocation19_spill] sm:$0xff] }
 0x4f4   : > { %4533 = vmatmul.msk.f32.vlgmr.msrb.gmra.mxu1 %vm2156_vm13, %v2982_v13  ;;  %v7567_v14 = vmul.f32 %v7292_v50, %v2894_v12  ;;  %v7570_v32 = vmul.f32 %v7308_v38, %v2894_v12  ;;  %v7573_v46 = vmul.f32 %v7320_v61, %v2894_v12  ;;  %v2900_v4 = vmul.f32 %v6965_v24, %v7273_v23  ;;  %v8408_v38 = vld [vmem:[#allocation36_spill] sm:$0xff]  ;;  %v8417_v12 = vld [vmem:[#allocation45_spill] sm:$0xff] }
 0x4f5   : > { %v2901_v63 = vmul.f32 %v6971_v19, %v7273_v23  ;;  %v2902_v43 = vmul.f32 %v8407_v48, %v7273_v23  ;;  %v2888_v50 = vperm.slane %v7438_v26, 0  ;;  %v8411_v19 = vld [vmem:[#allocation30_spill] sm:$0xff]  ;;  %v3176_v23 = vpop.f32.mrf.mxu0  ;;  %v7602_v17 = vperm.slane %v7441_v28, 0 }
 0x4f6   : > { %4472 = vmatmul.msk.f32.gmra.mxu3 %vm2156_vm13, %v2899_v33  ;;  %vm8423_vm12 = vcmask 261120  }
 0x4f7   : > { %v2903_v61 = vmul.f32 %v8408_v38, %v2888_v50  ;;  %v2904_v24 = vmul.f32 %v8409_v54, %v2888_v50  ;;  %v2905_v53 = vmul.f32 %v8410_v58, %v2888_v50  ;;  %v2906_v11 = vmul.f32 %v8411_v19, %v2888_v50  ;;  %vm8424_vm4 = vmmov %vm8423_vm12 }
 0x4f8   : > { %v2907_v39 = vmul.f32 %v8412_v34, %v2888_v50  ;;  %v2908_v8 = vmul.f32 %v8413_v30, %v2888_v50  ;;  %v2909_v3 = vmul.f32 %v8414_v49, %v2888_v50  ;;  %v2910_v42 = vmul.f32 %v8415_v2, %v2888_v50  ;;  %vm8425_vm0 = vmmov %vm8424_vm4 }
 0x4f9   : > { %v2911_v60 = vmul.f32 %v8416_v56, %v7602_v17  ;;  %v2912_v41 = vmul.f32 %v8417_v12, %v7602_v17  ;;  %vm8426_vm1 = vmmov %vm8425_vm0  ;;  %v8427_v56 = vld [vmem:[#allocation71_spill] sm:$0xff] }
 0x4fa   : > { %vm8428_vm11 = vmmov %vm8425_vm0 }
 0x4fb   : > { %vm8429_vm2 = vmmov %vm8425_vm0 }
 0x4fc   : > { %vm8430_vm15 = vmmov %vm8425_vm0 }
 0x4fd   : > { %v3179_v26 = vpop.f32.mrf.mxu0  ;;  %vm8432_vm14 = vmmov %vm8425_vm0 }
 0x4fe   : > { %4473 = vmatmul.msk.f32.gmra.mxu3 %vm2156_vm13, %v2900_v4  ;;  %vm8433_vm3 = vmmov %vm8425_vm0 }
 0x505   : > { %v3182_v51 = vpop.f32.mrf.mxu0 }
 0x506   : > { %4474 = vmatmul.msk.f32.gmra.mxu3 %vm2156_vm13, %v2901_v63  ;;  %v8418_v63 = vld [vmem:[#allocation32_spill] sm:$0xff] }
 0x507   : > { %v2913_v28 = vmul.f32 %v8418_v63, %v7602_v17  ;;  %v8431_v63 = vld [vmem:[#allocation47_spill] sm:$0xff] }
 0x50d   : > { %v3185_v6 = vpop.f32.mrf.mxu0 }
 0x50e   : > { %4475 = vmatmul.msk.f32.gmra.mxu3 %vm2156_vm13, %v2902_v43  ;;  %v8419_v43 = vld [vmem:[#allocation68_spill] sm:$0xff] }
 0x515   : > { %v3188_v62 = vpop.f32.mrf.mxu0 }
 0x516   : > { %4476 = vmatmul.msk.f32.gmra.mxu3 %vm2156_vm13, %v2903_v61  ;;  %v8420_v61 = vld [vmem:[#allocation69_spill] sm:$0xff] }
 0x51d   : > { %v3191_v4 = vpop.f32.mrf.mxu0 }
 0x51e   : > { %4477 = vmatmul.msk.f32.gmra.mxu3 %vm2156_vm13, %v2904_v24  ;;  %v8421_v24 = vld [vmem:[#allocation70_spill] sm:$0xff] }
 0x525   : > { %v3194_v38 = vpop.f32.mrf.mxu0 }
 0x526   : > { %4478 = vmatmul.msk.f32.gmra.mxu3 %vm2156_vm13, %v2905_v53  ;;  %v8422_v53 = vld [vmem:[#allocation43_spill] sm:$0xff] }
 0x527   : > { %v2914_v19 = vmul.f32 %v8422_v53, %v7602_v17 }
 0x52e   : > { %4479 = vmatmul.msk.f32.gmra.mxu3 %vm2156_vm13, %v2906_v11  ;;  %v4785_v11 = vld [vmem:[%s7942_s7] ss:$0 sm:$0xff] }
 0x52f   : > { %v7621_v34 = vadd.f32 %v4785_v11, %v3179_v26  ;;  %v7625_v30 = vadd.f32 %v4785_v11, %v3176_v23 }
 0x531   : > { %v3348_v2 = vsel %vm8426_vm1, %v7621_v34, 0.0  ;;  %vm8438_vm1 = vmmov %vm8425_vm0 }
 0x536   : > { %4480 = vmatmul.msk.f32.gmra.mxu3 %vm2156_vm13, %v2907_v39 }
 0x53e   : > { %4481 = vmatmul.msk.f32.gmra.mxu3 %vm2156_vm13, %v2908_v8  ;;  %v7627_v8 = vadd.f32 %v4785_v11, %v3182_v51  ;;  %v7640_v51 = vadd.f32 %v4785_v11, %v3188_v62 }
 0x53f   : > { %v3590_v13 = vpop.f32.mrf.mxu3 }
 0x540   : > { %v3805_v54 = vmul.f32 %v3590_v13, %v8420_v61  ;;  %v3347_v13 = vsel %vm8428_vm11, %v7625_v30, 0.0  ;;  %v3350_v23 = vsel %vm8429_vm2, %v7627_v8, 0.0  ;;  %v3197_v61 = vpop.f32.mrf.mxu0  ;;  %v3354_v62 = vsel %vm8433_vm3, %v7640_v51, 0.0  ;;  %vm8440_vm11 = vmmov %vm8425_vm0 }
 0x541   : > { %v7656_v53 = vadd.f32 %v4785_v11, %v3197_v61  ;;  %vm8443_vm2 = vmmov %vm8425_vm0 }
 0x542   : > { %v3869_v49 = vsel %vm8424_vm4, %v3805_v54, 0.0  ;;  %v7652_v54 = vadd.f32 %v4785_v11, %v3194_v38  ;;  %vm8436_vm4 = vmmov %vm8425_vm0 }
 0x543   : > { %vm8454_vm3 = vmmov %vm8425_vm0 }
 0x546   : > { %4482 = vmatmul.msk.f32.gmra.mxu3 %vm2156_vm13, %v2909_v3 }
 0x547   : > { %v3593_v33 = vpop.f32.mrf.mxu3 }
 0x548   : > { %v3806_v50 = vmul.f32 %v3593_v33, %v8419_v43 }
 0x54a   : > { %v3870_v39 = vsel %vm8423_vm12, %v3806_v50, 0.0  ;;  %vm8434_vm12 = vmmov %vm8425_vm0 }
 0x54b   : > { %v3871_v7 = vadd.f32 %v3870_v39, %v3869_v49 }
 0x54e   : > { %4483 = vmatmul.msk.f32.gmra.mxu3 %vm2156_vm13, %v2910_v42  ;;  %v7633_v42 = vadd.f32 %v4785_v11, %v3185_v6  ;;  %v2915_v6 = vmul.f32 %v8431_v63, %v7602_v17 }
 0x556   : > { %4484 = vmatmul.msk.f32.gmra.mxu3 %vm2156_vm13, %v2911_v60 }
 0x55e   : > { %4485 = vmatmul.msk.f32.gmra.mxu3 %vm2156_vm13, %v2912_v41  ;;  %v3349_v41 = vadd.f32 %v3348_v2, %v3347_v13 }
 0x560   : > { %v3351_v50 = vadd.f32 %v3350_v23, %v3349_v41 }
 0x566   : > { %4486 = vmatmul.msk.f32.gmra.mxu3 %vm2156_vm13, %v2913_v28  ;;  %v3352_v28 = vsel %vm8432_vm14, %v7633_v42, 0.0  ;;  %vm8451_vm14 = vcmask 1047559  }
 0x569   : > { %v3596_v48 = vpop.f32.mrf.mxu3 }
 0x56a   : > { %v3807_v58 = vmul.f32 %v3596_v48, %v8421_v24  ;;  %v7647_v48 = vadd.f32 %v4785_v11, %v3191_v4  ;;  %v3353_v24 = vadd.f32 %v3352_v28, %v3351_v50  ;;  %v8435_v4 = vld [vmem:[#allocation73_spill] sm:$0xff] }
 0x56c   : > { %v3872_v3 = vsel %vm8425_vm0, %v3807_v58, 0.0  ;;  %v3356_v58 = vsel %vm8434_vm12, %v7647_v48, 0.0  ;;  %v3355_v39 = vadd.f32 %v3354_v62, %v3353_v24  ;;  %v8442_v24 = vld [vmem:[#allocation80_spill] sm:$0xff]  ;;  %vm8455_vm12 = vmmov %vm8425_vm0 }
 0x56d   : > { %v3873_v12 = vadd.f32 %v3872_v3, %v3871_v7  ;;  %v3358_v3 = vsel %vm8436_vm4, %v7652_v54, 0.0  ;;  %vm8458_vm4 = vmmov %vm8425_vm0 }
 0x56e   : > { %4487 = vmatmul.msk.f32.gmra.mxu3 %vm2156_vm13, %v2914_v19  ;;  %v3357_v2 = vadd.f32 %v3356_v58, %v3355_v39  ;;  %v8444_v39 = vld [vmem:[#allocation25_spill] sm:$0xff] }
 0x570   : > { %v3359_v13 = vadd.f32 %v3358_v3, %v3357_v2  ;;  %v2890_v2 = vperm.slane %v7444_v27, 0 }
 0x571   : > { %v3599_v26 = vpop.f32.mrf.mxu3 }
 0x572   : > { %v3808_v60 = vmul.f32 %v3599_v26, %v8427_v56  ;;  %v8437_v26 = vld [vmem:[#allocation23_spill] sm:$0xff]  ;;  %v3360_v56 = vsel %vm8438_vm1, %v7656_v53, 0.0  ;;  %vm8463_vm1 = vmmov %vm8425_vm0 }
 0x573   : > { %v2916_v38 = vmul.f32 %v8437_v26, %v7602_v17  ;;  %v3361_v11 = vadd.f32 %v3360_v56, %v3359_v13  ;;  %v8445_v26 = vld [vmem:[#allocation89_spill] sm:$0xff]  ;;  %v8447_v13 = vld [vmem:[#allocation55_spill] sm:$0xff] }
 0x574   : > { %v3874_v33 = vsel %vm8430_vm15, %v3808_v60, 0.0  ;;  %vm8446_vm15 = vmmov %vm8425_vm0 }
 0x575   : > { %v3875_v43 = vadd.f32 %v3874_v33, %v3873_v12  ;;  %v8439_v12 = vld [vmem:[#allocation75_spill] sm:$0xff]  ;;  %v3362_v33 = vrot.slane %v3361_v11, 4 }
 0x576   : > { %4488 = vmatmul.msk.f32.gmra.mxu3 %vm2156_vm13, %v2915_v6  ;;  %v8441_v6 = vld [vmem:[#allocation24_spill] sm:$0xff] }
 0x577   : > { %v2917_v28 = vmul.f32 %v8441_v6, %v7602_v17  ;;  %v3363_v61 = vadd.f32 %v3362_v33, %v3361_v11  ;;  %v2919_v11 = vmul.f32 %v8447_v13, %v2890_v2  ;;  %v8448_v6 = vld [vmem:[#allocation17_spill] sm:$0xff] }
 0x578   : > { %v8456_v13 = vld [vmem:[#allocation57_spill] sm:$0xff] }
 0x579   : > { %v3602_v19 = vpop.f32.mrf.mxu3  ;;  %v3364_v58 = vrot.slane %v3363_v61, 2 }
 0x57a   : > { %v3809_v49 = vmul.f32 %v3602_v19, %v8435_v4  ;;  %v2918_v4 = vmul.f32 %v8444_v39, %v7602_v17 }
 0x57b   : > { %v3365_v3 = vadd.f32 %v3364_v58, %v3363_v61 }
 0x57c   : > { %v3876_v7 = vsel %vm8425_vm0, %v3809_v49, 0.0 }
 0x57d   : > { %v3877_v60 = vadd.f32 %v3876_v7, %v3875_v43  ;;  %v3366_v56 = vrot.slane %v3365_v3, 1 }
 0x57e   : > { %4489 = vmatmul.msk.f32.gmra.mxu3 %vm2156_vm13, %v2916_v38 }
 0x581   : > { %v3605_v23 = vpop.f32.mrf.mxu3 }
 0x582   : > { %v3810_v41 = vmul.f32 %v3605_v23, %v8439_v12 }
 0x584   : > { %v3878_v63 = vsel %vm8440_vm11, %v3810_v41, 0.0  ;;  %v3367_v41 = vadd.f32 %v3366_v56, %v3365_v3  ;;  %vm8466_vm11 = vmmov %vm8425_vm0 }
 0x585   : > { %v3879_v50 = vadd.f32 %v3878_v63, %v3877_v60 }
 0x586   : > { %4490 = vmatmul.msk.f32.gmra.mxu3 %vm2156_vm13, %v2917_v28  ;;  %v3375_v28 = vmul.f32 %v3367_v41, %v8448_v6  ;;  %v8457_v41 = vld [vmem:[#allocation77_spill] sm:$0xff] }
 0x589   : > { %v3608_v62 = vpop.f32.mrf.mxu3 }
 0x58a   : > { %v3811_v43 = vmul.f32 %v3608_v62, %v8442_v24  ;;  %v3802_v62 = vpop.f32.mrf.mxu1 }
 0x58c   : > { %v3880_v19 = vsel %vm8443_vm2, %v3811_v43, 0.0  ;;  %v8450_v43 = vld [vmem:[#allocation113_spill] sm:$0xff]  ;;  %vm8469_vm2 = vmmov %vm8425_vm0 }
 0x58d   : > { %v3881_v49 = vadd.f32 %v3880_v19, %v3879_v50  ;;  %v8449_v50 = vld [vmem:[#allocation41_spill] sm:$0xff]  ;;  %v4051_v58 = vsel %vm8451_vm14, %v3375_v28, %v8450_v43  ;;  %v8452_v19 = vld [vmem:[#allocation76_spill] sm:$0xff]  ;;  %vm8477_vm14 = vmmov %vm8425_vm0 }
 0x58e   : > { %4491 = vmatmul.msk.f32.gmra.mxu3 %vm2156_vm13, %v2918_v4  ;;  %v2920_v27 = vmul.f32 %v8449_v50, %v2890_v2  ;;  %v7688_v4 = vmul.f32 %v4051_v58, %v3802_v62 }
 0x591   : > { %v3611_v7 = vpop.f32.mrf.mxu3 }
 0x592   : > { %v3812_v38 = vmul.f32 %v3611_v7, %v8445_v26  ;;  %v8453_v7 = vld [vmem:[#allocation74_spill] sm:$0xff] }
 0x594   : > { %v3882_v60 = vsel %vm8446_vm15, %v3812_v38, 0.0  ;;  %vm8472_vm15 = vmmov %vm8425_vm0 }
 0x595   : > { %v3883_v23 = vadd.f32 %v3882_v60, %v3881_v49 }
 0x596   : > { %4492 = vmatmul.msk.f32.gmra.mxu3 %vm2156_vm13, %v2919_v11  ;;  %v2921_v11 = vmul.f32 %v8456_v13, %v2890_v2  ;;  %v8465_v13 = vld [vmem:[#allocation82_spill] sm:$0xff] }
 0x597   : > { %v3884_v12 = vrot.slane %v3883_v23, 4 }
 0x599   : > { %v3885_v17 = vadd.f32 %v3884_v12, %v3883_v23  ;;  %v3614_v33 = vpop.f32.mrf.mxu3 }
 0x59a   : > { %v3813_v39 = vmul.f32 %v3614_v33, %v8452_v19 }
 0x59b   : > { %v3886_v63 = vrot.slane %v3885_v17, 2 }
 0x59c   : > { %v3890_v56 = vsel %vm8454_vm3, %v3813_v39, 0.0  ;;  %v8462_v39 = vld [vmem:[#allocation81_spill] sm:$0xff]  ;;  %vm8478_vm3 = vmmov %vm8425_vm0 }
 0x59d   : > { %v3887_v61 = vadd.f32 %v3886_v63, %v3885_v17  ;;  %v8459_v63 = vld [vmem:[#allocation20_spill] sm:$0xff] }
 0x59e   : > { %4493 = vmatmul.msk.f32.gmra.mxu3 %vm2156_vm13, %v2920_v27  ;;  %v2922_v6 = vmul.f32 %v8459_v63, %v2890_v2  ;;  %v8460_v27 = vld [vmem:[#allocation78_spill] sm:$0xff] }
 0x59f   : > { %v3888_v24 = vrot.slane %v3887_v61, 1 }
 0x5a1   : > { %v3889_v49 = vadd.f32 %v3888_v24, %v3887_v61  ;;  %v3617_v3 = vpop.f32.mrf.mxu3  ;;  %v8461_v24 = vld [vmem:[#allocation33_spill] sm:$0xff] }
 0x5a2   : > { %v3814_v26 = vmul.f32 %v3617_v3, %v8453_v7  ;;  %v2923_v43 = vmul.f32 %v8461_v24, %v2890_v2  ;;  %v8464_v7 = vld [vmem:[#allocation40_spill] sm:$0xff] }
 0x5a3   : > { %v7692_v38 = vadd.f32 %v7688_v4, %v3889_v49 }
 0x5a4   : > { %v3891_v60 = vsel %vm8455_vm12, %v3814_v26, 0.0  ;;  %v2924_v26 = vmul.f32 %v8464_v7, %v2890_v2  ;;  %vm8481_vm12 = vmmov %vm8425_vm0 }
 0x5a5   : > { %v3892_v23 = vadd.f32 %v3891_v60, %v3890_v56 }
 0x5a6   : > { %4494 = vmatmul.msk.f32.gmra.mxu3 %vm2156_vm13, %v2921_v11 }
 0x5a9   : > { %v3620_v12 = vpop.f32.mrf.mxu3 }
 0x5aa   : > { %v3815_v17 = vmul.f32 %v3620_v12, %v8457_v41  ;;  %v8467_v12 = vld [vmem:[#allocation51_spill] sm:$0xff] }
 0x5ab   : > { %v2925_v41 = vmul.f32 %v8467_v12, %v2890_v2  ;;  %v8475_v12 = vld [vmem:[#allocation83_spill] sm:$0xff] }
 0x5ac   : > { %v3893_v33 = vsel %vm8458_vm4, %v3815_v17, 0.0  ;;  %vm8484_vm4 = vmmov %vm8425_vm0 }
 0x5ad   : > { %v3894_v28 = vadd.f32 %v3893_v33, %v3892_v23  ;;  %v4080_v33 = vld [vmem:[#allocation8 + $0x10] sm:$0xff] }
 0x5ae   : > { %4495 = vmatmul.msk.f32.gmra.mxu3 %vm2156_vm13, %v2922_v6  ;;  %4123 = vmatpush.msrb.mxu2 %v4080_v33  ;;  %v8468_v6 = vld [vmem:[#allocation86_spill] sm:$0xff]  ;;  %v4055_v33 = vrot.slane %v7688_v4, 1 }
 0x5b1   : > { %v3623_v50 = vpop.f32.mrf.mxu3 }
 0x5b2   : > { %v3816_v61 = vmul.f32 %v3623_v50, %v8460_v27  ;;  %v8470_v27 = vld [vmem:[#allocation53_spill] sm:$0xff] }
 0x5b4   : > { %v3895_v62 = vsel %vm8425_vm0, %v3816_v61, 0.0  ;;  %v2926_v61 = vmul.f32 %v8470_v27, %v2890_v2  ;;  %v8474_v2 = vld [vmem:[#allocation59_spill] sm:$0xff] }
 0x5b5   : > { %v3896_v58 = vadd.f32 %v3895_v62, %v3894_v28 }
 0x5b6   : > { %4496 = vmatmul.msk.f32.gmra.mxu3 %vm2156_vm13, %v2923_v43  ;;  %v8471_v43 = vld [vmem:[#allocation87_spill] sm:$0xff] }
 0x5b9   : > { %v3626_v19 = vpop.f32.mrf.mxu3 }
 0x5ba   : > { %v3817_v49 = vmul.f32 %v3626_v19, %v8462_v39  ;;  %v8473_v39 = vld [vmem:[#allocation49_spill] sm:$0xff] }
 0x5bc   : > { %v3897_v3 = vsel %vm8463_vm1, %v3817_v49, 0.0  ;;  %v2927_v49 = vmul.f32 %v8473_v39, %v7482_v29  ;;  %vm8490_vm1 = vmmov %vm8425_vm0 }
 0x5bd   : > { %v3898_v56 = vadd.f32 %v3897_v3, %v3896_v58 }
 0x5be   : > { %4497 = vmatmul.msk.f32.gmra.mxu3 %vm2156_vm13, %v2924_v26 }
 0x5c1   : > { %v3629_v60 = vpop.f32.mrf.mxu3 }
 0x5c2   : > { %v3818_v11 = vmul.f32 %v3629_v60, %v8465_v13  ;;  %v2928_v13 = vmul.f32 %v8474_v2, %v7482_v29 }
 0x5c4   : > { %v3899_v23 = vsel %vm8466_vm11, %v3818_v11, 0.0  ;;  %vm8492_vm11 = vmmov %vm8425_vm0 }
 0x5c5   : > { %v3900_v17 = vadd.f32 %v3899_v23, %v3898_v56 }
 0x5c6   : > { %4498 = vmatmul.msk.f32.gmra.mxu3 %vm2156_vm13, %v2925_v41 }
 0x5c9   : > { %v3632_v63 = vpop.f32.mrf.mxu3 }
 0x5ca   : > { %v3819_v28 = vmul.f32 %v3632_v63, %v8468_v6  ;;  %v8476_v6 = vld [vmem:[#allocation79_spill] sm:$0xff] }
 0x5cc   : > { %v3901_v50 = vsel %vm8469_vm2, %v3819_v28, 0.0  ;;  %vm8495_vm2 = vmmov %vm8425_vm0 }
 0x5cd   : > { %v3902_v62 = vadd.f32 %v3901_v50, %v3900_v17 }
 0x5ce   : > { %4499 = vmatmul.msk.f32.gmra.mxu3 %vm2156_vm13, %v2926_v61 }
 0x5d1   : > { %v3635_v24 = vpop.f32.mrf.mxu3 }
 0x5d2   : > { %v3820_v58 = vmul.f32 %v3635_v24, %v8471_v43 }
 0x5d4   : > { %v3903_v19 = vsel %vm8472_vm15, %v3820_v58, 0.0  ;;  %vm8496_vm15 = vmmov %vm8425_vm0 }
 0x5d5   : > { %v3904_v3 = vadd.f32 %v3903_v19, %v3902_v62  ;;  %v8479_v62 = vld [vmem:[#allocation65_spill] sm:$0xff] }
 0x5d6   : > { %4500 = vmatmul.msk.f32.gmra.mxu3 %vm2156_vm13, %v2927_v49  ;;  %v2929_v24 = vmul.f32 %v8479_v62, %v7482_v29  ;;  %v8480_v49 = vld [vmem:[#allocation84_spill] sm:$0xff] }
 0x5d7   : > { %v3905_v7 = vrot.slane %v3904_v3, 4 }
 0x5d9   : > { %v3906_v26 = vadd.f32 %v3905_v7, %v3904_v3  ;;  %v3638_v56 = vpop.f32.mrf.mxu3 }
 0x5da   : > { %v3821_v41 = vmul.f32 %v3638_v56, %v8475_v12  ;;  %v8485_v12 = vld [vmem:[#allocation114_spill] sm:$0xff] }
 0x5db   : > { %v3907_v60 = vrot.slane %v3906_v26, 2 }
 0x5dc   : > { %v3911_v27 = vsel %vm8477_vm14, %v3821_v41, 0.0  ;;  %v2931_v41 = vmul.f32 %v8485_v12, %v7482_v29  ;;  %v8493_v12 = vld [vmem:[#allocation91_spill] sm:$0xff]  ;;  %vm8498_vm14 = vmmov %vm8425_vm0 }
 0x5dd   : > { %v3908_v11 = vadd.f32 %v3907_v60, %v3906_v26  ;;  %v8482_v26 = vld [vmem:[#allocation112_spill] sm:$0xff] }
 0x5de   : > { %4501 = vmatmul.msk.f32.gmra.mxu3 %vm2156_vm13, %v2928_v13  ;;  %v2930_v56 = vmul.f32 %v8482_v26, %v7482_v29  ;;  %v8483_v13 = vld [vmem:[#allocation85_spill] sm:$0xff] }
 0x5df   : > { %v3909_v23 = vrot.slane %v3908_v11, 1 }
 0x5e1   : > { %v3910_v17 = vadd.f32 %v3909_v23, %v3908_v11  ;;  %v3641_v63 = vpop.f32.mrf.mxu3 }
 0x5e2   : > { %v3822_v28 = vmul.f32 %v3641_v63, %v8476_v6 }
 0x5e3   : > { %v4071_v50 = vadd.f32 %v4055_v33, %v3910_v17  ;;  %v8486_v33 = vld [vmem:[#allocation90_spill] sm:$0xff] }
 0x5e4   : > { %v3912_v61 = vsel %vm8478_vm3, %v3822_v28, 0.0  ;;  %vm8500_vm3 = vmmov %vm8425_vm0 }
 0x5e5   : > { %v4094_v43 = vrot.slane %v4071_v50, 7  ;;  %v3913_v58 = vadd.f32 %v3912_v61, %v3911_v27  ;;  %v8488_v27 = vld [vmem:[#allocation97_spill] sm:$0xff] }
 0x5e6   : > { %4502 = vmatmul.msk.f32.gmra.mxu3 %vm2156_vm13, %v2929_v24 }
 0x5e7   : > { %v4095_v19 = vsel %vm1001_vm5, %v4094_v43, %v7692_v38  ;;  %vm8487_vm5 = vmmov %vm8425_vm0  ;;  %v8489_v43 = vld [vmem:[#allocation103_spill] sm:$0xff] }
 0x5e9   : > { %v3644_v39 = vpop.f32.mrf.mxu3 }
 0x5ea   : > { %v3823_v3 = vmul.f32 %v3644_v39, %v8480_v49 }
 0x5ec   : > { %v3914_v7 = vsel %vm8481_vm12, %v3823_v3, 0.0  ;;  %vm8502_vm12 = vmmov %vm8425_vm0 }
 0x5ed   : > { %v3915_v60 = vadd.f32 %v3914_v7, %v3913_v58 }
 0x5ee   : > { %4503 = vmatmul.msk.f32.gmra.mxu3 %vm2156_vm13, %v2930_v56 }
 0x5f1   : > { %v3647_v2 = vpop.f32.mrf.mxu3 }
 0x5f2   : > { %v3824_v11 = vmul.f32 %v3647_v2, %v8483_v13 }
 0x5f4   : > { %v3916_v23 = vsel %vm8484_vm4, %v3824_v11, 0.0  ;;  %vm8506_vm4 = vmmov %vm8425_vm0 }
 0x5f5   : > { %v3917_v38 = vadd.f32 %v3916_v23, %v3915_v60 }
 0x5f6   : > { %4504 = vmatmul.msk.f32.gmra.mxu3 %vm2156_vm13, %v2931_v41 }
 0x5f9   : > { %v3650_v17 = vpop.f32.mrf.mxu3 }
 0x5fa   : > { %v3825_v63 = vmul.f32 %v3650_v17, %v8486_v33  ;;  %v8494_v33 = vld [vmem:[#allocation88_spill] sm:$0xff] }
 0x5fc   : > { %v3918_v6 = vsel %vm8487_vm5, %v3825_v63, 0.0  ;;  %vm8508_vm5 = vmmov %vm8425_vm0 }
 0x5fd   : > { %v3919_v28 = vadd.f32 %v3918_v6, %v3917_v38  ;;  %v4056_v38 = vrot.slane %v7688_v4, 2 }
 0x5fe   : > { %4505 = vmatmul.msk.f32.gmra.mxu3 %vm2156_vm13, %v7492_v0  ;;  %v8491_v0 = vld [vmem:[#allocation106_spill] sm:$0xff] }
 0x601   : > { %v3653_v50 = vpop.f32.mrf.mxu3 }
 0x602   : > { %v3826_v61 = vmul.f32 %v3653_v50, %v8488_v27 }
 0x604   : > { %v3920_v62 = vsel %vm8425_vm0, %v3826_v61, 0.0  ;;  %v8497_v61 = vld [vmem:[#allocation93_spill] sm:$0xff] }
 0x605   : > { %v3921_v24 = vadd.f32 %v3920_v62, %v3919_v28 }
 0x606   : > { %4506 = vmatmul.msk.f32.gmra.mxu3 %vm2156_vm13, %v7496_v35 }
 0x609   : > { %v3656_v29 = vpop.f32.mrf.mxu3 }
 0x60a   : > { %v3827_v58 = vmul.f32 %v3656_v29, %v8489_v43 }
 0x60c   : > { %v3922_v39 = vsel %vm8490_vm1, %v3827_v58, 0.0  ;;  %vm8511_vm1 = vmmov %vm8425_vm0 }
 0x60d   : > { %v3923_v49 = vadd.f32 %v3922_v39, %v3921_v24  ;;  %v8499_v39 = vld [vmem:[#allocation98_spill] sm:$0xff] }
 0x60e   : > { %4507 = vmatmul.msk.f32.gmra.mxu3 %vm2156_vm13, %v7500_v9 }
 0x611   : > { %v3659_v3 = vpop.f32.mrf.mxu3 }
 0x612   : > { %v3828_v7 = vmul.f32 %v3659_v3, %v8491_v0 }
 0x614   : > { %v3924_v26 = vsel %vm8492_vm11, %v3828_v7, 0.0  ;;  %v8501_v7 = vld [vmem:[#allocation100_spill] sm:$0xff]  ;;  %vm8513_vm11 = vmmov %vm8425_vm0 }
 0x615   : > { %v3925_v56 = vadd.f32 %v3924_v26, %v3923_v49 }
 0x616   : > { %4508 = vmatmul.msk.f32.gmra.mxu3 %vm2156_vm13, %v7503_v44 }
 0x617   : > { %v3926_v60 = vrot.slane %v3925_v56, 4 }
 0x619   : > { %v3927_v35 = vadd.f32 %v3926_v60, %v3925_v56  ;;  %v3662_v2 = vpop.f32.mrf.mxu3 }
 0x61a   : > { %v3829_v9 = vmul.f32 %v3662_v2, %v8493_v12 }
 0x61b   : > { %v3928_v13 = vrot.slane %v3927_v35, 2 }
 0x61c   : > { %v3932_v44 = vsel %vm8495_vm2, %v3829_v9, 0.0  ;;  %vm8515_vm2 = vmmov %vm8425_vm0 }
 0x61d   : > { %v3929_v11 = vadd.f32 %v3928_v13, %v3927_v35 }
 0x61e   : > { %4509 = vmatmul.msk.f32.gmra.mxu3 %vm2156_vm13, %v7506_v55 }
 0x61f   : > { %v3930_v23 = vrot.slane %v3929_v11, 1 }
 0x621   : > { %v3931_v41 = vadd.f32 %v3930_v23, %v3929_v11  ;;  %v3665_v17 = vpop.f32.mrf.mxu3  ;;  %v4079_v11 = vld [vmem:[#allocation8 + $0x8] sm:$0xff]  ;;  %v8505_v23 = vld [vmem:[#allocation105_spill] sm:$0xff] }
 0x622   : > { %v3830_v63 = vmul.f32 %v3665_v17, %v8494_v33  ;;  %4124 = vmatpush.msrb.mxu2 %v4079_v11  ;;  %v8516_v11 = vld [vmem:[#allocation101_spill] sm:$0xff] }
 0x623   : > { %v4072_v6 = vadd.f32 %v4056_v38, %v3931_v41  ;;  %v8507_v38 = vld [vmem:[#allocation109_spill] sm:$0xff] }
 0x624   : > { %v3933_v28 = vsel %vm8496_vm15, %v3830_v63, 0.0  ;;  %vm8517_vm15 = vmmov %vm8425_vm0 }
 0x625   : > { %v3934_v50 = vadd.f32 %v3933_v28, %v3932_v44  ;;  %v4096_v27 = vrot.slane %v4072_v6, 6 }
 0x626   : > { %4510 = vmatmul.msk.f32.gmra.mxu3 %vm2156_vm13, %v7509_v52 }
 0x627   : > { %v4097_v24 = vsel %vm1003_vm6, %v4096_v27, %v4095_v19  ;;  %vm8504_vm6 = vmmov %vm8425_vm0 }
 0x629   : > { %v3668_v55 = vpop.f32.mrf.mxu3 }
 0x62a   : > { %v3831_v62 = vmul.f32 %v3668_v55, %v8497_v61  ;;  %v8509_v55 = vld [vmem:[#allocation94_spill] sm:$0xff] }
 0x62c   : > { %v3935_v29 = vsel %vm8498_vm14, %v3831_v62, 0.0  ;;  %v4057_v62 = vrot.slane %v7688_v4, 3  ;;  %vm8521_vm14 = vmmov %vm8425_vm0 }
 0x62d   : > { %v3936_v43 = vadd.f32 %v3935_v29, %v3934_v50 }
 0x62e   : > { %4511 = vmatmul.msk.f32.gmra.mxu3 %vm2156_vm13, %v7512_v36  ;;  %v8503_v36 = vld [vmem:[#allocation102_spill] sm:$0xff] }
 0x631   : > { %v3671_v58 = vpop.f32.mrf.mxu3 }
 0x632   : > { %v3832_v49 = vmul.f32 %v3671_v58, %v8499_v39 }
 0x634   : > { %v3937_v3 = vsel %vm8500_vm3, %v3832_v49, 0.0  ;;  %vm8523_vm3 = vmmov %vm8425_vm0 }
 0x635   : > { %v3938_v0 = vadd.f32 %v3937_v3, %v3936_v43  ;;  %v8510_v43 = vld [vmem:[#allocation92_spill] sm:$0xff] }
 0x636   : > { %4512 = vmatmul.msk.f32.gmra.mxu3 %vm2156_vm13, %v7515_v47 }
 0x639   : > { %v3674_v52 = vpop.f32.mrf.mxu3 }
 0x63a   : > { %v3833_v26 = vmul.f32 %v3674_v52, %v8501_v7  ;;  %v8512_v52 = vld [vmem:[#allocation95_spill] sm:$0xff] }
 0x63c   : > { %v3939_v19 = vsel %vm8502_vm12, %v3833_v26, 0.0  ;;  %vm8526_vm12 = vmmov %vm8425_vm0 }
 0x63d   : > { %v3940_v56 = vadd.f32 %v3939_v19, %v3938_v0 }
 0x63e   : > { %4513 = vmatmul.msk.f32.gmra.mxu3 %vm2156_vm13, %v7518_v25 }
 0x641   : > { %v3677_v60 = vpop.f32.mrf.mxu3 }
 0x642   : > { %v3834_v35 = vmul.f32 %v3677_v60, %v8503_v36  ;;  %v8514_v36 = vld [vmem:[#allocation99_spill] sm:$0xff] }
 0x644   : > { %v3941_v2 = vsel %vm8504_vm6, %v3834_v35, 0.0  ;;  %vm8527_vm6 = vmmov %vm8425_vm0 }
 0x645   : > { %v3942_v13 = vadd.f32 %v3941_v2, %v3940_v56 }
 0x646   : > { %4514 = vmatmul.msk.f32.gmra.mxu3 %vm2156_vm13, %v7521_v31 }
 0x649   : > { %v3680_v47 = vpop.f32.mrf.mxu3 }
 0x64a   : > { %v3835_v12 = vmul.f32 %v3680_v47, %v8505_v23 }
 0x64c   : > { %v3943_v9 = vsel %vm8506_vm4, %v3835_v12, 0.0  ;;  %vm8529_vm4 = vmmov %vm8425_vm0 }
 0x64d   : > { %v3944_v41 = vadd.f32 %v3943_v9, %v3942_v13 }
 0x64e   : > { %4515 = vmatmul.msk.f32.gmra.mxu3 %vm2156_vm13, %v7524_v45 }
 0x651   : > { %v3683_v25 = vpop.f32.mrf.mxu3 }
 0x652   : > { %v3836_v17 = vmul.f32 %v3683_v25, %v8507_v38 }
 0x654   : > { %v3945_v33 = vsel %vm8508_vm5, %v3836_v17, 0.0  ;;  %vm8531_vm5 = vmmov %vm8425_vm0 }
 0x655   : > { %v3946_v63 = vadd.f32 %v3945_v33, %v3944_v41 }
 0x656   : > { %4516 = vmatmul.msk.f32.gmra.mxu3 %vm2156_vm13, %v7527_v21 }
 0x657   : > { %v3947_v31 = vrot.slane %v3946_v63, 4 }
 0x659   : > { %v3948_v6 = vadd.f32 %v3947_v31, %v3946_v63  ;;  %v3686_v44 = vpop.f32.mrf.mxu3 }
 0x65a   : > { %v3837_v45 = vmul.f32 %v3686_v44, %v8509_v55  ;;  %v8524_v55 = vld [vmem:[#allocation42_spill] sm:$0xff] }
 0x65b   : > { %v3949_v28 = vrot.slane %v3948_v6, 2 }
 0x65c   : > { %v3953_v21 = vsel %vm8425_vm0, %v3837_v45, 0.0 }
 0x65d   : > { %v3950_v50 = vadd.f32 %v3949_v28, %v3948_v6 }
 0x65e   : > { %4517 = vmatmul.msk.f32.gmra.mxu3 %vm2156_vm13, %v7530_v57 }
 0x65f   : > { %v3951_v27 = vrot.slane %v3950_v50, 1 }
 0x661   : > { %v3952_v61 = vadd.f32 %v3951_v27, %v3950_v50  ;;  %v3689_v29 = vpop.f32.mrf.mxu3 }
 0x662   : > { %v3838_v58 = vmul.f32 %v3689_v29, %v8510_v43  ;;  %v4058_v43 = vrot.slane %v7688_v4, 4 }
 0x663   : > { %v4073_v39 = vadd.f32 %v4057_v62, %v3952_v61 }
 0x664   : > { %v3954_v49 = vsel %vm8511_vm1, %v3838_v58, 0.0  ;;  %vm8536_vm1 = vmmov %vm8425_vm0 }
 0x665   : > { %v3955_v3 = vadd.f32 %v3954_v49, %v3953_v21  ;;  %v4098_v0 = vrot.slane %v4073_v39, 5  ;;  %v8525_v39 = vld [vmem:[#allocation44_spill] sm:$0xff] }
 0x666   : > { %4518 = vmatmul.msk.f32.gmra.mxu3 %vm2156_vm13, %v7534_v15 }
 0x667   : > { %v4099_v26 = vsel %vm1005_vm7, %v4098_v0, %v4097_v24  ;;  %vm8519_vm7 = vmmov %vm8425_vm0 }
 0x669   : > { %v3692_v57 = vpop.f32.mrf.mxu3 }
 0x66a   : > { %v3839_v7 = vmul.f32 %v3692_v57, %v8512_v52 }
 0x66c   : > { %v3956_v19 = vsel %vm8513_vm11, %v3839_v7, 0.0  ;;  %v8528_v7 = vld [vmem:[#allocation46_spill] sm:$0xff]  ;;  %vm8538_vm11 = vmmov %vm8425_vm0 }
 0x66d   : > { %v3957_v56 = vadd.f32 %v3956_v19, %v3955_v3 }
 0x66e   : > { %4519 = vmatmul.msk.f32.gmra.mxu3 %vm2156_vm13, %v7537_v16  ;;  %v8518_v16 = vld [vmem:[#allocation104_spill] sm:$0xff] }
 0x671   : > { %v3695_v60 = vpop.f32.mrf.mxu3 }
 0x672   : > { %v3840_v35 = vmul.f32 %v3695_v60, %v8514_v36 }
 0x674   : > { %v3958_v2 = vsel %vm8515_vm2, %v3840_v35, 0.0  ;;  %v8530_v35 = vld [vmem:[#allocation48_spill] sm:$0xff]  ;;  %vm8542_vm2 = vmmov %vm8425_vm0 }
 0x675   : > { %v3959_v13 = vadd.f32 %v3958_v2, %v3957_v56 }
 0x676   : > { %4520 = vmatmul.msk.f32.gmra.mxu3 %vm2156_vm13, %v7540_v5  ;;  %v8520_v5 = vld [vmem:[#allocation107_spill] sm:$0xff] }
 0x679   : > { %v3698_v15 = vpop.f32.mrf.mxu3 }
 0x67a   : > { %v3841_v47 = vmul.f32 %v3698_v15, %v8516_v11  ;;  %v8532_v11 = vld [vmem:[#allocation50_spill] sm:$0xff] }
 0x67c   : > { %v3960_v24 = vsel %vm8517_vm15, %v3841_v47, 0.0  ;;  %vm8544_vm15 = vmmov %vm8425_vm0 }
 0x67d   : > { %v3961_v23 = vadd.f32 %v3960_v24, %v3959_v13 }
 0x67e   : > { %4521 = vmatmul.msk.f32.gmra.mxu3 %vm2156_vm13, %v7543_v37  ;;  %v8522_v37 = vld [vmem:[#allocation110_spill] sm:$0xff] }
 0x681   : > { %v3701_v12 = vpop.f32.mrf.mxu3 }
 0x682   : > { %v3842_v9 = vmul.f32 %v3701_v12, %v8518_v16 }
 0x684   : > { %v3962_v41 = vsel %vm8519_vm7, %v3842_v9, 0.0  ;;  %vm8546_vm7 = vmmov %vm8425_vm0 }
 0x685   : > { %v3963_v25 = vadd.f32 %v3962_v41, %v3961_v23  ;;  %v4078_v41 = vld [vmem:[#allocation8] sm:$0xff] }
 0x686   : > { %4522 = vmatmul.msk.f32.gmra.mxu3 %vm2156_vm13, %v7546_v10  ;;  %4125 = vmatpush.msrb.mxu2 %v4078_v41 }
 0x689   : > { %v3704_v38 = vpop.f32.mrf.mxu3 }
 0x68a   : > { %v3843_v17 = vmul.f32 %v3704_v38, %v8520_v5 }
 0x68c   : > { %v3964_v33 = vsel %vm8521_vm14, %v3843_v17, 0.0  ;;  %vm8548_vm14 = vmmov %vm8425_vm0 }
 0x68d   : > { %v3965_v63 = vadd.f32 %v3964_v33, %v3963_v25  ;;  %v8535_v25 = vld [vmem:[#allocation54_spill] sm:$0xff]  ;;  %v8537_v33 = vld [vmem:[#allocation56_spill] sm:$0xff] }
 0x68e   : > { %4523 = vmatmul.msk.f32.gmra.mxu3 %vm2156_vm13, %v7549_v59 }
 0x691   : > { %v3707_v31 = vpop.f32.mrf.mxu3 }
 0x692   : > { %v3844_v6 = vmul.f32 %v3707_v31, %v8522_v37 }
 0x694   : > { %v3966_v44 = vsel %vm8523_vm3, %v3844_v6, 0.0  ;;  %vm8550_vm3 = vmmov %vm8425_vm0 }
 0x695   : > { %v3967_v28 = vadd.f32 %v3966_v44, %v3965_v63 }
 0x696   : > { %4524 = vmatmul.msk.f32.gmra.mxu3 %vm2156_vm13, %v7552_v20 }
 0x697   : > { %v3968_v50 = vrot.slane %v3967_v28, 4 }
 0x699   : > { %v3969_v10 = vadd.f32 %v3968_v50, %v3967_v28  ;;  %v3710_v27 = vpop.f32.mrf.mxu3 }
 0x69a   : > { %v3845_v45 = vmul.f32 %v3710_v27, %v8524_v55 }
 0x69b   : > { %v3970_v61 = vrot.slane %v3969_v10, 2 }
 0x69c   : > { %v3974_v20 = vsel %vm8526_vm12, %v3845_v45, 0.0  ;;  %vm8554_vm12 = vmmov %vm8425_vm0 }
 0x69d   : > { %v3971_v62 = vadd.f32 %v3970_v61, %v3969_v10  ;;  %v4059_v61 = vrot.slane %v7688_v4, 5 }
 0x69e   : > { %4525 = vmatmul.msk.f32.gmra.mxu3 %vm2156_vm13, %v7555_v40 }
 0x69f   : > { %v3972_v59 = vrot.slane %v3971_v62, 1 }
 0x6a1   : > { %v3973_v29 = vadd.f32 %v3972_v59, %v3971_v62  ;;  %v3713_v58 = vpop.f32.mrf.mxu3  ;;  %v8540_v59 = vld [vmem:[#allocation60_spill] sm:$0xff] }
 0x6a2   : > { %v3846_v21 = vmul.f32 %v3713_v58, %v8525_v39 }
 0x6a3   : > { %v4074_v49 = vadd.f32 %v4058_v43, %v3973_v29 }
 0x6a4   : > { %v3975_v3 = vsel %vm8527_vm6, %v3846_v21, 0.0  ;;  %vm8555_vm6 = vmmov %vm8425_vm0 }
 0x6a5   : > { %v3976_v0 = vadd.f32 %v3975_v3, %v3974_v20  ;;  %v4100_v57 = vrot.slane %v4074_v49, 4  ;;  %v8543_v20 = vld [vmem:[#allocation62_spill] sm:$0xff] }
 0x6a6   : > { %4526 = vmatmul.msk.f32.gmra.mxu3 %vm2156_vm13, %v7558_v18 }
 0x6a7   : > { %v4101_v19 = vsel %vm1007_vm8, %v4100_v57, %v4099_v26  ;;  %vm8534_vm8 = vmmov %vm8425_vm0 }
 0x6a9   : > { %v3716_v52 = vpop.f32.mrf.mxu3 }
 0x6aa   : > { %v3847_v40 = vmul.f32 %v3716_v52, %v8528_v7 }
 0x6ac   : > { %v3977_v56 = vsel %vm8529_vm4, %v3847_v40, 0.0  ;;  %v8545_v40 = vld [vmem:[#allocation64_spill] sm:$0xff]  ;;  %vm8556_vm4 = vmmov %vm8425_vm0 }
 0x6ad   : > { %v3978_v60 = vadd.f32 %v3977_v56, %v3976_v0 }
 0x6ae   : > { %4527 = vmatmul.msk.f32.gmra.mxu3 %vm2156_vm13, %v7561_v22  ;;  %v8533_v22 = vld [vmem:[#allocation52_spill] sm:$0xff] }
 0x6b1   : > { %v3719_v36 = vpop.f32.mrf.mxu3 }
 0x6b2   : > { %v3848_v2 = vmul.f32 %v3719_v36, %v8530_v35 }
 0x6b4   : > { %v3979_v13 = vsel %vm8531_vm5, %v3848_v2, 0.0  ;;  %v8547_v2 = vld [vmem:[#allocation66_spill] sm:$0xff]  ;;  %vm8557_vm5 = vmmov %vm8425_vm0 }
 0x6b5   : > { %v3980_v15 = vadd.f32 %v3979_v13, %v3978_v60 }
 0x6b6   : > { %4528 = vmatmul.msk.f32.gmra.mxu3 %vm2156_vm13, %v7564_v1 }
 0x6b9   : > { %v3722_v18 = vpop.f32.mrf.mxu3 }
 0x6ba   : > { %v3849_v47 = vmul.f32 %v3722_v18, %v8532_v11 }
 0x6bc   : > { %v3981_v26 = vsel %vm8425_vm0, %v3849_v47, 0.0  ;;  %v8549_v47 = vld [vmem:[#allocation67_spill] sm:$0xff] }
 0x6bd   : > { %v3982_v24 = vadd.f32 %v3981_v26, %v3980_v15 }
 0x6be   : > { %4529 = vmatmul.msk.f32.gmra.mxu3 %vm2156_vm13, %v7567_v14 }
 0x6c1   : > { %v3725_v23 = vpop.f32.mrf.mxu3 }
 0x6c2   : > { %v3850_v12 = vmul.f32 %v3725_v23, %v8533_v22  ;;  %v8551_v22 = vld [vmem:[#allocation72_spill] sm:$0xff] }
 0x6c4   : > { %v3983_v16 = vsel %vm8534_vm8, %v3850_v12, 0.0  ;;  %vm8559_vm8 = vmmov %vm8425_vm0 }
 0x6c5   : > { %v3984_v9 = vadd.f32 %v3983_v16, %v3982_v24 }
 0x6c6   : > { %4530 = vmatmul.msk.f32.gmra.mxu3 %vm2156_vm13, %v7570_v32  ;;  %v8539_v32 = vld [vmem:[#allocation58_spill] sm:$0xff] }
 0x6c9   : > { %v3728_v1 = vpop.f32.mrf.mxu3 }
 0x6ca   : > { %v3851_v38 = vmul.f32 %v3728_v1, %v8535_v25  ;;  %v8553_v1 = vld [vmem:[#allocation111_spill] sm:$0xff] }
 0x6cc   : > { %v3985_v5 = vsel %vm8536_vm1, %v3851_v38, 0.0  ;;  %vm8560_vm1 = vmmov %vm8425_vm0 }
 0x6cd   : > { %v3986_v17 = vadd.f32 %v3985_v5, %v3984_v9 }
 0x6ce   : > { %4531 = vmatmul.msk.f32.gmra.mxu3 %vm2156_vm13, %v7573_v46  ;;  %vm8541_vm13 = vmmov %vm8425_vm0 }
 0x6d1   : > { %v3731_v14 = vpop.f32.mrf.mxu3 }
 0x6d2   : > { %v3852_v63 = vmul.f32 %v3731_v14, %v8537_v33 }
 0x6d4   : > { %v3987_v31 = vsel %vm8538_vm11, %v3852_v63, 0.0  ;;  %vm8561_vm11 = vmmov %vm8425_vm0 }
 0x6d5   : > { %v3988_v37 = vadd.f32 %v3987_v31, %v3986_v17 }
 0x6d7   : > { %v3989_v6 = vrot.slane %v3988_v37, 4 }
 0x6d9   : > { %v3990_v44 = vadd.f32 %v3989_v6, %v3988_v37  ;;  %v3734_v28 = vpop.f32.mrf.mxu3 }
 0x6da   : > { %v3853_v50 = vmul.f32 %v3734_v28, %v8539_v32 }
 0x6db   : > { %v3991_v10 = vrot.slane %v3990_v44, 2 }
 0x6dc   : > { %v3995_v43 = vsel %vm8541_vm13, %v3853_v50, 0.0  ;;  %vm8562_vm13 = vcmask 1047559  }
 0x6dd   : > { %v3992_v27 = vadd.f32 %v3991_v10, %v3990_v44  ;;  %v4060_v44 = vrot.slane %v7688_v4, 6 }
 0x6df   : > { %v3993_v55 = vrot.slane %v3992_v27, 1 }
 0x6e1   : > { %v3994_v45 = vadd.f32 %v3993_v55, %v3992_v27  ;;  %v3737_v62 = vpop.f32.mrf.mxu3 }
 0x6e2   : > { %v3854_v46 = vmul.f32 %v3737_v62, %v8540_v59 }
 0x6e3   : > { %v4075_v29 = vadd.f32 %v4059_v61, %v3994_v45 }
 0x6e4   : > { %v3996_v58 = vsel %vm8542_vm2, %v3854_v46, 0.0  ;;  %vm8563_vm2 = vmmov %vm8425_vm0 }
 0x6e5   : > { %v3997_v39 = vadd.f32 %v3996_v58, %v3995_v43  ;;  %v4102_v21 = vrot.slane %v4075_v29, 3 }
 0x6e7   : > { %v4103_v0 = vsel %vm1009_vm9, %v4102_v21, %v4101_v19  ;;  %vm8552_vm9 = vmmov %vm8425_vm0 }
 0x6e9   : > { %v3740_v49 = vpop.f32.mrf.mxu3 }
 0x6ea   : > { %v3855_v3 = vmul.f32 %v3740_v49, %v8543_v20 }
 0x6ec   : > { %v3998_v57 = vsel %vm8544_vm15, %v3855_v3, 0.0 }
 0x6ed   : > { %v3999_v52 = vadd.f32 %v3998_v57, %v3997_v39 }
 0x6f1   : > { %v3743_v7 = vpop.f32.mrf.mxu3 }
 0x6f2   : > { %v3856_v56 = vmul.f32 %v3743_v7, %v8545_v40 }
 0x6f4   : > { %v4000_v60 = vsel %vm8546_vm7, %v3856_v56, 0.0 }
 0x6f5   : > { %v4001_v36 = vadd.f32 %v4000_v60, %v3999_v52 }
 0x6f9   : > { %v3746_v35 = vpop.f32.mrf.mxu3 }
 0x6fa   : > { %v3857_v13 = vmul.f32 %v3746_v35, %v8547_v2 }
 0x6fc   : > { %v4002_v15 = vsel %vm8548_vm14, %v3857_v13, 0.0 }
 0x6fd   : > { %v4003_v18 = vadd.f32 %v4002_v15, %v4001_v36 }
 0x701   : > { %v3749_v11 = vpop.f32.mrf.mxu3 }
 0x702   : > { %v3858_v26 = vmul.f32 %v3749_v11, %v8549_v47  ;;  %v4061_v11 = vrot.slane %v7688_v4, 7 }
 0x704   : > { %v4004_v19 = vsel %vm8550_vm3, %v3858_v26, 0.0 }
 0x705   : > { %v4005_v24 = vadd.f32 %v4004_v19, %v4003_v18 }
 0x709   : > { %v3752_v23 = vpop.f32.mrf.mxu3 }
 0x70a   : > { %v3859_v12 = vmul.f32 %v3752_v23, %v8551_v22 }
 0x70c   : > { %v4006_v16 = vsel %vm8552_vm9, %v3859_v12, 0.0 }
 0x70d   : > { %v4007_v9 = vadd.f32 %v4006_v16, %v4005_v24 }
 0x711   : > { %v3755_v41 = vpop.f32.mrf.mxu3 }
 0x712   : > { %v3860_v25 = vmul.f32 %v3755_v41, %v8553_v1 }
 0x714   : > { %v4008_v38 = vsel %vm8554_vm12, %v3860_v25, 0.0 }
 0x715   : > { %v4009_v5 = vadd.f32 %v4008_v38, %v4007_v9 }
 0x717   : > { %v4010_v17 = vrot.slane %v4009_v5, 4 }
 0x719   : > { %v4011_v14 = vadd.f32 %v4010_v17, %v4009_v5  ;;  %v3758_v33 = vpop.f32.mrf.mxu3 }
 0x71a   : > { %v3861_v59 = vmul.f32 %v3758_v33, %v7625_v30 }
 0x71b   : > { %v4012_v63 = vrot.slane %v4011_v14, 2 }
 0x71c   : > { %v4016_v58 = vsel %vm8556_vm4, %v3861_v59, 0.0 }
 0x71d   : > { %v4013_v31 = vadd.f32 %v4012_v63, %v4011_v14 }
 0x71f   : > { %v4014_v37 = vrot.slane %v4013_v31, 1 }
 0x721   : > { %v4015_v6 = vadd.f32 %v4014_v37, %v4013_v31  ;;  %v3761_v28 = vpop.f32.mrf.mxu3 }
 0x722   : > { %v3862_v62 = vmul.f32 %v3761_v28, %v7621_v34 }
 0x723   : > { %v4076_v32 = vadd.f32 %v4060_v44, %v4015_v6 }
 0x724   : > { %v4017_v29 = vsel %vm8555_vm6, %v3862_v62, 0.0 }
 0x725   : > { %v4104_v50 = vrot.slane %v4076_v32, 2  ;;  %v4018_v49 = vadd.f32 %v4017_v29, %v4016_v58 }
 0x727   : > { %v4105_v27 = vsel %vm1011_vm10, %v4104_v50, %v4103_v0  ;;  %vm8558_vm10 = vmmov %vm8425_vm0 }
 0x729   : > { %v3764_v10 = vpop.f32.mrf.mxu3 }
 0x72a   : > { %v3863_v46 = vmul.f32 %v3764_v10, %v7627_v8 }
 0x72c   : > { %v4019_v39 = vsel %vm8557_vm5, %v3863_v46, 0.0 }
 0x72d   : > { %v4020_v0 = vadd.f32 %v4019_v39, %v4018_v49 }
 0x731   : > { %v3767_v55 = vpop.f32.mrf.mxu3 }
 0x732   : > { %v3864_v43 = vmul.f32 %v3767_v55, %v7633_v42 }
 0x734   : > { %v4021_v3 = vsel %vm8558_vm10, %v3864_v43, 0.0 }
 0x735   : > { %v4022_v57 = vadd.f32 %v4021_v3, %v4020_v0 }
 0x739   : > { %v3770_v45 = vpop.f32.mrf.mxu3 }
 0x73a   : > { %v3865_v21 = vmul.f32 %v3770_v45, %v7640_v51 }
 0x73c   : > { %v4023_v30 = vsel %vm8425_vm0, %v3865_v21, 0.0 }
 0x73d   : > { %v4024_v52 = vadd.f32 %v4023_v30, %v4022_v57 }
 0x741   : > { %v3773_v61 = vpop.f32.mrf.mxu3 }
 0x742   : > { %v3866_v34 = vmul.f32 %v3773_v61, %v7647_v48 }
 0x744   : > { %v4025_v42 = vsel %vm8559_vm8, %v3866_v34, 0.0 }
 0x745   : > { %v4026_v40 = vadd.f32 %v4025_v42, %v4024_v52 }
 0x749   : > { %v3776_v20 = vpop.f32.mrf.mxu3 }
 0x74a   : > { %v3867_v8 = vmul.f32 %v3776_v20, %v7652_v54 }
 0x74c   : > { %v4027_v7 = vsel %vm8560_vm1, %v3867_v8, 0.0 }
 0x74d   : > { %v4028_v60 = vadd.f32 %v4027_v7, %v4026_v40 }
 0x751   : > { %v3779_v56 = vpop.f32.mrf.mxu3 }
 0x752   : > { %v3868_v51 = vmul.f32 %v3779_v56, %v7656_v53  ;;  %v4635_v53 = vld [vmem:[#allocation10] ss:$0 sm:$0xff] }
 0x754   : > { %v4029_v48 = vsel %vm8561_vm11, %v3868_v51, 0.0 }
 0x755   : > { %v4030_v36 = vadd.f32 %v4029_v48, %v4028_v60 }
 0x757   : > { %v4031_v35 = vrot.slane %v4030_v36, 4 }
 0x759   : > { %v4032_v2 = vadd.f32 %v4031_v35, %v4030_v36 }
 0x75b   : > { %v4033_v13 = vrot.slane %v4032_v2, 2 }
 0x75d   : > { %v4034_v54 = vadd.f32 %v4033_v13, %v4032_v2 }
 0x75f   : > { %v4035_v15 = vrot.slane %v4034_v54, 1 }
 0x761   : > { %v4036_v18 = vadd.f32 %v4035_v15, %v4034_v54 }
 0x763   : > { %v4077_v47 = vadd.f32 %v4061_v11, %v4036_v18 }
 0x765   : > { %v4106_v26 = vrot.slane %v4077_v47, 1 }
 0x767   : > { %v4107_v19 = vsel %vm8562_vm13, %v4106_v26, %v4105_v27 }
 0x768   : > { %4534 = vmatmul.msk.f32.vlgmr.msrb.gmra.mxu2 %vm8563_vm2, %v4107_v19 }
 0x7eb   : > { %v4127_v24 = vpop.f32.mrf.mxu2 }
 0x7ec   : > { %v4128_v4 = vadd.f32 %v4635_v53, %v4127_v24 }
 0x7ee   : > { %4130 = vst [vmem:[%s471_s29] sm:$0xff] %v4128_v4 }
 0x7ef   : > { %4963 = shalt.err (!%p4960_p10)
}
 0x7f0   : > { %4559 = dma.vmem_to_hbm [thread:$0]  (%p5172_p3), %s4145_s16, 128, %s4147_s2, %s4132_s25  }
 0x7f1 PF: > { %s4158_s23 = sand.u32 1, %s4998_s17   ;;  %p8565_p12 = scmp.ge.s32.totalorder %s5010_s20, 2 }
 0x7f2   : > { %s4159_s28 = scalar_lea.sflag [#allocation4], %s4158_s23 }
 0x7f3   : > { %p4579_p13 = pnand %p8565_p12, %p5114_p6 }
 0x7f5   : > { %p4580_p0 = pneg %p4579_p13 }
 0x7f7   : > { %4993 = dma.done.wait (%p4580_p0), %s4159_s28, 128  }
 0x7f8   : > { %4995 = vsyncadd (%p4580_p0), %s4159_s28, 4294967168  ;;  %p26_p5 = scmp.ge.s32.totalorder %s5162_s26, 4   ;;  %s8566_s17 = smov %s5002_s18 }
 0x7f9   : > { %s8567_s18 = smov %s5006_s19  ;;  %s8568_s19 = smov %s5178_s24 }
 0x7fa   : > { %s8569_s20 = smov %s5162_s26  ;;  %28 = sbr.rel (!%p26_p5) target bundleno = 12 (0xc), region = 125 }
 0x7ff   :  { %4165 = vsyncpa [#allocation3], 1 }
 0x800   :  { %4167 = vsyncpa [#allocation3 + $0x1], 1 }
 0x801   :  { %4168 = vsyncpa [#allocation6], 1 }
 0x802   :  { %4169 = vsyncpa [#allocation9], 1 }
 0x803   :  { %4170 = vsyncpa [#allocation4], 1 }
 0x804   :  { %4172 = vsyncpa [#allocation4 + $0x1], 1 }

</bundles_post_ra>
